<compile_context>
chip_gen: v7x
topology: tpu7x:2x2x1
jax: 0.10.0
libtpu: 0.0.40
codegen_flags: <defaults>
</compile_context>

<pallas_src>
import functools

import jax
import jax.numpy as jnp
from jax import lax
from jax.experimental import pallas as pl
from jax.experimental.pallas import tpu as pltpu

BN_EPS = 1e-5


def _round_up(v, m):
    return (v + m - 1) // m * m


@functools.lru_cache(maxsize=1)
def _device_budget():
    """Returns (vmem_limit_bytes, max M-tile) gated on the part's VMEM size."""
    cap = None
    try:
        cap = pltpu.get_tpu_info().vmem_capacity_bytes
    except Exception:
        cap = None
    if cap is not None and cap >= 100 * 1024 * 1024:
        return 96 * 1024 * 1024, 1024      # v5e / v6e: 128 MiB VMEM
    return 48 * 1024 * 1024, 512           # v7x: 64 MiB VMEM (or unknown part)


# ----------------------------- Pallas kernels ------------------------------

def _conv_bn_kernel(*refs, relu, has_residual):
    """Grid = (M tiles ["parallel"], K tiles ["arbitrary"]).

    Accumulates one (TM, TK) x (TK, OCp) bf16 matmul (f32 accumulate) into a
    VMEM-resident f32 scratch accumulator; on the last K step applies the
    folded-BN bias, optional residual add and optional ReLU and stores bf16."""
    if has_residual:
        t_ref, w_ref, res_ref, bias_ref, o_ref, acc_ref = refs
    else:
        t_ref, w_ref, bias_ref, o_ref, acc_ref = refs
        res_ref = None

    k = pl.program_id(1)
    d = jnp.dot(t_ref[...], w_ref[...], preferred_element_type=jnp.float32)

    @pl.when(k == 0)
    def _():
        acc_ref[...] = d          # no zero-init store; write first partial

    @pl.when(k > 0)
    def _():
        acc_ref[...] += d

    @pl.when(k == pl.num_programs(1) - 1)
    def _():
        y = acc_ref[...] + bias_ref[...]
        if has_residual:
            y = y + res_ref[...].astype(jnp.float32)
        if relu:
            y = jnp.maximum(y, 0.0)
        o_ref[...] = y.astype(o_ref.dtype)


def _maxpool_kernel(t_ref, o_ref):
    # t_ref: (KTAPS, TM, Cp) taps -> elementwise max over the tap axis.
    o_ref[...] = jnp.max(t_ref[...], axis=0)


# ----------------------------- Pallas wrappers ------------------------------

def _tap_slices(x_pad, kh_range, kw_range, stride, n, oh, ow, c):
    taps = []
    for kh in range(kh_range):
        for kw in range(kw_range):
            taps.append(lax.slice(
                x_pad,
                (0, kh, kw, 0),
                (n, kh + stride * (oh - 1) + 1, kw + stride * (ow - 1) + 1, c),
                (1, stride, stride, 1)))
    return taps


def _im2col(x, kh, kw, stride, padding):
    """Returns (M, KH*KW*IC) bf16 patches with K laid out (kh, kw, ic)-major."""
    N, H, W, IC = x.shape
    OH = (H + 2 * padding - kh) // stride + 1
    OW = (W + 2 * padding - kw) // stride + 1
    xp = jnp.pad(x, ((0, 0), (padding, padding), (padding, padding), (0, 0)))
    taps = _tap_slices(xp, kh, kw, stride, N, OH, OW, IC)
    patches = jnp.stack(taps, axis=3)              # (N, OH, OW, KH*KW, IC)
    return patches.reshape(N * OH * OW, kh * kw * IC), OH, OW


def _pick_m_tile(M, tm_max):
    TM = min(tm_max, _round_up(M, 16))             # 16: bf16 sublane packing
    # Keep >= 2 M tiles when M is not tiny so both v7x TensorCores get work.
    if TM >= 32 and _round_up(M, TM) == TM:
        TM = _round_up(-(-M // 2), 16)
    return TM, _round_up(M, TM)


def conv2d_bn(x, w, scale, bias, *, stride, padding, relu, residual=None):
    """Conv2d (no bias) + folded BN + optional residual + optional ReLU (bf16 out)."""
    N, H, W, IC = x.shape
    KH, KW, _, OC = w.shape
    vmem_limit, tm_max = _device_budget()

    # bf16 BEFORE im2col so the patch tensor is materialized in bf16.
    cols, OH, OW = _im2col(x.astype(jnp.bfloat16), KH, KW, stride, padding)
    M = N * OH * OW
    K = KH * KW * IC

    # Lane-dense / MXU-friendly padded tile sizes.
    OCp = _round_up(OC, 128)
    Kp = _round_up(K, 128)
    if Kp <= 2048:
        TK = Kp
    else:
        TK = 512
        Kp = _round_up(K, TK)
    TM, Mp = _pick_m_tile(M, tm_max)

    cols = jnp.pad(cols, ((0, Mp - M), (0, Kp - K)))
    # Fold BN scale into the weights; only the bias stays in the epilogue.
    w_folded = (w * scale.reshape(1, 1, 1, OC)).reshape(K, OC)
    w2 = jnp.pad(w_folded, ((0, Kp - K), (0, OCp - OC))).astype(jnp.bfloat16)
    bias2 = jnp.pad(bias.astype(jnp.float32), (0, OCp - OC)).reshape(1, OCp)

    in_specs = [
        pl.BlockSpec((TM, TK), lambda m, k: (m, k)),
        pl.BlockSpec((TK, OCp), lambda m, k: (k, 0)),
    ]
    args = [cols, w2]
    if residual is not None:
        r = jnp.pad(residual.reshape(M, OC).astype(jnp.bfloat16),
                    ((0, Mp - M), (0, OCp - OC)))
        args.append(r)
        in_specs.append(pl.BlockSpec((TM, OCp), lambda m, k: (m, 0)))
    args.append(bias2)
    in_specs.append(pl.BlockSpec((1, OCp), lambda m, k: (0, 0)))

    kernel = functools.partial(_conv_bn_kernel, relu=relu,
                               has_residual=residual is not None)
    out = pl.pallas_call(
        kernel,
        out_shape=jax.ShapeDtypeStruct((Mp, OCp), jnp.bfloat16),
        grid_spec=pltpu.PrefetchScalarGridSpec(
            num_scalar_prefetch=0,
            grid=(Mp // TM, Kp // TK),
            in_specs=in_specs,
            out_specs=pl.BlockSpec((TM, OCp), lambda m, k: (m, 0)),
            scratch_shapes=[pltpu.VMEM((TM, OCp), jnp.float32)],
        ),
        compiler_params=pltpu.CompilerParams(
            dimension_semantics=("parallel", "arbitrary"),
            vmem_limit_bytes=vmem_limit),
    )(*args)
    return out[:M, :OC].reshape(N, OH, OW, OC)


def _tap_max(taps, dtype, neg):
    """taps: (KTAPS, M, C) -> (M, C) elementwise max over the tap axis."""
    KT, M, C = taps.shape
    vmem_limit, _ = _device_budget()
    Cp = _round_up(C, 128)
    TM = min(512, _round_up(M, 16))
    Mp = _round_up(M, TM)
    taps = jnp.pad(taps, ((0, 0), (0, Mp - M), (0, Cp - C)),
                   constant_values=neg)
    out = pl.pallas_call(
        _maxpool_kernel,
        out_shape=jax.ShapeDtypeStruct((Mp, Cp), dtype),
        grid_spec=pltpu.PrefetchScalarGridSpec(
            num_scalar_prefetch=0,
            grid=(Mp // TM,),
            in_specs=[pl.BlockSpec((KT, TM, Cp), lambda m: (0, m, 0))],
            out_specs=pl.BlockSpec((TM, Cp), lambda m: (m, 0)),
        ),
        compiler_params=pltpu.CompilerParams(
            dimension_semantics=("parallel",),
            vmem_limit_bytes=vmem_limit),
    )(taps)
    return out[:M, :C]


def maxpool2d(x, *, kernel=3, stride=2, padding=1):
    """Separable 3x3/s2/p1 max pool: 3-tap max over W, then 3-tap max over H."""
    N, H, W, C = x.shape
    OH = (H + 2 * padding - kernel) // stride + 1
    OW = (W + 2 * padding - kernel) // stride + 1
    neg = float(jnp.finfo(x.dtype).min)

    # Pass 1: pool along W (stride 2 in W).
    xw = jnp.pad(x, ((0, 0), (0, 0), (padding, padding), (0, 0)),
                 constant_values=neg)
    taps_w = [lax.slice(xw, (0, 0, kw, 0),
                        (N, H, kw + stride * (OW - 1) + 1, C),
                        (1, 1, stride, 1)) for kw in range(kernel)]
    y = _tap_max(jnp.stack(taps_w, axis=0).reshape(kernel, N * H * OW, C),
                 x.dtype, neg).reshape(N, H, OW, C)

    # Pass 2: pool along H (stride 2 in H).
    yh = jnp.pad(y, ((0, 0), (padding, padding), (0, 0), (0, 0)),
                 constant_values=neg)
    taps_h = [lax.slice(yh, (0, kh, 0, 0),
                        (N, kh + stride * (OH - 1) + 1, OW, C),
                        (1, stride, 1, 1)) for kh in range(kernel)]
    z = _tap_max(jnp.stack(taps_h, axis=0).reshape(kernel, N * OH * OW, C),
                 x.dtype, neg)
    return z.reshape(N, OH, OW, C)


# ----------------------------- parameters -----------------------------------

def _fold_bn(weight, bias, running_mean, running_var):
    scale = weight * lax.rsqrt(running_var + BN_EPS)
    return scale, bias - running_mean * scale


def _init_bn(key, c):
    k1, k2, k3, k4 = jax.random.split(key, 4)
    weight = 1.0 + 0.1 * jax.random.normal(k1, (c,), jnp.float32)
    bias = 0.1 * jax.random.normal(k2, (c,), jnp.float32)
    rmean = 0.1 * jax.random.normal(k3, (c,), jnp.float32)
    rvar = 0.5 + jax.random.uniform(k4, (c,), jnp.float32)
    return _fold_bn(weight, bias, rmean, rvar)


def _init_conv(key, kh, kw, ic, oc):
    fan_in = kh * kw * ic
    return jax.random.normal(key, (kh, kw, ic, oc), jnp.float32) * (2.0 / fan_in) ** 0.5


def init_resnet_params(key, dims, layers):
    keys = iter(jax.random.split(key, 256))
    params = {}
    inplanes = dims[0]
    # stem: 7x7 stride-2 conv (3 -> dims[0]) + FrozenBatchNorm2d
    s_scale, s_bias = _init_bn(next(keys), inplanes)
    params['stem'] = dict(w=_init_conv(next(keys), 7, 7, 3, inplanes),
                          scale=s_scale, bias=s_bias)
    params['layers'] = []
    for li, (planes, nblocks) in enumerate(zip(dims, layers)):
        layer_stride = 1 if li == 0 else 2
        blocks = []
        for bi in range(nblocks):
            s = layer_stride if bi == 0 else 1
            bp = {'stride': s}
            bp['conv1_w'] = _init_conv(next(keys), 3, 3, inplanes, planes)
            bp['bn1_scale'], bp['bn1_bias'] = _init_bn(next(keys), planes)
            bp['conv2_w'] = _init_conv(next(keys), 3, 3, planes, planes)
            bp['bn2_scale'], bp['bn2_bias'] = _init_bn(next(keys), planes)
            if s != 1 or inplanes != planes:  # BasicBlock.expansion == 1
                bp['down_w'] = _init_conv(next(keys), 1, 1, inplanes, planes)
                bp['dbn_scale'], bp['dbn_bias'] = _init_bn(next(keys), planes)
            blocks.append(bp)
            inplanes = planes
        params['layers'].append(blocks)
    return params


# ----------------------------- forward ---------------------------------------

def resnet_forward(x, params, conv_fn, pool_fn):
    """Returns (x1, x2, x3, x4), matching ResNetV1b.forward."""
    p = params['stem']
    x = conv_fn(x, p['w'], p['scale'], p['bias'], stride=2, padding=3, relu=True)
    x = pool_fn(x)
    feats = []
    for blocks in params['layers']:
        for bp in blocks:
            s = bp['stride']
            out = conv_fn(x, bp['conv1_w'], bp['bn1_scale'], bp['bn1_bias'],
                          stride=s, padding=1, relu=True)
            if 'down_w' in bp:
                residual = conv_fn(x, bp['down_w'], bp['dbn_scale'], bp['dbn_bias'],
                                   stride=s, padding=0, relu=False)
            else:
                residual = x
            x = conv_fn(out, bp['conv2_w'], bp['bn2_scale'], bp['bn2_bias'],
                        stride=1, padding=1, relu=True, residual=residual)
        feats.append(x)
    return tuple(feats)


# ----------------------------- pure-JAX reference ----------------------------

def ref_conv2d_bn(x, w, scale, bias, *, stride, padding, relu, residual=None):
    # Mirrors the kernel math: BN scale folded into bf16 weights, bf16 inputs,
    # f32 accumulation/epilogue, bf16 output.
    wf = (w * scale.reshape(1, 1, 1, -1)).astype(jnp.bfloat16)
    y = lax.conv_general_dilated(
        x.astype(jnp.bfloat16), wf,
        window_strides=(stride, stride),
        padding=[(padding, padding), (padding, padding)],
        dimension_numbers=('NHWC', 'HWIO', 'NHWC'),
        preferred_element_type=jnp.float32)
    y = y + bias.reshape(1, 1, 1, -1)
    if residual is not None:
        y = y + residual.astype(jnp.float32)
    if relu:
        y = jnp.maximum(y, 0.0)
    return y.astype(jnp.bfloat16)


def ref_maxpool2d(x):
    init = jnp.asarray(-jnp.inf, x.dtype)
    return lax.reduce_window(x, init, lax.max,
                             window_dimensions=(1, 3, 3, 1),
                             window_strides=(1, 2, 2, 1),
                             padding=[(0, 0), (1, 1), (1, 1), (0, 0)])


# ----------------------------- main ------------------------------------------

if __name__ == "__main__":
    key = jax.random.PRNGKey(0)
    k_in, k_par = jax.random.split(key)

    dims = [8, 16, 32, 64]
    layers = [1, 1, 1, 1]

    # PyTorch-style input (N, C, H, W) = (2, 3, 32, 32), transposed to NHWC.
    x_nchw = jax.random.normal(k_in, (2, 3, 32, 32), jnp.float32)
    x = jnp.transpose(x_nchw, (0, 2, 3, 1))

    params = init_resnet_params(k_par, dims, layers)

    pallas_fwd = jax.jit(lambda xx: resnet_forward(xx, params, conv2d_bn, maxpool2d))
    feats = jax.block_until_ready(pallas_fwd(x))

    # Correctness check against a pure-JAX reference of the same math
    # (bf16 operands/activations, f32 accumulation).
    ref_fwd = jax.jit(lambda xx: resnet_forward(xx, params, ref_conv2d_bn, ref_maxpool2d))
    ref = jax.block_until_ready(ref_fwd(x))
    for a, b in zip(feats, ref):
        assert a.shape == b.shape, (a.shape, b.shape)
        a32 = a.astype(jnp.float32)
        b32 = b.astype(jnp.float32)
        err = float(jnp.max(jnp.abs(a32 - b32)))
        tol = 2e-2 * (1.0 + float(jnp.max(jnp.abs(b32))))
        assert err <= tol, (a.shape, err, tol)

    print("KERNEL_OK")
</pallas_src>

<mosaic_0001>
module attributes {stable_mosaic.version = 11 : i64} {
  func.func @_conv_bn_kernel(%arg0: i32, %arg1: i32, %arg2: memref<256x256xbf16, #tpu.memory_space<vmem>>, %arg3: memref<256x128xbf16, #tpu.memory_space<vmem>>, %arg4: memref<1x128xf32, #tpu.memory_space<vmem>>, %arg5: memref<256x128xbf16, #tpu.memory_space<vmem>>, %arg6: memref<256x128xf32, #tpu.memory_space<vmem>>) attributes {dimension_semantics = [#tpu.dimension_semantics<parallel>, #tpu.dimension_semantics<arbitrary>], iteration_bounds = array<i64: 2, 1>, scalar_prefetch = 0 : i64, scratch_operands = 1 : i64, tpu.core_type = #tpu.core_type<tc>, window_params = [{transform_indices = @transform_0, window_bounds = array<i64: 256, 256>}, {transform_indices = @transform_1, window_bounds = array<i64: 256, 128>}, {pipeline_mode = #tpu.pipeline_mode<synchronous>, transform_indices = @transform_2, window_bounds = array<i64: 1, 128>}, {transform_indices = @transform_3, window_bounds = array<i64: 256, 128>}]} {
    %c0 = arith.constant 0 : index
    %c0_0 = arith.constant 0 : index
    %0 = vector.load %arg2[%c0, %c0_0] : memref<256x256xbf16, #tpu.memory_space<vmem>>, vector<256x256xbf16>
    %c0_1 = arith.constant 0 : index
    %c0_2 = arith.constant 0 : index
    %1 = vector.load %arg3[%c0_1, %c0_2] : memref<256x128xbf16, #tpu.memory_space<vmem>>, vector<256x128xbf16>
    %cst = arith.constant dense<0.000000e+00> : vector<256x128xf32>
    %2 = tpu.matmul %0, %1, %cst {dimension_numbers = #tpu.dot_dimension_numbers<[1], [0], [0], [1], [0, 0, 1, 1], [], []>} : vector<256x256xbf16>, vector<256x128xbf16>, vector<256x128xf32> -> vector<256x128xf32>
    %c0_i32 = arith.constant 0 : i32
    %3 = arith.cmpi eq, %arg1, %c0_i32 : i32
    %4 = arith.extui %3 : i1 to i32
    %c0_i32_3 = arith.constant 0 : i32
    %5 = arith.cmpi ne, %4, %c0_i32_3 : i32
    scf.if %5 {
      %c0_8 = arith.constant 0 : index
      %c0_9 = arith.constant 0 : index
      %12 = vector.load %arg6[%c0_8, %c0_9] : memref<256x128xf32, #tpu.memory_space<vmem>>, vector<256x128xf32>
      tpu.vector_store %arg6[%c0_8, %c0_9], %2 {strides = array<i32>} : memref<256x128xf32, #tpu.memory_space<vmem>>, vector<256x128xf32>,
    } else {
    }
    %c0_i32_4 = arith.constant 0 : i32
    %6 = arith.cmpi sgt, %arg1, %c0_i32_4 : i32
    %7 = arith.extui %6 : i1 to i32
    %c0_i32_5 = arith.constant 0 : i32
    %8 = arith.cmpi ne, %7, %c0_i32_5 : i32
    scf.if %8 {
      %c0_8 = arith.constant 0 : index
      %c0_9 = arith.constant 0 : index
      %12 = vector.load %arg6[%c0_8, %c0_9] : memref<256x128xf32, #tpu.memory_space<vmem>>, vector<256x128xf32>
      %13 = arith.addf %12, %2 : vector<256x128xf32>
      %c0_10 = arith.constant 0 : index
      %c0_11 = arith.constant 0 : index
      %14 = vector.load %arg6[%c0_10, %c0_11] : memref<256x128xf32, #tpu.memory_space<vmem>>, vector<256x128xf32>
      tpu.vector_store %arg6[%c0_10, %c0_11], %13 {strides = array<i32>} : memref<256x128xf32, #tpu.memory_space<vmem>>, vector<256x128xf32>,
    } else {
    }
    %c0_i32_6 = arith.constant 0 : i32
    %9 = arith.cmpi eq, %arg1, %c0_i32_6 : i32
    %10 = arith.extui %9 : i1 to i32
    %c0_i32_7 = arith.constant 0 : i32
    %11 = arith.cmpi ne, %10, %c0_i32_7 : i32
    scf.if %11 {
      %c0_8 = arith.constant 0 : index
      %c0_9 = arith.constant 0 : index
      %12 = vector.load %arg6[%c0_8, %c0_9] : memref<256x128xf32, #tpu.memory_space<vmem>>, vector<256x128xf32>
      %c0_10 = arith.constant 0 : index
      %c0_11 = arith.constant 0 : index
      %13 = vector.load %arg4[%c0_10, %c0_11] : memref<1x128xf32, #tpu.memory_space<vmem>>, vector<1x128xf32>
      %14 = vector.broadcast %13 : vector<1x128xf32> to vector<256x128xf32>
      %15 = arith.addf %12, %14 : vector<256x128xf32>
      %cst_12 = arith.constant 0.000000e+00 : f32
      %16 = vector.broadcast %cst_12 : f32 to vector<256x128xf32>
      %17 = arith.maximumf %15, %16 : vector<256x128xf32>
      %18 = arith.truncf %17 : vector<256x128xf32> to vector<256x128xbf16>
      %c0_13 = arith.constant 0 : index
      %c0_14 = arith.constant 0 : index
      %19 = vector.load %arg5[%c0_13, %c0_14] : memref<256x128xbf16, #tpu.memory_space<vmem>>, vector<256x128xbf16>
      tpu.vector_store %arg5[%c0_13, %c0_14], %18 {strides = array<i32>} : memref<256x128xbf16, #tpu.memory_space<vmem>>, vector<256x128xbf16>,
    } else {
    }
    return
  }
  func.func @transform_0(%arg0: i32, %arg1: i32) -> (i32, i32) {
    %c0_i32 = arith.constant 0 : i32
    return %arg0, %arg1 : i32, i32
  }
  func.func @transform_1(%arg0: i32, %arg1: i32) -> (i32, i32) {
    %c0_i32 = arith.constant 0 : i32
    %c0_i32_0 = arith.constant 0 : i32
    return %arg1, %c0_i32 : i32, i32
  }
  func.func @transform_2(%arg0: i32, %arg1: i32) -> (i32, i32) {
    %c0_i32 = arith.constant 0 : i32
    %c0_i32_0 = arith.constant 0 : i32
    %c0_i32_1 = arith.constant 0 : i32
    return %c0_i32, %c0_i32_0 : i32, i32
  }
  func.func @transform_3(%arg0: i32, %arg1: i32) -> (i32, i32) {
    %c0_i32 = arith.constant 0 : i32
    %c0_i32_0 = arith.constant 0 : i32
    return %arg0, %c0_i32 : i32, i32
  }
}

module attributes {stable_mosaic.version = 11 : i64} {
  func.func @_maxpool_kernel(%arg0: i32, %arg1: memref<3x256x128xbf16, #tpu.memory_space<vmem>>, %arg2: memref<256x128xbf16, #tpu.memory_space<vmem>>) attributes {dimension_semantics = [#tpu.dimension_semantics<parallel>], iteration_bounds = array<i64: 1>, scalar_prefetch = 0 : i64, scratch_operands = 0 : i64, tpu.core_type = #tpu.core_type<tc>, window_params = [{transform_indices = @transform_0, window_bounds = array<i64: 3, 256, 128>}, {transform_indices = @transform_1, window_bounds = array<i64: 256, 128>}]} {
    %c0 = arith.constant 0 : index
    %c0_0 = arith.constant 0 : index
    %c0_1 = arith.constant 0 : index
    %0 = vector.load %arg1[%c0, %c0_0, %c0_1] : memref<3x256x128xbf16, #tpu.memory_space<vmem>>, vector<3x256x128xbf16>
    %cst = arith.constant dense<0xFF80> : vector<256x128xbf16>
    %1 = vector.multi_reduction <maximumf>, %0, %cst [0] : vector<3x256x128xbf16> to vector<256x128xbf16>
    %c0_2 = arith.constant 0 : index
    %c0_3 = arith.constant 0 : index
    %2 = vector.load %arg2[%c0_2, %c0_3] : memref<256x128xbf16, #tpu.memory_space<vmem>>, vector<256x128xbf16>
    tpu.vector_store %arg2[%c0_2, %c0_3], %1 {strides = array<i32>} : memref<256x128xbf16, #tpu.memory_space<vmem>>, vector<256x128xbf16>,
    return
  }
  func.func @transform_0(%arg0: i32) -> (i32, i32, i32) {
    %c0_i32 = arith.constant 0 : i32
    %c0_i32_0 = arith.constant 0 : i32
    %c0_i32_1 = arith.constant 0 : i32
    return %c0_i32, %arg0, %c0_i32_0 : i32, i32, i32
  }
  func.func @transform_1(%arg0: i32) -> (i32, i32) {
    %c0_i32 = arith.constant 0 : i32
    %c0_i32_0 = arith.constant 0 : i32
    return %arg0, %c0_i32 : i32, i32
  }
}

module attributes {stable_mosaic.version = 11 : i64} {
  func.func @_maxpool_kernel(%arg0: i32, %arg1: memref<3x128x128xbf16, #tpu.memory_space<vmem>>, %arg2: memref<128x128xbf16, #tpu.memory_space<vmem>>) attributes {dimension_semantics = [#tpu.dimension_semantics<parallel>], iteration_bounds = array<i64: 1>, scalar_prefetch = 0 : i64, scratch_operands = 0 : i64, tpu.core_type = #tpu.core_type<tc>, window_params = [{transform_indices = @transform_0, window_bounds = array<i64: 3, 128, 128>}, {transform_indices = @transform_1, window_bounds = array<i64: 128, 128>}]} {
    %c0 = arith.constant 0 : index
    %c0_0 = arith.constant 0 : index
    %c0_1 = arith.constant 0 : index
    %0 = vector.load %arg1[%c0, %c0_0, %c0_1] : memref<3x128x128xbf16, #tpu.memory_space<vmem>>, vector<3x128x128xbf16>
    %cst = arith.constant dense<0xFF80> : vector<128x128xbf16>
    %1 = vector.multi_reduction <maximumf>, %0, %cst [0] : vector<3x128x128xbf16> to vector<128x128xbf16>
    %c0_2 = arith.constant 0 : index
    %c0_3 = arith.constant 0 : index
    %2 = vector.load %arg2[%c0_2, %c0_3] : memref<128x128xbf16, #tpu.memory_space<vmem>>, vector<128x128xbf16>
    tpu.vector_store %arg2[%c0_2, %c0_3], %1 {strides = array<i32>} : memref<128x128xbf16, #tpu.memory_space<vmem>>, vector<128x128xbf16>,
    return
  }
  func.func @transform_0(%arg0: i32) -> (i32, i32, i32) {
    %c0_i32 = arith.constant 0 : i32
    %c0_i32_0 = arith.constant 0 : i32
    %c0_i32_1 = arith.constant 0 : i32
    return %c0_i32, %arg0, %c0_i32_0 : i32, i32, i32
  }
  func.func @transform_1(%arg0: i32) -> (i32, i32) {
    %c0_i32 = arith.constant 0 : i32
    %c0_i32_0 = arith.constant 0 : i32
    return %arg0, %c0_i32 : i32, i32
  }
}

module attributes {stable_mosaic.version = 11 : i64} {
  func.func @_conv_bn_kernel(%arg0: i32, %arg1: i32, %arg2: memref<64x128xbf16, #tpu.memory_space<vmem>>, %arg3: memref<128x128xbf16, #tpu.memory_space<vmem>>, %arg4: memref<1x128xf32, #tpu.memory_space<vmem>>, %arg5: memref<64x128xbf16, #tpu.memory_space<vmem>>, %arg6: memref<64x128xf32, #tpu.memory_space<vmem>>) attributes {dimension_semantics = [#tpu.dimension_semantics<parallel>, #tpu.dimension_semantics<arbitrary>], iteration_bounds = array<i64: 2, 1>, scalar_prefetch = 0 : i64, scratch_operands = 1 : i64, tpu.core_type = #tpu.core_type<tc>, window_params = [{transform_indices = @transform_0, window_bounds = array<i64: 64, 128>}, {transform_indices = @transform_1, window_bounds = array<i64: 128, 128>}, {pipeline_mode = #tpu.pipeline_mode<synchronous>, transform_indices = @transform_2, window_bounds = array<i64: 1, 128>}, {transform_indices = @transform_3, window_bounds = array<i64: 64, 128>}]} {
    %c0 = arith.constant 0 : index
    %c0_0 = arith.constant 0 : index
    %0 = vector.load %arg2[%c0, %c0_0] : memref<64x128xbf16, #tpu.memory_space<vmem>>, vector<64x128xbf16>
    %c0_1 = arith.constant 0 : index
    %c0_2 = arith.constant 0 : index
    %1 = vector.load %arg3[%c0_1, %c0_2] : memref<128x128xbf16, #tpu.memory_space<vmem>>, vector<128x128xbf16>
    %cst = arith.constant dense<0.000000e+00> : vector<64x128xf32>
    %2 = tpu.matmul %0, %1, %cst {dimension_numbers = #tpu.dot_dimension_numbers<[1], [0], [0], [1], [0, 0, 1, 1], [], []>} : vector<64x128xbf16>, vector<128x128xbf16>, vector<64x128xf32> -> vector<64x128xf32>
    %c0_i32 = arith.constant 0 : i32
    %3 = arith.cmpi eq, %arg1, %c0_i32 : i32
    %4 = arith.extui %3 : i1 to i32
    %c0_i32_3 = arith.constant 0 : i32
    %5 = arith.cmpi ne, %4, %c0_i32_3 : i32
    scf.if %5 {
      %c0_8 = arith.constant 0 : index
      %c0_9 = arith.constant 0 : index
      %12 = vector.load %arg6[%c0_8, %c0_9] : memref<64x128xf32, #tpu.memory_space<vmem>>, vector<64x128xf32>
      tpu.vector_store %arg6[%c0_8, %c0_9], %2 {strides = array<i32>} : memref<64x128xf32, #tpu.memory_space<vmem>>, vector<64x128xf32>,
    } else {
    }
    %c0_i32_4 = arith.constant 0 : i32
    %6 = arith.cmpi sgt, %arg1, %c0_i32_4 : i32
    %7 = arith.extui %6 : i1 to i32
    %c0_i32_5 = arith.constant 0 : i32
    %8 = arith.cmpi ne, %7, %c0_i32_5 : i32
    scf.if %8 {
      %c0_8 = arith.constant 0 : index
      %c0_9 = arith.constant 0 : index
      %12 = vector.load %arg6[%c0_8, %c0_9] : memref<64x128xf32, #tpu.memory_space<vmem>>, vector<64x128xf32>
      %13 = arith.addf %12, %2 : vector<64x128xf32>
      %c0_10 = arith.constant 0 : index
      %c0_11 = arith.constant 0 : index
      %14 = vector.load %arg6[%c0_10, %c0_11] : memref<64x128xf32, #tpu.memory_space<vmem>>, vector<64x128xf32>
      tpu.vector_store %arg6[%c0_10, %c0_11], %13 {strides = array<i32>} : memref<64x128xf32, #tpu.memory_space<vmem>>, vector<64x128xf32>,
    } else {
    }
    %c0_i32_6 = arith.constant 0 : i32
    %9 = arith.cmpi eq, %arg1, %c0_i32_6 : i32
    %10 = arith.extui %9 : i1 to i32
    %c0_i32_7 = arith.constant 0 : i32
    %11 = arith.cmpi ne, %10, %c0_i32_7 : i32
    scf.if %11 {
      %c0_8 = arith.constant 0 : index
      %c0_9 = arith.constant 0 : index
      %12 = vector.load %arg6[%c0_8, %c0_9] : memref<64x128xf32, #tpu.memory_space<vmem>>, vector<64x128xf32>
      %c0_10 = arith.constant 0 : index
      %c0_11 = arith.constant 0 : index
      %13 = vector.load %arg4[%c0_10, %c0_11] : memref<1x128xf32, #tpu.memory_space<vmem>>, vector<1x128xf32>
      %14 = vector.broadcast %13 : vector<1x128xf32> to vector<64x128xf32>
      %15 = arith.addf %12, %14 : vector<64x128xf32>
      %cst_12 = arith.constant 0.000000e+00 : f32
      %16 = vector.broadcast %cst_12 : f32 to vector<64x128xf32>
      %17 = arith.maximumf %15, %16 : vector<64x128xf32>
      %18 = arith.truncf %17 : vector<64x128xf32> to vector<64x128xbf16>
      %c0_13 = arith.constant 0 : index
      %c0_14 = arith.constant 0 : index
      %19 = vector.load %arg5[%c0_13, %c0_14] : memref<64x128xbf16, #tpu.memory_space<vmem>>, vector<64x128xbf16>
      tpu.vector_store %arg5[%c0_13, %c0_14], %18 {strides = array<i32>} : memref<64x128xbf16, #tpu.memory_space<vmem>>, vector<64x128xbf16>,
    } else {
    }
    return
  }
  func.func @transform_0(%arg0: i32, %arg1: i32) -> (i32, i32) {
    %c0_i32 = arith.constant 0 : i32
    return %arg0, %arg1 : i32, i32
  }
  func.func @transform_1(%arg0: i32, %arg1: i32) -> (i32, i32) {
    %c0_i32 = arith.constant 0 : i32
    %c0_i32_0 = arith.constant 0 : i32
    return %arg1, %c0_i32 : i32, i32
  }
  func.func @transform_2(%arg0: i32, %arg1: i32) -> (i32, i32) {
    %c0_i32 = arith.constant 0 : i32
    %c0_i32_0 = arith.constant 0 : i32
    %c0_i32_1 = arith.constant 0 : i32
    return %c0_i32, %c0_i32_0 : i32, i32
  }
  func.func @transform_3(%arg0: i32, %arg1: i32) -> (i32, i32) {
    %c0_i32 = arith.constant 0 : i32
    %c0_i32_0 = arith.constant 0 : i32
    return %arg0, %c0_i32 : i32, i32
  }
}

module attributes {stable_mosaic.version = 11 : i64} {
  func.func @_conv_bn_kernel(%arg0: i32, %arg1: i32, %arg2: memref<64x128xbf16, #tpu.memory_space<vmem>>, %arg3: memref<128x128xbf16, #tpu.memory_space<vmem>>, %arg4: memref<64x128xbf16, #tpu.memory_space<vmem>>, %arg5: memref<1x128xf32, #tpu.memory_space<vmem>>, %arg6: memref<64x128xbf16, #tpu.memory_space<vmem>>, %arg7: memref<64x128xf32, #tpu.memory_space<vmem>>) attributes {dimension_semantics = [#tpu.dimension_semantics<parallel>, #tpu.dimension_semantics<arbitrary>], iteration_bounds = array<i64: 2, 1>, scalar_prefetch = 0 : i64, scratch_operands = 1 : i64, tpu.core_type = #tpu.core_type<tc>, window_params = [{transform_indices = @transform_0, window_bounds = array<i64: 64, 128>}, {transform_indices = @transform_1, window_bounds = array<i64: 128, 128>}, {transform_indices = @transform_2, window_bounds = array<i64: 64, 128>}, {pipeline_mode = #tpu.pipeline_mode<synchronous>, transform_indices = @transform_3, window_bounds = array<i64: 1, 128>}, {transform_indices = @transform_4, window_bounds = array<i64: 64, 128>}]} {
    %c0 = arith.constant 0 : index
    %c0_0 = arith.constant 0 : index
    %0 = vector.load %arg2[%c0, %c0_0] : memref<64x128xbf16, #tpu.memory_space<vmem>>, vector<64x128xbf16>
    %c0_1 = arith.constant 0 : index
    %c0_2 = arith.constant 0 : index
    %1 = vector.load %arg3[%c0_1, %c0_2] : memref<128x128xbf16, #tpu.memory_space<vmem>>, vector<128x128xbf16>
    %cst = arith.constant dense<0.000000e+00> : vector<64x128xf32>
    %2 = tpu.matmul %0, %1, %cst {dimension_numbers = #tpu.dot_dimension_numbers<[1], [0], [0], [1], [0, 0, 1, 1], [], []>} : vector<64x128xbf16>, vector<128x128xbf16>, vector<64x128xf32> -> vector<64x128xf32>
    %c0_i32 = arith.constant 0 : i32
    %3 = arith.cmpi eq, %arg1, %c0_i32 : i32
    %4 = arith.extui %3 : i1 to i32
    %c0_i32_3 = arith.constant 0 : i32
    %5 = arith.cmpi ne, %4, %c0_i32_3 : i32
    scf.if %5 {
      %c0_8 = arith.constant 0 : index
      %c0_9 = arith.constant 0 : index
      %12 = vector.load %arg7[%c0_8, %c0_9] : memref<64x128xf32, #tpu.memory_space<vmem>>, vector<64x128xf32>
      tpu.vector_store %arg7[%c0_8, %c0_9], %2 {strides = array<i32>} : memref<64x128xf32, #tpu.memory_space<vmem>>, vector<64x128xf32>,
    } else {
    }
    %c0_i32_4 = arith.constant 0 : i32
    %6 = arith.cmpi sgt, %arg1, %c0_i32_4 : i32
    %7 = arith.extui %6 : i1 to i32
    %c0_i32_5 = arith.constant 0 : i32
    %8 = arith.cmpi ne, %7, %c0_i32_5 : i32
    scf.if %8 {
      %c0_8 = arith.constant 0 : index
      %c0_9 = arith.constant 0 : index
      %12 = vector.load %arg7[%c0_8, %c0_9] : memref<64x128xf32, #tpu.memory_space<vmem>>, vector<64x128xf32>
      %13 = arith.addf %12, %2 : vector<64x128xf32>
      %c0_10 = arith.constant 0 : index
      %c0_11 = arith.constant 0 : index
      %14 = vector.load %arg7[%c0_10, %c0_11] : memref<64x128xf32, #tpu.memory_space<vmem>>, vector<64x128xf32>
      tpu.vector_store %arg7[%c0_10, %c0_11], %13 {strides = array<i32>} : memref<64x128xf32, #tpu.memory_space<vmem>>, vector<64x128xf32>,
    } else {
    }
    %c0_i32_6 = arith.constant 0 : i32
    %9 = arith.cmpi eq, %arg1, %c0_i32_6 : i32
    %10 = arith.extui %9 : i1 to i32
    %c0_i32_7 = arith.constant 0 : i32
    %11 = arith.cmpi ne, %10, %c0_i32_7 : i32
    scf.if %11 {
      %c0_8 = arith.constant 0 : index
      %c0_9 = arith.constant 0 : index
      %12 = vector.load %arg7[%c0_8, %c0_9] : memref<64x128xf32, #tpu.memory_space<vmem>>, vector<64x128xf32>
      %c0_10 = arith.constant 0 : index
      %c0_11 = arith.constant 0 : index
      %13 = vector.load %arg5[%c0_10, %c0_11] : memref<1x128xf32, #tpu.memory_space<vmem>>, vector<1x128xf32>
      %14 = vector.broadcast %13 : vector<1x128xf32> to vector<64x128xf32>
      %15 = arith.addf %12, %14 : vector<64x128xf32>
      %c0_12 = arith.constant 0 : index
      %c0_13 = arith.constant 0 : index
      %16 = vector.load %arg4[%c0_12, %c0_13] : memref<64x128xbf16, #tpu.memory_space<vmem>>, vector<64x128xbf16>
      %17 = arith.extf %16 : vector<64x128xbf16> to vector<64x128xf32>
      %18 = arith.addf %15, %17 : vector<64x128xf32>
      %cst_14 = arith.constant 0.000000e+00 : f32
      %19 = vector.broadcast %cst_14 : f32 to vector<64x128xf32>
      %20 = arith.maximumf %18, %19 : vector<64x128xf32>
      %21 = arith.truncf %20 : vector<64x128xf32> to vector<64x128xbf16>
      %c0_15 = arith.constant 0 : index
      %c0_16 = arith.constant 0 : index
      %22 = vector.load %arg6[%c0_15, %c0_16] : memref<64x128xbf16, #tpu.memory_space<vmem>>, vector<64x128xbf16>
      tpu.vector_store %arg6[%c0_15, %c0_16], %21 {strides = array<i32>} : memref<64x128xbf16, #tpu.memory_space<vmem>>, vector<64x128xbf16>,
    } else {
    }
    return
  }
  func.func @transform_0(%arg0: i32, %arg1: i32) -> (i32, i32) {
    %c0_i32 = arith.constant 0 : i32
    return %arg0, %arg1 : i32, i32
  }
  func.func @transform_1(%arg0: i32, %arg1: i32) -> (i32, i32) {
    %c0_i32 = arith.constant 0 : i32
    %c0_i32_0 = arith.constant 0 : i32
    return %arg1, %c0_i32 : i32, i32
  }
  func.func @transform_2(%arg0: i32, %arg1: i32) -> (i32, i32) {
    %c0_i32 = arith.constant 0 : i32
    %c0_i32_0 = arith.constant 0 : i32
    return %arg0, %c0_i32 : i32, i32
  }
  func.func @transform_3(%arg0: i32, %arg1: i32) -> (i32, i32) {
    %c0_i32 = arith.constant 0 : i32
    %c0_i32_0 = arith.constant 0 : i32
    %c0_i32_1 = arith.constant 0 : i32
    return %c0_i32, %c0_i32_0 : i32, i32
  }
  func.func @transform_4(%arg0: i32, %arg1: i32) -> (i32, i32) {
    %c0_i32 = arith.constant 0 : i32
    %c0_i32_0 = arith.constant 0 : i32
    return %arg0, %c0_i32 : i32, i32
  }
}

module attributes {stable_mosaic.version = 11 : i64} {
  func.func @_conv_bn_kernel(%arg0: i32, %arg1: i32, %arg2: memref<16x128xbf16, #tpu.memory_space<vmem>>, %arg3: memref<128x128xbf16, #tpu.memory_space<vmem>>, %arg4: memref<1x128xf32, #tpu.memory_space<vmem>>, %arg5: memref<16x128xbf16, #tpu.memory_space<vmem>>, %arg6: memref<16x128xf32, #tpu.memory_space<vmem>>) attributes {dimension_semantics = [#tpu.dimension_semantics<parallel>, #tpu.dimension_semantics<arbitrary>], iteration_bounds = array<i64: 2, 1>, scalar_prefetch = 0 : i64, scratch_operands = 1 : i64, tpu.core_type = #tpu.core_type<tc>, window_params = [{transform_indices = @transform_0, window_bounds = array<i64: 16, 128>}, {transform_indices = @transform_1, window_bounds = array<i64: 128, 128>}, {pipeline_mode = #tpu.pipeline_mode<synchronous>, transform_indices = @transform_2, window_bounds = array<i64: 1, 128>}, {transform_indices = @transform_3, window_bounds = array<i64: 16, 128>}]} {
    %c0 = arith.constant 0 : index
    %c0_0 = arith.constant 0 : index
    %0 = vector.load %arg2[%c0, %c0_0] : memref<16x128xbf16, #tpu.memory_space<vmem>>, vector<16x128xbf16>
    %c0_1 = arith.constant 0 : index
    %c0_2 = arith.constant 0 : index
    %1 = vector.load %arg3[%c0_1, %c0_2] : memref<128x128xbf16, #tpu.memory_space<vmem>>, vector<128x128xbf16>
    %cst = arith.constant dense<0.000000e+00> : vector<16x128xf32>
    %2 = tpu.matmul %0, %1, %cst {dimension_numbers = #tpu.dot_dimension_numbers<[1], [0], [0], [1], [0, 0, 1, 1], [], []>} : vector<16x128xbf16>, vector<128x128xbf16>, vector<16x128xf32> -> vector<16x128xf32>
    %c0_i32 = arith.constant 0 : i32
    %3 = arith.cmpi eq, %arg1, %c0_i32 : i32
    %4 = arith.extui %3 : i1 to i32
    %c0_i32_3 = arith.constant 0 : i32
    %5 = arith.cmpi ne, %4, %c0_i32_3 : i32
    scf.if %5 {
      %c0_8 = arith.constant 0 : index
      %c0_9 = arith.constant 0 : index
      %12 = vector.load %arg6[%c0_8, %c0_9] : memref<16x128xf32, #tpu.memory_space<vmem>>, vector<16x128xf32>
      tpu.vector_store %arg6[%c0_8, %c0_9], %2 {strides = array<i32>} : memref<16x128xf32, #tpu.memory_space<vmem>>, vector<16x128xf32>,
    } else {
    }
    %c0_i32_4 = arith.constant 0 : i32
    %6 = arith.cmpi sgt, %arg1, %c0_i32_4 : i32
    %7 = arith.extui %6 : i1 to i32
    %c0_i32_5 = arith.constant 0 : i32
    %8 = arith.cmpi ne, %7, %c0_i32_5 : i32
    scf.if %8 {
      %c0_8 = arith.constant 0 : index
      %c0_9 = arith.constant 0 : index
      %12 = vector.load %arg6[%c0_8, %c0_9] : memref<16x128xf32, #tpu.memory_space<vmem>>, vector<16x128xf32>
      %13 = arith.addf %12, %2 : vector<16x128xf32>
      %c0_10 = arith.constant 0 : index
      %c0_11 = arith.constant 0 : index
      %14 = vector.load %arg6[%c0_10, %c0_11] : memref<16x128xf32, #tpu.memory_space<vmem>>, vector<16x128xf32>
      tpu.vector_store %arg6[%c0_10, %c0_11], %13 {strides = array<i32>} : memref<16x128xf32, #tpu.memory_space<vmem>>, vector<16x128xf32>,
    } else {
    }
    %c0_i32_6 = arith.constant 0 : i32
    %9 = arith.cmpi eq, %arg1, %c0_i32_6 : i32
    %10 = arith.extui %9 : i1 to i32
    %c0_i32_7 = arith.constant 0 : i32
    %11 = arith.cmpi ne, %10, %c0_i32_7 : i32
    scf.if %11 {
      %c0_8 = arith.constant 0 : index
      %c0_9 = arith.constant 0 : index
      %12 = vector.load %arg6[%c0_8, %c0_9] : memref<16x128xf32, #tpu.memory_space<vmem>>, vector<16x128xf32>
      %c0_10 = arith.constant 0 : index
      %c0_11 = arith.constant 0 : index
      %13 = vector.load %arg4[%c0_10, %c0_11] : memref<1x128xf32, #tpu.memory_space<vmem>>, vector<1x128xf32>
      %14 = vector.broadcast %13 : vector<1x128xf32> to vector<16x128xf32>
      %15 = arith.addf %12, %14 : vector<16x128xf32>
      %cst_12 = arith.constant 0.000000e+00 : f32
      %16 = vector.broadcast %cst_12 : f32 to vector<16x128xf32>
      %17 = arith.maximumf %15, %16 : vector<16x128xf32>
      %18 = arith.truncf %17 : vector<16x128xf32> to vector<16x128xbf16>
      %c0_13 = arith.constant 0 : index
      %c0_14 = arith.constant 0 : index
      %19 = vector.load %arg5[%c0_13, %c0_14] : memref<16x128xbf16, #tpu.memory_space<vmem>>, vector<16x128xbf16>
      tpu.vector_store %arg5[%c0_13, %c0_14], %18 {strides = array<i32>} : memref<16x128xbf16, #tpu.memory_space<vmem>>, vector<16x128xbf16>,
    } else {
    }
    return
  }
  func.func @transform_0(%arg0: i32, %arg1: i32) -> (i32, i32) {
    %c0_i32 = arith.constant 0 : i32
    return %arg0, %arg1 : i32, i32
  }
  func.func @transform_1(%arg0: i32, %arg1: i32) -> (i32, i32) {
    %c0_i32 = arith.constant 0 : i32
    %c0_i32_0 = arith.constant 0 : i32
    return %arg1, %c0_i32 : i32, i32
  }
  func.func @transform_2(%arg0: i32, %arg1: i32) -> (i32, i32) {
    %c0_i32 = arith.constant 0 : i32
    %c0_i32_0 = arith.constant 0 : i32
    %c0_i32_1 = arith.constant 0 : i32
    return %c0_i32, %c0_i32_0 : i32, i32
  }
  func.func @transform_3(%arg0: i32, %arg1: i32) -> (i32, i32) {
    %c0_i32 = arith.constant 0 : i32
    %c0_i32_0 = arith.constant 0 : i32
    return %arg0, %c0_i32 : i32, i32
  }
}

module attributes {stable_mosaic.version = 11 : i64} {
  func.func @_conv_bn_kernel(%arg0: i32, %arg1: i32, %arg2: memref<16x128xbf16, #tpu.memory_space<vmem>>, %arg3: memref<128x128xbf16, #tpu.memory_space<vmem>>, %arg4: memref<1x128xf32, #tpu.memory_space<vmem>>, %arg5: memref<16x128xbf16, #tpu.memory_space<vmem>>, %arg6: memref<16x128xf32, #tpu.memory_space<vmem>>) attributes {dimension_semantics = [#tpu.dimension_semantics<parallel>, #tpu.dimension_semantics<arbitrary>], iteration_bounds = array<i64: 2, 1>, scalar_prefetch = 0 : i64, scratch_operands = 1 : i64, tpu.core_type = #tpu.core_type<tc>, window_params = [{transform_indices = @transform_0, window_bounds = array<i64: 16, 128>}, {transform_indices = @transform_1, window_bounds = array<i64: 128, 128>}, {pipeline_mode = #tpu.pipeline_mode<synchronous>, transform_indices = @transform_2, window_bounds = array<i64: 1, 128>}, {transform_indices = @transform_3, window_bounds = array<i64: 16, 128>}]} {
    %c0 = arith.constant 0 : index
    %c0_0 = arith.constant 0 : index
    %0 = vector.load %arg2[%c0, %c0_0] : memref<16x128xbf16, #tpu.memory_space<vmem>>, vector<16x128xbf16>
    %c0_1 = arith.constant 0 : index
    %c0_2 = arith.constant 0 : index
    %1 = vector.load %arg3[%c0_1, %c0_2] : memref<128x128xbf16, #tpu.memory_space<vmem>>, vector<128x128xbf16>
    %cst = arith.constant dense<0.000000e+00> : vector<16x128xf32>
    %2 = tpu.matmul %0, %1, %cst {dimension_numbers = #tpu.dot_dimension_numbers<[1], [0], [0], [1], [0, 0, 1, 1], [], []>} : vector<16x128xbf16>, vector<128x128xbf16>, vector<16x128xf32> -> vector<16x128xf32>
    %c0_i32 = arith.constant 0 : i32
    %3 = arith.cmpi eq, %arg1, %c0_i32 : i32
    %4 = arith.extui %3 : i1 to i32
    %c0_i32_3 = arith.constant 0 : i32
    %5 = arith.cmpi ne, %4, %c0_i32_3 : i32
    scf.if %5 {
      %c0_8 = arith.constant 0 : index
      %c0_9 = arith.constant 0 : index
      %12 = vector.load %arg6[%c0_8, %c0_9] : memref<16x128xf32, #tpu.memory_space<vmem>>, vector<16x128xf32>
      tpu.vector_store %arg6[%c0_8, %c0_9], %2 {strides = array<i32>} : memref<16x128xf32, #tpu.memory_space<vmem>>, vector<16x128xf32>,
    } else {
    }
    %c0_i32_4 = arith.constant 0 : i32
    %6 = arith.cmpi sgt, %arg1, %c0_i32_4 : i32
    %7 = arith.extui %6 : i1 to i32
    %c0_i32_5 = arith.constant 0 : i32
    %8 = arith.cmpi ne, %7, %c0_i32_5 : i32
    scf.if %8 {
      %c0_8 = arith.constant 0 : index
      %c0_9 = arith.constant 0 : index
      %12 = vector.load %arg6[%c0_8, %c0_9] : memref<16x128xf32, #tpu.memory_space<vmem>>, vector<16x128xf32>
      %13 = arith.addf %12, %2 : vector<16x128xf32>
      %c0_10 = arith.constant 0 : index
      %c0_11 = arith.constant 0 : index
      %14 = vector.load %arg6[%c0_10, %c0_11] : memref<16x128xf32, #tpu.memory_space<vmem>>, vector<16x128xf32>
      tpu.vector_store %arg6[%c0_10, %c0_11], %13 {strides = array<i32>} : memref<16x128xf32, #tpu.memory_space<vmem>>, vector<16x128xf32>,
    } else {
    }
    %c0_i32_6 = arith.constant 0 : i32
    %9 = arith.cmpi eq, %arg1, %c0_i32_6 : i32
    %10 = arith.extui %9 : i1 to i32
    %c0_i32_7 = arith.constant 0 : i32
    %11 = arith.cmpi ne, %10, %c0_i32_7 : i32
    scf.if %11 {
      %c0_8 = arith.constant 0 : index
      %c0_9 = arith.constant 0 : index
      %12 = vector.load %arg6[%c0_8, %c0_9] : memref<16x128xf32, #tpu.memory_space<vmem>>, vector<16x128xf32>
      %c0_10 = arith.constant 0 : index
      %c0_11 = arith.constant 0 : index
      %13 = vector.load %arg4[%c0_10, %c0_11] : memref<1x128xf32, #tpu.memory_space<vmem>>, vector<1x128xf32>
      %14 = vector.broadcast %13 : vector<1x128xf32> to vector<16x128xf32>
      %15 = arith.addf %12, %14 : vector<16x128xf32>
      %16 = arith.truncf %15 : vector<16x128xf32> to vector<16x128xbf16>
      %c0_12 = arith.constant 0 : index
      %c0_13 = arith.constant 0 : index
      %17 = vector.load %arg5[%c0_12, %c0_13] : memref<16x128xbf16, #tpu.memory_space<vmem>>, vector<16x128xbf16>
      tpu.vector_store %arg5[%c0_12, %c0_13], %16 {strides = array<i32>} : memref<16x128xbf16, #tpu.memory_space<vmem>>, vector<16x128xbf16>,
    } else {
    }
    return
  }
  func.func @transform_0(%arg0: i32, %arg1: i32) -> (i32, i32) {
    %c0_i32 = arith.constant 0 : i32
    return %arg0, %arg1 : i32, i32
  }
  func.func @transform_1(%arg0: i32, %arg1: i32) -> (i32, i32) {
    %c0_i32 = arith.constant 0 : i32
    %c0_i32_0 = arith.constant 0 : i32
    return %arg1, %c0_i32 : i32, i32
  }
  func.func @transform_2(%arg0: i32, %arg1: i32) -> (i32, i32) {
    %c0_i32 = arith.constant 0 : i32
    %c0_i32_0 = arith.constant 0 : i32
    %c0_i32_1 = arith.constant 0 : i32
    return %c0_i32, %c0_i32_0 : i32, i32
  }
  func.func @transform_3(%arg0: i32, %arg1: i32) -> (i32, i32) {
    %c0_i32 = arith.constant 0 : i32
    %c0_i32_0 = arith.constant 0 : i32
    return %arg0, %c0_i32 : i32, i32
  }
}

module attributes {stable_mosaic.version = 11 : i64} {
  func.func @_conv_bn_kernel(%arg0: i32, %arg1: i32, %arg2: memref<16x256xbf16, #tpu.memory_space<vmem>>, %arg3: memref<256x128xbf16, #tpu.memory_space<vmem>>, %arg4: memref<16x128xbf16, #tpu.memory_space<vmem>>, %arg5: memref<1x128xf32, #tpu.memory_space<vmem>>, %arg6: memref<16x128xbf16, #tpu.memory_space<vmem>>, %arg7: memref<16x128xf32, #tpu.memory_space<vmem>>) attributes {dimension_semantics = [#tpu.dimension_semantics<parallel>, #tpu.dimension_semantics<arbitrary>], iteration_bounds = array<i64: 2, 1>, scalar_prefetch = 0 : i64, scratch_operands = 1 : i64, tpu.core_type = #tpu.core_type<tc>, window_params = [{transform_indices = @transform_0, window_bounds = array<i64: 16, 256>}, {transform_indices = @transform_1, window_bounds = array<i64: 256, 128>}, {transform_indices = @transform_2, window_bounds = array<i64: 16, 128>}, {pipeline_mode = #tpu.pipeline_mode<synchronous>, transform_indices = @transform_3, window_bounds = array<i64: 1, 128>}, {transform_indices = @transform_4, window_bounds = array<i64: 16, 128>}]} {
    %c0 = arith.constant 0 : index
    %c0_0 = arith.constant 0 : index
    %0 = vector.load %arg2[%c0, %c0_0] : memref<16x256xbf16, #tpu.memory_space<vmem>>, vector<16x256xbf16>
    %c0_1 = arith.constant 0 : index
    %c0_2 = arith.constant 0 : index
    %1 = vector.load %arg3[%c0_1, %c0_2] : memref<256x128xbf16, #tpu.memory_space<vmem>>, vector<256x128xbf16>
    %cst = arith.constant dense<0.000000e+00> : vector<16x128xf32>
    %2 = tpu.matmul %0, %1, %cst {dimension_numbers = #tpu.dot_dimension_numbers<[1], [0], [0], [1], [0, 0, 1, 1], [], []>} : vector<16x256xbf16>, vector<256x128xbf16>, vector<16x128xf32> -> vector<16x128xf32>
    %c0_i32 = arith.constant 0 : i32
    %3 = arith.cmpi eq, %arg1, %c0_i32 : i32
    %4 = arith.extui %3 : i1 to i32
    %c0_i32_3 = arith.constant 0 : i32
    %5 = arith.cmpi ne, %4, %c0_i32_3 : i32
    scf.if %5 {
      %c0_8 = arith.constant 0 : index
      %c0_9 = arith.constant 0 : index
      %12 = vector.load %arg7[%c0_8, %c0_9] : memref<16x128xf32, #tpu.memory_space<vmem>>, vector<16x128xf32>
      tpu.vector_store %arg7[%c0_8, %c0_9], %2 {strides = array<i32>} : memref<16x128xf32, #tpu.memory_space<vmem>>, vector<16x128xf32>,
    } else {
    }
    %c0_i32_4 = arith.constant 0 : i32
    %6 = arith.cmpi sgt, %arg1, %c0_i32_4 : i32
    %7 = arith.extui %6 : i1 to i32
    %c0_i32_5 = arith.constant 0 : i32
    %8 = arith.cmpi ne, %7, %c0_i32_5 : i32
    scf.if %8 {
      %c0_8 = arith.constant 0 : index
      %c0_9 = arith.constant 0 : index
      %12 = vector.load %arg7[%c0_8, %c0_9] : memref<16x128xf32, #tpu.memory_space<vmem>>, vector<16x128xf32>
      %13 = arith.addf %12, %2 : vector<16x128xf32>
      %c0_10 = arith.constant 0 : index
      %c0_11 = arith.constant 0 : index
      %14 = vector.load %arg7[%c0_10, %c0_11] : memref<16x128xf32, #tpu.memory_space<vmem>>, vector<16x128xf32>
      tpu.vector_store %arg7[%c0_10, %c0_11], %13 {strides = array<i32>} : memref<16x128xf32, #tpu.memory_space<vmem>>, vector<16x128xf32>,
    } else {
    }
    %c0_i32_6 = arith.constant 0 : i32
    %9 = arith.cmpi eq, %arg1, %c0_i32_6 : i32
    %10 = arith.extui %9 : i1 to i32
    %c0_i32_7 = arith.constant 0 : i32
    %11 = arith.cmpi ne, %10, %c0_i32_7 : i32
    scf.if %11 {
      %c0_8 = arith.constant 0 : index
      %c0_9 = arith.constant 0 : index
      %12 = vector.load %arg7[%c0_8, %c0_9] : memref<16x128xf32, #tpu.memory_space<vmem>>, vector<16x128xf32>
      %c0_10 = arith.constant 0 : index
      %c0_11 = arith.constant 0 : index
      %13 = vector.load %arg5[%c0_10, %c0_11] : memref<1x128xf32, #tpu.memory_space<vmem>>, vector<1x128xf32>
      %14 = vector.broadcast %13 : vector<1x128xf32> to vector<16x128xf32>
      %15 = arith.addf %12, %14 : vector<16x128xf32>
      %c0_12 = arith.constant 0 : index
      %c0_13 = arith.constant 0 : index
      %16 = vector.load %arg4[%c0_12, %c0_13] : memref<16x128xbf16, #tpu.memory_space<vmem>>, vector<16x128xbf16>
      %17 = arith.extf %16 : vector<16x128xbf16> to vector<16x128xf32>
      %18 = arith.addf %15, %17 : vector<16x128xf32>
      %cst_14 = arith.constant 0.000000e+00 : f32
      %19 = vector.broadcast %cst_14 : f32 to vector<16x128xf32>
      %20 = arith.maximumf %18, %19 : vector<16x128xf32>
      %21 = arith.truncf %20 : vector<16x128xf32> to vector<16x128xbf16>
      %c0_15 = arith.constant 0 : index
      %c0_16 = arith.constant 0 : index
      %22 = vector.load %arg6[%c0_15, %c0_16] : memref<16x128xbf16, #tpu.memory_space<vmem>>, vector<16x128xbf16>
      tpu.vector_store %arg6[%c0_15, %c0_16], %21 {strides = array<i32>} : memref<16x128xbf16, #tpu.memory_space<vmem>>, vector<16x128xbf16>,
    } else {
    }
    return
  }
  func.func @transform_0(%arg0: i32, %arg1: i32) -> (i32, i32) {
    %c0_i32 = arith.constant 0 : i32
    return %arg0, %arg1 : i32, i32
  }
  func.func @transform_1(%arg0: i32, %arg1: i32) -> (i32, i32) {
    %c0_i32 = arith.constant 0 : i32
    %c0_i32_0 = arith.constant 0 : i32
    return %arg1, %c0_i32 : i32, i32
  }
  func.func @transform_2(%arg0: i32, %arg1: i32) -> (i32, i32) {
    %c0_i32 = arith.constant 0 : i32
    %c0_i32_0 = arith.constant 0 : i32
    return %arg0, %c0_i32 : i32, i32
  }
  func.func @transform_3(%arg0: i32, %arg1: i32) -> (i32, i32) {
    %c0_i32 = arith.constant 0 : i32
    %c0_i32_0 = arith.constant 0 : i32
    %c0_i32_1 = arith.constant 0 : i32
    return %c0_i32, %c0_i32_0 : i32, i32
  }
  func.func @transform_4(%arg0: i32, %arg1: i32) -> (i32, i32) {
    %c0_i32 = arith.constant 0 : i32
    %c0_i32_0 = arith.constant 0 : i32
    return %arg0, %c0_i32 : i32, i32
  }
}

module attributes {stable_mosaic.version = 11 : i64} {
  func.func @_conv_bn_kernel(%arg0: i32, %arg1: i32, %arg2: memref<16x256xbf16, #tpu.memory_space<vmem>>, %arg3: memref<256x128xbf16, #tpu.memory_space<vmem>>, %arg4: memref<1x128xf32, #tpu.memory_space<vmem>>, %arg5: memref<16x128xbf16, #tpu.memory_space<vmem>>, %arg6: memref<16x128xf32, #tpu.memory_space<vmem>>) attributes {dimension_semantics = [#tpu.dimension_semantics<parallel>, #tpu.dimension_semantics<arbitrary>], iteration_bounds = array<i64: 1, 1>, scalar_prefetch = 0 : i64, scratch_operands = 1 : i64, tpu.core_type = #tpu.core_type<tc>, window_params = [{transform_indices = @transform_0, window_bounds = array<i64: 16, 256>}, {transform_indices = @transform_1, window_bounds = array<i64: 256, 128>}, {pipeline_mode = #tpu.pipeline_mode<synchronous>, transform_indices = @transform_2, window_bounds = array<i64: 1, 128>}, {transform_indices = @transform_3, window_bounds = array<i64: 16, 128>}]} {
    %c0 = arith.constant 0 : index
    %c0_0 = arith.constant 0 : index
    %0 = vector.load %arg2[%c0, %c0_0] : memref<16x256xbf16, #tpu.memory_space<vmem>>, vector<16x256xbf16>
    %c0_1 = arith.constant 0 : index
    %c0_2 = arith.constant 0 : index
    %1 = vector.load %arg3[%c0_1, %c0_2] : memref<256x128xbf16, #tpu.memory_space<vmem>>, vector<256x128xbf16>
    %cst = arith.constant dense<0.000000e+00> : vector<16x128xf32>
    %2 = tpu.matmul %0, %1, %cst {dimension_numbers = #tpu.dot_dimension_numbers<[1], [0], [0], [1], [0, 0, 1, 1], [], []>} : vector<16x256xbf16>, vector<256x128xbf16>, vector<16x128xf32> -> vector<16x128xf32>
    %c0_i32 = arith.constant 0 : i32
    %3 = arith.cmpi eq, %arg1, %c0_i32 : i32
    %4 = arith.extui %3 : i1 to i32
    %c0_i32_3 = arith.constant 0 : i32
    %5 = arith.cmpi ne, %4, %c0_i32_3 : i32
    scf.if %5 {
      %c0_8 = arith.constant 0 : index
      %c0_9 = arith.constant 0 : index
      %12 = vector.load %arg6[%c0_8, %c0_9] : memref<16x128xf32, #tpu.memory_space<vmem>>, vector<16x128xf32>
      tpu.vector_store %arg6[%c0_8, %c0_9], %2 {strides = array<i32>} : memref<16x128xf32, #tpu.memory_space<vmem>>, vector<16x128xf32>,
    } else {
    }
    %c0_i32_4 = arith.constant 0 : i32
    %6 = arith.cmpi sgt, %arg1, %c0_i32_4 : i32
    %7 = arith.extui %6 : i1 to i32
    %c0_i32_5 = arith.constant 0 : i32
    %8 = arith.cmpi ne, %7, %c0_i32_5 : i32
    scf.if %8 {
      %c0_8 = arith.constant 0 : index
      %c0_9 = arith.constant 0 : index
      %12 = vector.load %arg6[%c0_8, %c0_9] : memref<16x128xf32, #tpu.memory_space<vmem>>, vector<16x128xf32>
      %13 = arith.addf %12, %2 : vector<16x128xf32>
      %c0_10 = arith.constant 0 : index
      %c0_11 = arith.constant 0 : index
      %14 = vector.load %arg6[%c0_10, %c0_11] : memref<16x128xf32, #tpu.memory_space<vmem>>, vector<16x128xf32>
      tpu.vector_store %arg6[%c0_10, %c0_11], %13 {strides = array<i32>} : memref<16x128xf32, #tpu.memory_space<vmem>>, vector<16x128xf32>,
    } else {
    }
    %c0_i32_6 = arith.constant 0 : i32
    %9 = arith.cmpi eq, %arg1, %c0_i32_6 : i32
    %10 = arith.extui %9 : i1 to i32
    %c0_i32_7 = arith.constant 0 : i32
    %11 = arith.cmpi ne, %10, %c0_i32_7 : i32
    scf.if %11 {
      %c0_8 = arith.constant 0 : index
      %c0_9 = arith.constant 0 : index
      %12 = vector.load %arg6[%c0_8, %c0_9] : memref<16x128xf32, #tpu.memory_space<vmem>>, vector<16x128xf32>
      %c0_10 = arith.constant 0 : index
      %c0_11 = arith.constant 0 : index
      %13 = vector.load %arg4[%c0_10, %c0_11] : memref<1x128xf32, #tpu.memory_space<vmem>>, vector<1x128xf32>
      %14 = vector.broadcast %13 : vector<1x128xf32> to vector<16x128xf32>
      %15 = arith.addf %12, %14 : vector<16x128xf32>
      %cst_12 = arith.constant 0.000000e+00 : f32
      %16 = vector.broadcast %cst_12 : f32 to vector<16x128xf32>
      %17 = arith.maximumf %15, %16 : vector<16x128xf32>
      %18 = arith.truncf %17 : vector<16x128xf32> to vector<16x128xbf16>
      %c0_13 = arith.constant 0 : index
      %c0_14 = arith.constant 0 : index
      %19 = vector.load %arg5[%c0_13, %c0_14] : memref<16x128xbf16, #tpu.memory_space<vmem>>, vector<16x128xbf16>
      tpu.vector_store %arg5[%c0_13, %c0_14], %18 {strides = array<i32>} : memref<16x128xbf16, #tpu.memory_space<vmem>>, vector<16x128xbf16>,
    } else {
    }
    return
  }
  func.func @transform_0(%arg0: i32, %arg1: i32) -> (i32, i32) {
    %c0_i32 = arith.constant 0 : i32
    return %arg0, %arg1 : i32, i32
  }
  func.func @transform_1(%arg0: i32, %arg1: i32) -> (i32, i32) {
    %c0_i32 = arith.constant 0 : i32
    %c0_i32_0 = arith.constant 0 : i32
    return %arg1, %c0_i32 : i32, i32
  }
  func.func @transform_2(%arg0: i32, %arg1: i32) -> (i32, i32) {
    %c0_i32 = arith.constant 0 : i32
    %c0_i32_0 = arith.constant 0 : i32
    %c0_i32_1 = arith.constant 0 : i32
    return %c0_i32, %c0_i32_0 : i32, i32
  }
  func.func @transform_3(%arg0: i32, %arg1: i32) -> (i32, i32) {
    %c0_i32 = arith.constant 0 : i32
    %c0_i32_0 = arith.constant 0 : i32
    return %arg0, %c0_i32 : i32, i32
  }
}

module attributes {stable_mosaic.version = 11 : i64} {
  func.func @_conv_bn_kernel(%arg0: i32, %arg1: i32, %arg2: memref<16x384xbf16, #tpu.memory_space<vmem>>, %arg3: memref<384x128xbf16, #tpu.memory_space<vmem>>, %arg4: memref<16x128xbf16, #tpu.memory_space<vmem>>, %arg5: memref<1x128xf32, #tpu.memory_space<vmem>>, %arg6: memref<16x128xbf16, #tpu.memory_space<vmem>>, %arg7: memref<16x128xf32, #tpu.memory_space<vmem>>) attributes {dimension_semantics = [#tpu.dimension_semantics<parallel>, #tpu.dimension_semantics<arbitrary>], iteration_bounds = array<i64: 1, 1>, scalar_prefetch = 0 : i64, scratch_operands = 1 : i64, tpu.core_type = #tpu.core_type<tc>, window_params = [{transform_indices = @transform_0, window_bounds = array<i64: 16, 384>}, {transform_indices = @transform_1, window_bounds = array<i64: 384, 128>}, {transform_indices = @transform_2, window_bounds = array<i64: 16, 128>}, {pipeline_mode = #tpu.pipeline_mode<synchronous>, transform_indices = @transform_3, window_bounds = array<i64: 1, 128>}, {transform_indices = @transform_4, window_bounds = array<i64: 16, 128>}]} {
    %c0 = arith.constant 0 : index
    %c0_0 = arith.constant 0 : index
    %0 = vector.load %arg2[%c0, %c0_0] : memref<16x384xbf16, #tpu.memory_space<vmem>>, vector<16x384xbf16>
    %c0_1 = arith.constant 0 : index
    %c0_2 = arith.constant 0 : index
    %1 = vector.load %arg3[%c0_1, %c0_2] : memref<384x128xbf16, #tpu.memory_space<vmem>>, vector<384x128xbf16>
    %cst = arith.constant dense<0.000000e+00> : vector<16x128xf32>
    %2 = tpu.matmul %0, %1, %cst {dimension_numbers = #tpu.dot_dimension_numbers<[1], [0], [0], [1], [0, 0, 1, 1], [], []>} : vector<16x384xbf16>, vector<384x128xbf16>, vector<16x128xf32> -> vector<16x128xf32>
    %c0_i32 = arith.constant 0 : i32
    %3 = arith.cmpi eq, %arg1, %c0_i32 : i32
    %4 = arith.extui %3 : i1 to i32
    %c0_i32_3 = arith.constant 0 : i32
    %5 = arith.cmpi ne, %4, %c0_i32_3 : i32
    scf.if %5 {
      %c0_8 = arith.constant 0 : index
      %c0_9 = arith.constant 0 : index
      %12 = vector.load %arg7[%c0_8, %c0_9] : memref<16x128xf32, #tpu.memory_space<vmem>>, vector<16x128xf32>
      tpu.vector_store %arg7[%c0_8, %c0_9], %2 {strides = array<i32>} : memref<16x128xf32, #tpu.memory_space<vmem>>, vector<16x128xf32>,
    } else {
    }
    %c0_i32_4 = arith.constant 0 : i32
    %6 = arith.cmpi sgt, %arg1, %c0_i32_4 : i32
    %7 = arith.extui %6 : i1 to i32
    %c0_i32_5 = arith.constant 0 : i32
    %8 = arith.cmpi ne, %7, %c0_i32_5 : i32
    scf.if %8 {
      %c0_8 = arith.constant 0 : index
      %c0_9 = arith.constant 0 : index
      %12 = vector.load %arg7[%c0_8, %c0_9] : memref<16x128xf32, #tpu.memory_space<vmem>>, vector<16x128xf32>
      %13 = arith.addf %12, %2 : vector<16x128xf32>
      %c0_10 = arith.constant 0 : index
      %c0_11 = arith.constant 0 : index
      %14 = vector.load %arg7[%c0_10, %c0_11] : memref<16x128xf32, #tpu.memory_space<vmem>>, vector<16x128xf32>
      tpu.vector_store %arg7[%c0_10, %c0_11], %13 {strides = array<i32>} : memref<16x128xf32, #tpu.memory_space<vmem>>, vector<16x128xf32>,
    } else {
    }
    %c0_i32_6 = arith.constant 0 : i32
    %9 = arith.cmpi eq, %arg1, %c0_i32_6 : i32
    %10 = arith.extui %9 : i1 to i32
    %c0_i32_7 = arith.constant 0 : i32
    %11 = arith.cmpi ne, %10, %c0_i32_7 : i32
    scf.if %11 {
      %c0_8 = arith.constant 0 : index
      %c0_9 = arith.constant 0 : index
      %12 = vector.load %arg7[%c0_8, %c0_9] : memref<16x128xf32, #tpu.memory_space<vmem>>, vector<16x128xf32>
      %c0_10 = arith.constant 0 : index
      %c0_11 = arith.constant 0 : index
      %13 = vector.load %arg5[%c0_10, %c0_11] : memref<1x128xf32, #tpu.memory_space<vmem>>, vector<1x128xf32>
      %14 = vector.broadcast %13 : vector<1x128xf32> to vector<16x128xf32>
      %15 = arith.addf %12, %14 : vector<16x128xf32>
      %c0_12 = arith.constant 0 : index
      %c0_13 = arith.constant 0 : index
      %16 = vector.load %arg4[%c0_12, %c0_13] : memref<16x128xbf16, #tpu.memory_space<vmem>>, vector<16x128xbf16>
      %17 = arith.extf %16 : vector<16x128xbf16> to vector<16x128xf32>
      %18 = arith.addf %15, %17 : vector<16x128xf32>
      %cst_14 = arith.constant 0.000000e+00 : f32
      %19 = vector.broadcast %cst_14 : f32 to vector<16x128xf32>
      %20 = arith.maximumf %18, %19 : vector<16x128xf32>
      %21 = arith.truncf %20 : vector<16x128xf32> to vector<16x128xbf16>
      %c0_15 = arith.constant 0 : index
      %c0_16 = arith.constant 0 : index
      %22 = vector.load %arg6[%c0_15, %c0_16] : memref<16x128xbf16, #tpu.memory_space<vmem>>, vector<16x128xbf16>
      tpu.vector_store %arg6[%c0_15, %c0_16], %21 {strides = array<i32>} : memref<16x128xbf16, #tpu.memory_space<vmem>>, vector<16x128xbf16>,
    } else {
    }
    return
  }
  func.func @transform_0(%arg0: i32, %arg1: i32) -> (i32, i32) {
    %c0_i32 = arith.constant 0 : i32
    return %arg0, %arg1 : i32, i32
  }
  func.func @transform_1(%arg0: i32, %arg1: i32) -> (i32, i32) {
    %c0_i32 = arith.constant 0 : i32
    %c0_i32_0 = arith.constant 0 : i32
    return %arg1, %c0_i32 : i32, i32
  }
  func.func @transform_2(%arg0: i32, %arg1: i32) -> (i32, i32) {
    %c0_i32 = arith.constant 0 : i32
    %c0_i32_0 = arith.constant 0 : i32
    return %arg0, %c0_i32 : i32, i32
  }
  func.func @transform_3(%arg0: i32, %arg1: i32) -> (i32, i32) {
    %c0_i32 = arith.constant 0 : i32
    %c0_i32_0 = arith.constant 0 : i32
    %c0_i32_1 = arith.constant 0 : i32
    return %c0_i32, %c0_i32_0 : i32, i32
  }
  func.func @transform_4(%arg0: i32, %arg1: i32) -> (i32, i32) {
    %c0_i32 = arith.constant 0 : i32
    %c0_i32_0 = arith.constant 0 : i32
    return %arg0, %c0_i32 : i32, i32
  }
}

module attributes {stable_mosaic.version = 11 : i64} {
  func.func @_conv_bn_kernel(%arg0: i32, %arg1: i32, %arg2: memref<16x128xbf16, #tpu.memory_space<vmem>>, %arg3: memref<128x128xbf16, #tpu.memory_space<vmem>>, %arg4: memref<1x128xf32, #tpu.memory_space<vmem>>, %arg5: memref<16x128xbf16, #tpu.memory_space<vmem>>, %arg6: memref<16x128xf32, #tpu.memory_space<vmem>>) attributes {dimension_semantics = [#tpu.dimension_semantics<parallel>, #tpu.dimension_semantics<arbitrary>], iteration_bounds = array<i64: 1, 1>, scalar_prefetch = 0 : i64, scratch_operands = 1 : i64, tpu.core_type = #tpu.core_type<tc>, window_params = [{transform_indices = @transform_0, window_bounds = array<i64: 16, 128>}, {transform_indices = @transform_1, window_bounds = array<i64: 128, 128>}, {pipeline_mode = #tpu.pipeline_mode<synchronous>, transform_indices = @transform_2, window_bounds = array<i64: 1, 128>}, {transform_indices = @transform_3, window_bounds = array<i64: 16, 128>}]} {
    %c0 = arith.constant 0 : index
    %c0_0 = arith.constant 0 : index
    %0 = vector.load %arg2[%c0, %c0_0] : memref<16x128xbf16, #tpu.memory_space<vmem>>, vector<16x128xbf16>
    %c0_1 = arith.constant 0 : index
    %c0_2 = arith.constant 0 : index
    %1 = vector.load %arg3[%c0_1, %c0_2] : memref<128x128xbf16, #tpu.memory_space<vmem>>, vector<128x128xbf16>
    %cst = arith.constant dense<0.000000e+00> : vector<16x128xf32>
    %2 = tpu.matmul %0, %1, %cst {dimension_numbers = #tpu.dot_dimension_numbers<[1], [0], [0], [1], [0, 0, 1, 1], [], []>} : vector<16x128xbf16>, vector<128x128xbf16>, vector<16x128xf32> -> vector<16x128xf32>
    %c0_i32 = arith.constant 0 : i32
    %3 = arith.cmpi eq, %arg1, %c0_i32 : i32
    %4 = arith.extui %3 : i1 to i32
    %c0_i32_3 = arith.constant 0 : i32
    %5 = arith.cmpi ne, %4, %c0_i32_3 : i32
    scf.if %5 {
      %c0_8 = arith.constant 0 : index
      %c0_9 = arith.constant 0 : index
      %12 = vector.load %arg6[%c0_8, %c0_9] : memref<16x128xf32, #tpu.memory_space<vmem>>, vector<16x128xf32>
      tpu.vector_store %arg6[%c0_8, %c0_9], %2 {strides = array<i32>} : memref<16x128xf32, #tpu.memory_space<vmem>>, vector<16x128xf32>,
    } else {
    }
    %c0_i32_4 = arith.constant 0 : i32
    %6 = arith.cmpi sgt, %arg1, %c0_i32_4 : i32
    %7 = arith.extui %6 : i1 to i32
    %c0_i32_5 = arith.constant 0 : i32
    %8 = arith.cmpi ne, %7, %c0_i32_5 : i32
    scf.if %8 {
      %c0_8 = arith.constant 0 : index
      %c0_9 = arith.constant 0 : index
      %12 = vector.load %arg6[%c0_8, %c0_9] : memref<16x128xf32, #tpu.memory_space<vmem>>, vector<16x128xf32>
      %13 = arith.addf %12, %2 : vector<16x128xf32>
      %c0_10 = arith.constant 0 : index
      %c0_11 = arith.constant 0 : index
      %14 = vector.load %arg6[%c0_10, %c0_11] : memref<16x128xf32, #tpu.memory_space<vmem>>, vector<16x128xf32>
      tpu.vector_store %arg6[%c0_10, %c0_11], %13 {strides = array<i32>} : memref<16x128xf32, #tpu.memory_space<vmem>>, vector<16x128xf32>,
    } else {
    }
    %c0_i32_6 = arith.constant 0 : i32
    %9 = arith.cmpi eq, %arg1, %c0_i32_6 : i32
    %10 = arith.extui %9 : i1 to i32
    %c0_i32_7 = arith.constant 0 : i32
    %11 = arith.cmpi ne, %10, %c0_i32_7 : i32
    scf.if %11 {
      %c0_8 = arith.constant 0 : index
      %c0_9 = arith.constant 0 : index
      %12 = vector.load %arg6[%c0_8, %c0_9] : memref<16x128xf32, #tpu.memory_space<vmem>>, vector<16x128xf32>
      %c0_10 = arith.constant 0 : index
      %c0_11 = arith.constant 0 : index
      %13 = vector.load %arg4[%c0_10, %c0_11] : memref<1x128xf32, #tpu.memory_space<vmem>>, vector<1x128xf32>
      %14 = vector.broadcast %13 : vector<1x128xf32> to vector<16x128xf32>
      %15 = arith.addf %12, %14 : vector<16x128xf32>
      %16 = arith.truncf %15 : vector<16x128xf32> to vector<16x128xbf16>
      %c0_12 = arith.constant 0 : index
      %c0_13 = arith.constant 0 : index
      %17 = vector.load %arg5[%c0_12, %c0_13] : memref<16x128xbf16, #tpu.memory_space<vmem>>, vector<16x128xbf16>
      tpu.vector_store %arg5[%c0_12, %c0_13], %16 {strides = array<i32>} : memref<16x128xbf16, #tpu.memory_space<vmem>>, vector<16x128xbf16>,
    } else {
    }
    return
  }
  func.func @transform_0(%arg0: i32, %arg1: i32) -> (i32, i32) {
    %c0_i32 = arith.constant 0 : i32
    return %arg0, %arg1 : i32, i32
  }
  func.func @transform_1(%arg0: i32, %arg1: i32) -> (i32, i32) {
    %c0_i32 = arith.constant 0 : i32
    %c0_i32_0 = arith.constant 0 : i32
    return %arg1, %c0_i32 : i32, i32
  }
  func.func @transform_2(%arg0: i32, %arg1: i32) -> (i32, i32) {
    %c0_i32 = arith.constant 0 : i32
    %c0_i32_0 = arith.constant 0 : i32
    %c0_i32_1 = arith.constant 0 : i32
    return %c0_i32, %c0_i32_0 : i32, i32
  }
  func.func @transform_3(%arg0: i32, %arg1: i32) -> (i32, i32) {
    %c0_i32 = arith.constant 0 : i32
    %c0_i32_0 = arith.constant 0 : i32
    return %arg0, %c0_i32 : i32, i32
  }
}

module attributes {stable_mosaic.version = 11 : i64} {
  func.func @_conv_bn_kernel(%arg0: i32, %arg1: i32, %arg2: memref<16x384xbf16, #tpu.memory_space<vmem>>, %arg3: memref<384x128xbf16, #tpu.memory_space<vmem>>, %arg4: memref<1x128xf32, #tpu.memory_space<vmem>>, %arg5: memref<16x128xbf16, #tpu.memory_space<vmem>>, %arg6: memref<16x128xf32, #tpu.memory_space<vmem>>) attributes {dimension_semantics = [#tpu.dimension_semantics<parallel>, #tpu.dimension_semantics<arbitrary>], iteration_bounds = array<i64: 1, 1>, scalar_prefetch = 0 : i64, scratch_operands = 1 : i64, tpu.core_type = #tpu.core_type<tc>, window_params = [{transform_indices = @transform_0, window_bounds = array<i64: 16, 384>}, {transform_indices = @transform_1, window_bounds = array<i64: 384, 128>}, {pipeline_mode = #tpu.pipeline_mode<synchronous>, transform_indices = @transform_2, window_bounds = array<i64: 1, 128>}, {transform_indices = @transform_3, window_bounds = array<i64: 16, 128>}]} {
    %c0 = arith.constant 0 : index
    %c0_0 = arith.constant 0 : index
    %0 = vector.load %arg2[%c0, %c0_0] : memref<16x384xbf16, #tpu.memory_space<vmem>>, vector<16x384xbf16>
    %c0_1 = arith.constant 0 : index
    %c0_2 = arith.constant 0 : index
    %1 = vector.load %arg3[%c0_1, %c0_2] : memref<384x128xbf16, #tpu.memory_space<vmem>>, vector<384x128xbf16>
    %cst = arith.constant dense<0.000000e+00> : vector<16x128xf32>
    %2 = tpu.matmul %0, %1, %cst {dimension_numbers = #tpu.dot_dimension_numbers<[1], [0], [0], [1], [0, 0, 1, 1], [], []>} : vector<16x384xbf16>, vector<384x128xbf16>, vector<16x128xf32> -> vector<16x128xf32>
    %c0_i32 = arith.constant 0 : i32
    %3 = arith.cmpi eq, %arg1, %c0_i32 : i32
    %4 = arith.extui %3 : i1 to i32
    %c0_i32_3 = arith.constant 0 : i32
    %5 = arith.cmpi ne, %4, %c0_i32_3 : i32
    scf.if %5 {
      %c0_8 = arith.constant 0 : index
      %c0_9 = arith.constant 0 : index
      %12 = vector.load %arg6[%c0_8, %c0_9] : memref<16x128xf32, #tpu.memory_space<vmem>>, vector<16x128xf32>
      tpu.vector_store %arg6[%c0_8, %c0_9], %2 {strides = array<i32>} : memref<16x128xf32, #tpu.memory_space<vmem>>, vector<16x128xf32>,
    } else {
    }
    %c0_i32_4 = arith.constant 0 : i32
    %6 = arith.cmpi sgt, %arg1, %c0_i32_4 : i32
    %7 = arith.extui %6 : i1 to i32
    %c0_i32_5 = arith.constant 0 : i32
    %8 = arith.cmpi ne, %7, %c0_i32_5 : i32
    scf.if %8 {
      %c0_8 = arith.constant 0 : index
      %c0_9 = arith.constant 0 : index
      %12 = vector.load %arg6[%c0_8, %c0_9] : memref<16x128xf32, #tpu.memory_space<vmem>>, vector<16x128xf32>
      %13 = arith.addf %12, %2 : vector<16x128xf32>
      %c0_10 = arith.constant 0 : index
      %c0_11 = arith.constant 0 : index
      %14 = vector.load %arg6[%c0_10, %c0_11] : memref<16x128xf32, #tpu.memory_space<vmem>>, vector<16x128xf32>
      tpu.vector_store %arg6[%c0_10, %c0_11], %13 {strides = array<i32>} : memref<16x128xf32, #tpu.memory_space<vmem>>, vector<16x128xf32>,
    } else {
    }
    %c0_i32_6 = arith.constant 0 : i32
    %9 = arith.cmpi eq, %arg1, %c0_i32_6 : i32
    %10 = arith.extui %9 : i1 to i32
    %c0_i32_7 = arith.constant 0 : i32
    %11 = arith.cmpi ne, %10, %c0_i32_7 : i32
    scf.if %11 {
      %c0_8 = arith.constant 0 : index
      %c0_9 = arith.constant 0 : index
      %12 = vector.load %arg6[%c0_8, %c0_9] : memref<16x128xf32, #tpu.memory_space<vmem>>, vector<16x128xf32>
      %c0_10 = arith.constant 0 : index
      %c0_11 = arith.constant 0 : index
      %13 = vector.load %arg4[%c0_10, %c0_11] : memref<1x128xf32, #tpu.memory_space<vmem>>, vector<1x128xf32>
      %14 = vector.broadcast %13 : vector<1x128xf32> to vector<16x128xf32>
      %15 = arith.addf %12, %14 : vector<16x128xf32>
      %cst_12 = arith.constant 0.000000e+00 : f32
      %16 = vector.broadcast %cst_12 : f32 to vector<16x128xf32>
      %17 = arith.maximumf %15, %16 : vector<16x128xf32>
      %18 = arith.truncf %17 : vector<16x128xf32> to vector<16x128xbf16>
      %c0_13 = arith.constant 0 : index
      %c0_14 = arith.constant 0 : index
      %19 = vector.load %arg5[%c0_13, %c0_14] : memref<16x128xbf16, #tpu.memory_space<vmem>>, vector<16x128xbf16>
      tpu.vector_store %arg5[%c0_13, %c0_14], %18 {strides = array<i32>} : memref<16x128xbf16, #tpu.memory_space<vmem>>, vector<16x128xbf16>,
    } else {
    }
    return
  }
  func.func @transform_0(%arg0: i32, %arg1: i32) -> (i32, i32) {
    %c0_i32 = arith.constant 0 : i32
    return %arg0, %arg1 : i32, i32
  }
  func.func @transform_1(%arg0: i32, %arg1: i32) -> (i32, i32) {
    %c0_i32 = arith.constant 0 : i32
    %c0_i32_0 = arith.constant 0 : i32
    return %arg1, %c0_i32 : i32, i32
  }
  func.func @transform_2(%arg0: i32, %arg1: i32) -> (i32, i32) {
    %c0_i32 = arith.constant 0 : i32
    %c0_i32_0 = arith.constant 0 : i32
    %c0_i32_1 = arith.constant 0 : i32
    return %c0_i32, %c0_i32_0 : i32, i32
  }
  func.func @transform_3(%arg0: i32, %arg1: i32) -> (i32, i32) {
    %c0_i32 = arith.constant 0 : i32
    %c0_i32_0 = arith.constant 0 : i32
    return %arg0, %c0_i32 : i32, i32
  }
}

module attributes {stable_mosaic.version = 11 : i64} {
  func.func @_conv_bn_kernel(%arg0: i32, %arg1: i32, %arg2: memref<16x640xbf16, #tpu.memory_space<vmem>>, %arg3: memref<640x128xbf16, #tpu.memory_space<vmem>>, %arg4: memref<16x128xbf16, #tpu.memory_space<vmem>>, %arg5: memref<1x128xf32, #tpu.memory_space<vmem>>, %arg6: memref<16x128xbf16, #tpu.memory_space<vmem>>, %arg7: memref<16x128xf32, #tpu.memory_space<vmem>>) attributes {dimension_semantics = [#tpu.dimension_semantics<parallel>, #tpu.dimension_semantics<arbitrary>], iteration_bounds = array<i64: 1, 1>, scalar_prefetch = 0 : i64, scratch_operands = 1 : i64, tpu.core_type = #tpu.core_type<tc>, window_params = [{transform_indices = @transform_0, window_bounds = array<i64: 16, 640>}, {transform_indices = @transform_1, window_bounds = array<i64: 640, 128>}, {transform_indices = @transform_2, window_bounds = array<i64: 16, 128>}, {pipeline_mode = #tpu.pipeline_mode<synchronous>, transform_indices = @transform_3, window_bounds = array<i64: 1, 128>}, {transform_indices = @transform_4, window_bounds = array<i64: 16, 128>}]} {
    %c0 = arith.constant 0 : index
    %c0_0 = arith.constant 0 : index
    %0 = vector.load %arg2[%c0, %c0_0] : memref<16x640xbf16, #tpu.memory_space<vmem>>, vector<16x640xbf16>
    %c0_1 = arith.constant 0 : index
    %c0_2 = arith.constant 0 : index
    %1 = vector.load %arg3[%c0_1, %c0_2] : memref<640x128xbf16, #tpu.memory_space<vmem>>, vector<640x128xbf16>
    %cst = arith.constant dense<0.000000e+00> : vector<16x128xf32>
    %2 = tpu.matmul %0, %1, %cst {dimension_numbers = #tpu.dot_dimension_numbers<[1], [0], [0], [1], [0, 0, 1, 1], [], []>} : vector<16x640xbf16>, vector<640x128xbf16>, vector<16x128xf32> -> vector<16x128xf32>
    %c0_i32 = arith.constant 0 : i32
    %3 = arith.cmpi eq, %arg1, %c0_i32 : i32
    %4 = arith.extui %3 : i1 to i32
    %c0_i32_3 = arith.constant 0 : i32
    %5 = arith.cmpi ne, %4, %c0_i32_3 : i32
    scf.if %5 {
      %c0_8 = arith.constant 0 : index
      %c0_9 = arith.constant 0 : index
      %12 = vector.load %arg7[%c0_8, %c0_9] : memref<16x128xf32, #tpu.memory_space<vmem>>, vector<16x128xf32>
      tpu.vector_store %arg7[%c0_8, %c0_9], %2 {strides = array<i32>} : memref<16x128xf32, #tpu.memory_space<vmem>>, vector<16x128xf32>,
    } else {
    }
    %c0_i32_4 = arith.constant 0 : i32
    %6 = arith.cmpi sgt, %arg1, %c0_i32_4 : i32
    %7 = arith.extui %6 : i1 to i32
    %c0_i32_5 = arith.constant 0 : i32
    %8 = arith.cmpi ne, %7, %c0_i32_5 : i32
    scf.if %8 {
      %c0_8 = arith.constant 0 : index
      %c0_9 = arith.constant 0 : index
      %12 = vector.load %arg7[%c0_8, %c0_9] : memref<16x128xf32, #tpu.memory_space<vmem>>, vector<16x128xf32>
      %13 = arith.addf %12, %2 : vector<16x128xf32>
      %c0_10 = arith.constant 0 : index
      %c0_11 = arith.constant 0 : index
      %14 = vector.load %arg7[%c0_10, %c0_11] : memref<16x128xf32, #tpu.memory_space<vmem>>, vector<16x128xf32>
      tpu.vector_store %arg7[%c0_10, %c0_11], %13 {strides = array<i32>} : memref<16x128xf32, #tpu.memory_space<vmem>>, vector<16x128xf32>,
    } else {
    }
    %c0_i32_6 = arith.constant 0 : i32
    %9 = arith.cmpi eq, %arg1, %c0_i32_6 : i32
    %10 = arith.extui %9 : i1 to i32
    %c0_i32_7 = arith.constant 0 : i32
    %11 = arith.cmpi ne, %10, %c0_i32_7 : i32
    scf.if %11 {
      %c0_8 = arith.constant 0 : index
      %c0_9 = arith.constant 0 : index
      %12 = vector.load %arg7[%c0_8, %c0_9] : memref<16x128xf32, #tpu.memory_space<vmem>>, vector<16x128xf32>
      %c0_10 = arith.constant 0 : index
      %c0_11 = arith.constant 0 : index
      %13 = vector.load %arg5[%c0_10, %c0_11] : memref<1x128xf32, #tpu.memory_space<vmem>>, vector<1x128xf32>
      %14 = vector.broadcast %13 : vector<1x128xf32> to vector<16x128xf32>
      %15 = arith.addf %12, %14 : vector<16x128xf32>
      %c0_12 = arith.constant 0 : index
      %c0_13 = arith.constant 0 : index
      %16 = vector.load %arg4[%c0_12, %c0_13] : memref<16x128xbf16, #tpu.memory_space<vmem>>, vector<16x128xbf16>
      %17 = arith.extf %16 : vector<16x128xbf16> to vector<16x128xf32>
      %18 = arith.addf %15, %17 : vector<16x128xf32>
      %cst_14 = arith.constant 0.000000e+00 : f32
      %19 = vector.broadcast %cst_14 : f32 to vector<16x128xf32>
      %20 = arith.maximumf %18, %19 : vector<16x128xf32>
      %21 = arith.truncf %20 : vector<16x128xf32> to vector<16x128xbf16>
      %c0_15 = arith.constant 0 : index
      %c0_16 = arith.constant 0 : index
      %22 = vector.load %arg6[%c0_15, %c0_16] : memref<16x128xbf16, #tpu.memory_space<vmem>>, vector<16x128xbf16>
      tpu.vector_store %arg6[%c0_15, %c0_16], %21 {strides = array<i32>} : memref<16x128xbf16, #tpu.memory_space<vmem>>, vector<16x128xbf16>,
    } else {
    }
    return
  }
  func.func @transform_0(%arg0: i32, %arg1: i32) -> (i32, i32) {
    %c0_i32 = arith.constant 0 : i32
    return %arg0, %arg1 : i32, i32
  }
  func.func @transform_1(%arg0: i32, %arg1: i32) -> (i32, i32) {
    %c0_i32 = arith.constant 0 : i32
    %c0_i32_0 = arith.constant 0 : i32
    return %arg1, %c0_i32 : i32, i32
  }
  func.func @transform_2(%arg0: i32, %arg1: i32) -> (i32, i32) {
    %c0_i32 = arith.constant 0 : i32
    %c0_i32_0 = arith.constant 0 : i32
    return %arg0, %c0_i32 : i32, i32
  }
  func.func @transform_3(%arg0: i32, %arg1: i32) -> (i32, i32) {
    %c0_i32 = arith.constant 0 : i32
    %c0_i32_0 = arith.constant 0 : i32
    %c0_i32_1 = arith.constant 0 : i32
    return %c0_i32, %c0_i32_0 : i32, i32
  }
  func.func @transform_4(%arg0: i32, %arg1: i32) -> (i32, i32) {
    %c0_i32 = arith.constant 0 : i32
    %c0_i32_0 = arith.constant 0 : i32
    return %arg0, %c0_i32 : i32, i32
  }
}

</mosaic_0001>

<bundles_post_ra>
// kernel: _lambda_.14
= control target key start
LH: loop header
LB: loop body
LE: loop exit
PB: predicated region body
PF: predicated region fallthrough
CT: control target
= control target key end

     0   :  { %s1679_s12 = smov 0   ;;  %s1681_s13 = smov 0   ;;  %s1853_s0 = inlined_call_operand.vmem [shape: bf16[512,256], index: 0, kind: input, shape index: {}]   ;;  %s1854_s1 = inlined_call_operand.vmem [shape: bf16[256,128], index: 1, kind: input, shape index: {}]   ;;  %s1855_s2 = inlined_call_operand.vmem [shape: f32[1,128], index: 2, kind: input, shape index: {}]   ;;  %s1856_s3 = inlined_call_operand.vmem [shape: bf16[512,128], index: 3, kind: output, shape index: {}]  }
   0x1   :  { %s1683_s14 = smov 0  }
   0x2 LB: > { %s25_s15 = sadd.s32 1, %s1653_s13  ;;  %p1202_p0 = scmp.ge.s32.totalorder %s1657_s14, 1  ;;  %s1657_s14 = sphi %s1683_s14, %s13_s14   ;;  %s1653_s13 = sphi %s1681_s13, %s1858_s13   ;;  %s1649_s12 = sphi %s1679_s12, %s1857_s12  }
   0x3   : > { %p27_p1 = scmp.ge.s32.totalorder %s25_s15, 2  ;;  %p169_p2 = scmp.lt.s32.totalorder %s1657_s14, 3 }
   0x5   : > { %s1860_s15 = smov (%p27_p1, %s25_s15), 0  ;;  %p170_p3 = pnand %p1202_p0, %p169_p2 }
   0x6   : > { %v1571_v0 = vld [vmem:[%s1854_s1 + $0x40] sm:$0xff] (!%p170_p3)   ;;  %s1203_s18 = sshll.u32 (!%p170_p3), %s1649_s12, 5  ;;  %v1573_v2 = vld [vmem:[%s1854_s1 + $0x48] sm:$0xff] (!%p170_p3)   ;;  %v1575_v4 = vld [vmem:[%s1854_s1 + $0x50] sm:$0xff] (!%p170_p3)  }
   0x7   : > { %173 = sbr.rel (%p170_p3) target bundleno = 320 (0x140), region = 32  ;;  %v1572_v1 = vld [vmem:[%s1854_s1] sm:$0xff] (!%p170_p3)   ;;  %1419 = vmatprep.subr.bf16.mxu0 (!%p170_p3), %v1571_v0  ;;  %1531 = vmatprep.subr.bf16.mxu1 (!%p170_p3), %v1571_v0  ;;  %v1574_v3 = vld [vmem:[%s1854_s1 + $0x8] sm:$0xff] (!%p170_p3)   ;;  %p205_p4 = scmp.lt.s32.totalorder (!%p170_p3), %s1203_s18, 63  ;;  %v1576_v5 = vld [vmem:[%s1854_s1 + $0x10] sm:$0xff] (!%p170_p3)  }
   0x8   : > { %1420 = vmatpush3.bf16.msra.mxu0 (!%p170_p3), %v1572_v1  ;;  %1539 = vmatpush3.bf16.msra.mxu1 (!%p170_p3), %v1572_v1  ;;  %v1577_v6 = vld [vmem:[%s1854_s1 + $0x58] sm:$0xff] (!%p170_p3)   ;;  %v1579_v8 = vld [vmem:[%s1854_s1 + $0x60] sm:$0xff] (!%p170_p3)   ;;  %v1581_v10 = vld [vmem:[%s1854_s1 + $0x68] sm:$0xff] (!%p170_p3)  }
   0x9   : > { %1421 = vmatprep.subr.bf16.mxu0 (!%p170_p3), %v1573_v2  ;;  %1532 = vmatprep.subr.bf16.mxu1 (!%p170_p3), %v1573_v2  ;;  %v1578_v7 = vld [vmem:[%s1854_s1 + $0x18] sm:$0xff] (!%p170_p3)   ;;  %v1580_v9 = vld [vmem:[%s1854_s1 + $0x20] sm:$0xff] (!%p170_p3)   ;;  %v1582_v13 = vld [vmem:[%s1854_s1 + $0x28] sm:$0xff] (!%p170_p3)  }
   0xa   : > { %v1583_v14 = vld [vmem:[%s1854_s1 + $0x70] sm:$0xff] (!%p170_p3)   ;;  %v1585_v16 = vld [vmem:[%s1854_s1 + $0x78] sm:$0xff] (!%p170_p3)   ;;  %v1788_v51 = vld [vmem:[%s1855_s2] ss:$0 sm:$0xff] (!%p170_p3) }
   0xb   : > { %v1584_v15 = vld [vmem:[%s1854_s1 + $0x30] sm:$0xff] (!%p170_p3)   ;;  %v1586_v17 = vld [vmem:[%s1854_s1 + $0x38] sm:$0xff] (!%p170_p3)  }
   0xc   : > { %1422 = vmatpush3.bf16.msra.mxu0 (!%p170_p3), %v1574_v3  ;;  %1540 = vmatpush3.bf16.msra.mxu1 (!%p170_p3), %v1574_v3 }
   0xd   : > { %1423 = vmatprep.subr.bf16.mxu0 (!%p170_p3), %v1575_v4  ;;  %1533 = vmatprep.subr.bf16.mxu1 (!%p170_p3), %v1575_v4 }
   0xe   : > { %s1862_s18 = smov (!%p205_p4, %s1203_s18), 63 }
   0xf   : > { %s1291_s6 = sshll.u32 %s1862_s18, 3  ;;  %s1207_s5 = sshll.u32 %s1862_s18, 2 }
  0x10   : > { %1424 = vmatpush3.bf16.msra.mxu0 %v1576_v5  ;;  %1541 = vmatpush3.bf16.msra.mxu1 %v1576_v5  ;;  %s1730_s11 = scalar_lea.vmem %s1853_s0, %s1291_s6  ;;  %s1798_s8 = scalar_lea.vmem %s1856_s3, %s1207_s5 }
  0x11   : > { %1425 = vmatprep.subr.bf16.mxu0 %v1577_v6  ;;  %1534 = vmatprep.subr.bf16.mxu1 %v1577_v6  ;;  %v1589_v11 = vld [vmem:[%s1730_s11 + $0x4] ss:$8 sps:$4 sm:$0xff]   ;;  %v1587_v18 = vld [vmem:[%s1730_s11] ss:$8 sps:$4 sm:$0xff]   ;;  %v1593_v20 = vld [vmem:[%s1730_s11 + $0x14] ss:$8 sps:$4 sm:$0xff]  }
  0x12   : > { %v1592_v12 = vld [vmem:[%s1730_s11 + $0x84] ss:$8 sps:$4 sm:$0xff]   ;;  %580 = vmatprep.mubr.bf16.mxu0 %v1589_v11  ;;  %v1590_v19 = vld [vmem:[%s1730_s11 + $0x80] ss:$8 sps:$4 sm:$0xff]   ;;  %v1595_v21 = vld [vmem:[%s1730_s11 + $0x94] ss:$8 sps:$4 sm:$0xff]  }
  0x13   : > { %644 = vmatprep.mubr.bf16.mxu1 %v1592_v12  ;;  %v1597_v22 = vld [vmem:[%s1730_s11 + $0x10] ss:$8 sps:$4 sm:$0xff]   ;;  %v1599_v24 = vld [vmem:[%s1730_s11 + $0x24] ss:$8 sps:$4 sm:$0xff]   ;;  %v1603_v26 = vld [vmem:[%s1730_s11 + $0x20] ss:$8 sps:$4 sm:$0xff]  }
  0x14   : > { %1426 = vmatpush3.bf16.msra.mxu0 %v1578_v7  ;;  %1542 = vmatpush3.bf16.msra.mxu1 %v1578_v7  ;;  %v1598_v23 = vld [vmem:[%s1730_s11 + $0x90] ss:$8 sps:$4 sm:$0xff]   ;;  %v1601_v25 = vld [vmem:[%s1730_s11 + $0xa4] ss:$8 sps:$4 sm:$0xff]   ;;  %v1604_v27 = vld [vmem:[%s1730_s11 + $0xa0] ss:$8 sps:$4 sm:$0xff]  }
  0x15   : > { %1427 = vmatprep.subr.bf16.mxu0 %v1579_v8  ;;  %1535 = vmatprep.subr.bf16.mxu1 %v1579_v8  ;;  %v1605_v28 = vld [vmem:[%s1730_s11 + $0x34] ss:$8 sps:$4 sm:$0xff]   ;;  %v1609_v30 = vld [vmem:[%s1730_s11 + $0x30] ss:$8 sps:$4 sm:$0xff]   ;;  %v1611_v32 = vld [vmem:[%s1730_s11 + $0x44] ss:$8 sps:$4 sm:$0xff]  }
  0x16   : > { %v1607_v29 = vld [vmem:[%s1730_s11 + $0xb4] ss:$8 sps:$4 sm:$0xff]   ;;  %v1610_v31 = vld [vmem:[%s1730_s11 + $0xb0] ss:$8 sps:$4 sm:$0xff]   ;;  %v1613_v33 = vld [vmem:[%s1730_s11 + $0xc4] ss:$8 sps:$4 sm:$0xff]  }
  0x17   : > { %v1615_v34 = vld [vmem:[%s1730_s11 + $0x40] ss:$8 sps:$4 sm:$0xff]   ;;  %v1617_v36 = vld [vmem:[%s1730_s11 + $0x54] ss:$8 sps:$4 sm:$0xff]   ;;  %v1621_v38 = vld [vmem:[%s1730_s11 + $0x50] ss:$8 sps:$4 sm:$0xff]  }
  0x18   : > { %1428 = vmatpush3.bf16.msra.mxu0 %v1580_v9  ;;  %1543 = vmatpush3.bf16.msra.mxu1 %v1580_v9  ;;  %v1616_v35 = vld [vmem:[%s1730_s11 + $0xc0] ss:$8 sps:$4 sm:$0xff]   ;;  %v1619_v37 = vld [vmem:[%s1730_s11 + $0xd4] ss:$8 sps:$4 sm:$0xff]   ;;  %v1622_v39 = vld [vmem:[%s1730_s11 + $0xd0] ss:$8 sps:$4 sm:$0xff]  }
  0x19   : > { %1429 = vmatprep.subr.bf16.mxu0 %v1581_v10  ;;  %1536 = vmatprep.subr.bf16.mxu1 %v1581_v10  ;;  %v1623_v40 = vld [vmem:[%s1730_s11 + $0x64] ss:$8 sps:$4 sm:$0xff]   ;;  %v1627_v42 = vld [vmem:[%s1730_s11 + $0x60] ss:$8 sps:$4 sm:$0xff]   ;;  %v1629_v44 = vld [vmem:[%s1730_s11 + $0x74] ss:$8 sps:$4 sm:$0xff]  }
  0x1a   : > { %v1625_v41 = vld [vmem:[%s1730_s11 + $0xe4] ss:$8 sps:$4 sm:$0xff]   ;;  %v1628_v43 = vld [vmem:[%s1730_s11 + $0xe0] ss:$8 sps:$4 sm:$0xff]   ;;  %v1631_v45 = vld [vmem:[%s1730_s11 + $0xf4] ss:$8 sps:$4 sm:$0xff]  }
  0x1b   : > { %v1633_v46 = vld [vmem:[%s1730_s11 + $0x70] ss:$8 sps:$4 sm:$0xff]  }
  0x1c   : > { %1430 = vmatpush3.bf16.msra.mxu0 %v1582_v13  ;;  %1544 = vmatpush3.bf16.msra.mxu1 %v1582_v13  ;;  %v1634_v47 = vld [vmem:[%s1730_s11 + $0xf0] ss:$8 sps:$4 sm:$0xff]  }
  0x1d   : > { %1431 = vmatprep.subr.bf16.mxu0 %v1583_v14  ;;  %1537 = vmatprep.subr.bf16.mxu1 %v1583_v14 }
  0x20   : > { %1432 = vmatpush3.bf16.msra.mxu0 %v1584_v15  ;;  %1545 = vmatpush3.bf16.msra.mxu1 %v1584_v15 }
  0x21   : > { %1433 = vmatprep.subr.bf16.mxu0 %v1585_v16  ;;  %1538 = vmatprep.subr.bf16.mxu1 %v1585_v16 }
  0x24   : > { %1434 = vmatpush3.bf16.msra.mxu0 %v1586_v17  ;;  %1546 = vmatpush3.bf16.msra.mxu1 %v1586_v17 }
  0x27   : > { %581 = vmatmul.mubr.bf16.vlgmr.msra.gmra.mrb[0].mxu0 %v1587_v18  ;;  %645 = vmatmul.mubr.bf16.vlgmr.msra.gmra.mrb[0].mxu1 %v1590_v19 }
  0x28   : > { %588 = vmatprep.mubr.bf16.mxu0 %v1593_v20  ;;  %652 = vmatprep.mubr.bf16.mxu1 %v1595_v21 }
  0x2f   : > { %589 = vmatmul.mubr.bf16.gmra.mrb[4].mxu0 %v1597_v22  ;;  %653 = vmatmul.mubr.bf16.gmra.mrb[4].mxu1 %v1598_v23 }
  0x30   : > { %596 = vmatprep.mubr.bf16.mxu0 %v1599_v24  ;;  %660 = vmatprep.mubr.bf16.mxu1 %v1601_v25 }
  0x37   : > { %597 = vmatmul.mubr.bf16.gmra.mrb[8].mxu0 %v1603_v26  ;;  %661 = vmatmul.mubr.bf16.gmra.mrb[8].mxu1 %v1604_v27 }
  0x38   : > { %604 = vmatprep.mubr.bf16.mxu0 %v1605_v28  ;;  %668 = vmatprep.mubr.bf16.mxu1 %v1607_v29 }
  0x3f   : > { %605 = vmatmul.mubr.bf16.gmra.mrb[12].mxu0 %v1609_v30  ;;  %669 = vmatmul.mubr.bf16.gmra.mrb[12].mxu1 %v1610_v31 }
  0x40   : > { %612 = vmatprep.mubr.bf16.mxu0 %v1611_v32  ;;  %676 = vmatprep.mubr.bf16.mxu1 %v1613_v33 }
  0x47   : > { %613 = vmatmul.mubr.bf16.gmra.mrb[16].mxu0 %v1615_v34  ;;  %677 = vmatmul.mubr.bf16.gmra.mrb[16].mxu1 %v1616_v35 }
  0x48   : > { %620 = vmatprep.mubr.bf16.mxu0 %v1617_v36  ;;  %684 = vmatprep.mubr.bf16.mxu1 %v1619_v37 }
  0x4f   : > { %621 = vmatmul.mubr.bf16.gmra.mrb[20].mxu0 %v1621_v38  ;;  %685 = vmatmul.mubr.bf16.gmra.mrb[20].mxu1 %v1622_v39 }
  0x50   : > { %628 = vmatprep.mubr.bf16.mxu0 %v1623_v40  ;;  %692 = vmatprep.mubr.bf16.mxu1 %v1625_v41 }
  0x57   : > { %629 = vmatmul.mubr.bf16.gmra.mrb[24].mxu0 %v1627_v42  ;;  %693 = vmatmul.mubr.bf16.gmra.mrb[24].mxu1 %v1628_v43 }
  0x58   : > { %636 = vmatprep.mubr.bf16.mxu0 %v1629_v44  ;;  %700 = vmatprep.mubr.bf16.mxu1 %v1631_v45 }
  0x5f   : > { %637 = vmatmul.mubr.bf16.gmra.mrb[28].mxu0 %v1633_v46  ;;  %701 = vmatmul.mubr.bf16.gmra.mrb[28].mxu1 %v1634_v47 }
  0xfa   : > { %v1435_v48 = vpop.f32.mrb[0].mxu0  ;;  %v1483_v49 = vpop.f32.mrb[0].mxu1 }
  0xfb   : > { %v1436_v50 = vpop.f32.mrb[1].mxu0  ;;  %v1484_v52 = vpop.f32.mrb[1].mxu1 }
  0xfc   : > { %v1437_v53 = vadd.f32 %v1436_v50, %v1435_v48  ;;  %v1485_v54 = vadd.f32 %v1484_v52, %v1483_v49  ;;  %v1438_v55 = vpop.f32.mrb[2].mxu0  ;;  %v1486_v56 = vpop.f32.mrb[2].mxu1 }
  0xfd   : > { %v1439_v57 = vpop.f32.mrb[3].mxu0  ;;  %v1487_v58 = vpop.f32.mrb[3].mxu1 }
  0xfe   : > { %v887_v59 = vadd.f32 %v1437_v53, %v1788_v51  ;;  %v903_v60 = vadd.f32 %v1485_v54, %v1788_v51  ;;  %v1440_v61 = vadd.f32 %v1439_v57, %v1438_v55  ;;  %v1488_v62 = vadd.f32 %v1487_v58, %v1486_v56 }
 0x100   : > { %v888_v63 = vadd.f32 %v1440_v61, %v1788_v51  ;;  %v904_v0 = vadd.f32 %v1488_v62, %v1788_v51  ;;  %v919_v1 = vmax.f32 %v887_v59, 0.0  ;;  %v935_v2 = vmax.f32 %v903_v60, 0.0 }
 0x102   : > { %v920_v3 = vmax.f32 %v888_v63, 0.0  ;;  %v936_v4 = vmax.f32 %v904_v0, 0.0  ;;  %v1441_v5 = vpop.f32.mrb[4].mxu0  ;;  %v1489_v6 = vpop.f32.mrb[4].mxu1 }
 0x103   : > { %v1442_v7 = vpop.f32.mrb[5].mxu0  ;;  %v1490_v8 = vpop.f32.mrb[5].mxu1 }
 0x104   : > { %v1327_v9 = vpack.c.bf16 %v920_v3, %v919_v1  ;;  %v1367_v10 = vpack.c.bf16 %v936_v4, %v935_v2  ;;  %v1443_v11 = vadd.f32 %v1442_v7, %v1441_v5  ;;  %v1491_v12 = vadd.f32 %v1490_v8, %v1489_v6  ;;  %v1444_v13 = vpop.f32.mrb[6].mxu0  ;;  %v1492_v14 = vpop.f32.mrb[6].mxu1 }
 0x105   : > { %v1445_v15 = vpop.f32.mrb[7].mxu0  ;;  %v1493_v16 = vpop.f32.mrb[7].mxu1 }
 0x106   : > { %1328 = vst [vmem:[%s1798_s8] sm:$0xff] %v1327_v9   ;;  %1411 = vst [vmem:[%s1798_s8 + $0x40] sm:$0xff] %v1367_v10   ;;  %v889_v17 = vadd.f32 %v1443_v11, %v1788_v51  ;;  %v905_v18 = vadd.f32 %v1491_v12, %v1788_v51  ;;  %v1446_v19 = vadd.f32 %v1445_v15, %v1444_v13 }
 0x107   : > { %v1494_v20 = vadd.f32 %v1493_v16, %v1492_v14 }
 0x108   : > { %v890_v21 = vadd.f32 %v1446_v19, %v1788_v51  ;;  %v921_v23 = vmax.f32 %v889_v17, 0.0  ;;  %v937_v24 = vmax.f32 %v905_v18, 0.0 }
 0x109   : > { %v906_v22 = vadd.f32 %v1494_v20, %v1788_v51 }
 0x10a   : > { %v922_v25 = vmax.f32 %v890_v21, 0.0  ;;  %v1447_v27 = vpop.f32.mrb[8].mxu0  ;;  %v1495_v28 = vpop.f32.mrb[8].mxu1 }
 0x10b   : > { %v938_v26 = vmax.f32 %v906_v22, 0.0  ;;  %v1448_v29 = vpop.f32.mrb[9].mxu0  ;;  %v1496_v30 = vpop.f32.mrb[9].mxu1 }
 0x10c   : > { %v1332_v31 = vpack.c.bf16 %v922_v25, %v921_v23  ;;  %v1449_v33 = vadd.f32 %v1448_v29, %v1447_v27  ;;  %v1497_v34 = vadd.f32 %v1496_v30, %v1495_v28  ;;  %v1450_v35 = vpop.f32.mrb[10].mxu0  ;;  %v1498_v36 = vpop.f32.mrb[10].mxu1 }
 0x10d   : > { %v1372_v32 = vpack.c.bf16 %v938_v26, %v937_v24  ;;  %v1451_v37 = vpop.f32.mrb[11].mxu0  ;;  %v1499_v38 = vpop.f32.mrb[11].mxu1 }
 0x10e   : > { %1404 = vst [vmem:[%s1798_s8 + $0x8] sm:$0xff] %v1332_v31   ;;  %v891_v39 = vadd.f32 %v1449_v33, %v1788_v51  ;;  %v907_v40 = vadd.f32 %v1497_v34, %v1788_v51  ;;  %v1452_v41 = vadd.f32 %v1451_v37, %v1450_v35  ;;  %v1500_v42 = vadd.f32 %v1499_v38, %v1498_v36 }
 0x10f   : > { %1412 = vst [vmem:[%s1798_s8 + $0x48] sm:$0xff] %v1372_v32  }
 0x110   : > { %v892_v43 = vadd.f32 %v1452_v41, %v1788_v51  ;;  %v908_v44 = vadd.f32 %v1500_v42, %v1788_v51  ;;  %v923_v45 = vmax.f32 %v891_v39, 0.0  ;;  %v939_v46 = vmax.f32 %v907_v40, 0.0 }
 0x112   : > { %v924_v47 = vmax.f32 %v892_v43, 0.0  ;;  %v940_v48 = vmax.f32 %v908_v44, 0.0  ;;  %v1453_v49 = vpop.f32.mrb[12].mxu0  ;;  %v1501_v50 = vpop.f32.mrb[12].mxu1 }
 0x113   : > { %v1454_v52 = vpop.f32.mrb[13].mxu0  ;;  %v1502_v53 = vpop.f32.mrb[13].mxu1 }
 0x114   : > { %v1337_v54 = vpack.c.bf16 %v924_v47, %v923_v45  ;;  %v1377_v55 = vpack.c.bf16 %v940_v48, %v939_v46  ;;  %v1455_v56 = vadd.f32 %v1454_v52, %v1453_v49  ;;  %v1503_v57 = vadd.f32 %v1502_v53, %v1501_v50  ;;  %v1456_v58 = vpop.f32.mrb[14].mxu0  ;;  %v1504_v59 = vpop.f32.mrb[14].mxu1 }
 0x115   : > { %v1457_v60 = vpop.f32.mrb[15].mxu0  ;;  %v1505_v61 = vpop.f32.mrb[15].mxu1 }
 0x116   : > { %1405 = vst [vmem:[%s1798_s8 + $0x10] sm:$0xff] %v1337_v54   ;;  %1413 = vst [vmem:[%s1798_s8 + $0x50] sm:$0xff] %v1377_v55   ;;  %v893_v62 = vadd.f32 %v1455_v56, %v1788_v51  ;;  %v909_v63 = vadd.f32 %v1503_v57, %v1788_v51  ;;  %v1458_v0 = vadd.f32 %v1457_v60, %v1456_v58 }
 0x117   : > { %v1506_v1 = vadd.f32 %v1505_v61, %v1504_v59 }
 0x118   : > { %v894_v2 = vadd.f32 %v1458_v0, %v1788_v51  ;;  %v925_v4 = vmax.f32 %v893_v62, 0.0  ;;  %v941_v5 = vmax.f32 %v909_v63, 0.0 }
 0x119   : > { %v910_v3 = vadd.f32 %v1506_v1, %v1788_v51 }
 0x11a   : > { %v926_v6 = vmax.f32 %v894_v2, 0.0  ;;  %v1459_v8 = vpop.f32.mrb[16].mxu0  ;;  %v1507_v9 = vpop.f32.mrb[16].mxu1 }
 0x11b   : > { %v942_v7 = vmax.f32 %v910_v3, 0.0  ;;  %v1460_v10 = vpop.f32.mrb[17].mxu0  ;;  %v1508_v11 = vpop.f32.mrb[17].mxu1 }
 0x11c   : > { %v1342_v12 = vpack.c.bf16 %v926_v6, %v925_v4  ;;  %v1461_v14 = vadd.f32 %v1460_v10, %v1459_v8  ;;  %v1509_v15 = vadd.f32 %v1508_v11, %v1507_v9  ;;  %v1462_v16 = vpop.f32.mrb[18].mxu0  ;;  %v1510_v17 = vpop.f32.mrb[18].mxu1 }
 0x11d   : > { %v1382_v13 = vpack.c.bf16 %v942_v7, %v941_v5  ;;  %v1463_v18 = vpop.f32.mrb[19].mxu0  ;;  %v1511_v19 = vpop.f32.mrb[19].mxu1 }
 0x11e   : > { %1406 = vst [vmem:[%s1798_s8 + $0x18] sm:$0xff] %v1342_v12   ;;  %v895_v20 = vadd.f32 %v1461_v14, %v1788_v51  ;;  %v911_v21 = vadd.f32 %v1509_v15, %v1788_v51  ;;  %v1464_v22 = vadd.f32 %v1463_v18, %v1462_v16  ;;  %v1512_v23 = vadd.f32 %v1511_v19, %v1510_v17 }
 0x11f   : > { %1414 = vst [vmem:[%s1798_s8 + $0x58] sm:$0xff] %v1382_v13  }
 0x120   : > { %v896_v24 = vadd.f32 %v1464_v22, %v1788_v51  ;;  %v912_v25 = vadd.f32 %v1512_v23, %v1788_v51  ;;  %v927_v26 = vmax.f32 %v895_v20, 0.0  ;;  %v943_v27 = vmax.f32 %v911_v21, 0.0 }
 0x122   : > { %v928_v28 = vmax.f32 %v896_v24, 0.0  ;;  %v944_v29 = vmax.f32 %v912_v25, 0.0  ;;  %v1465_v30 = vpop.f32.mrb[20].mxu0  ;;  %v1513_v31 = vpop.f32.mrb[20].mxu1 }
 0x123   : > { %v1466_v32 = vpop.f32.mrb[21].mxu0  ;;  %v1514_v33 = vpop.f32.mrb[21].mxu1 }
 0x124   : > { %v1347_v34 = vpack.c.bf16 %v928_v28, %v927_v26  ;;  %v1387_v35 = vpack.c.bf16 %v944_v29, %v943_v27  ;;  %v1467_v36 = vadd.f32 %v1466_v32, %v1465_v30  ;;  %v1515_v37 = vadd.f32 %v1514_v33, %v1513_v31  ;;  %v1468_v38 = vpop.f32.mrb[22].mxu0  ;;  %v1516_v39 = vpop.f32.mrb[22].mxu1 }
 0x125   : > { %v1469_v40 = vpop.f32.mrb[23].mxu0  ;;  %v1517_v41 = vpop.f32.mrb[23].mxu1 }
 0x126   : > { %1407 = vst [vmem:[%s1798_s8 + $0x20] sm:$0xff] %v1347_v34   ;;  %1415 = vst [vmem:[%s1798_s8 + $0x60] sm:$0xff] %v1387_v35   ;;  %v897_v42 = vadd.f32 %v1467_v36, %v1788_v51  ;;  %v913_v43 = vadd.f32 %v1515_v37, %v1788_v51  ;;  %v1470_v44 = vadd.f32 %v1469_v40, %v1468_v38 }
 0x127   : > { %v1518_v45 = vadd.f32 %v1517_v41, %v1516_v39 }
 0x128   : > { %v898_v46 = vadd.f32 %v1470_v44, %v1788_v51  ;;  %v929_v48 = vmax.f32 %v897_v42, 0.0  ;;  %v945_v49 = vmax.f32 %v913_v43, 0.0 }
 0x129   : > { %v914_v47 = vadd.f32 %v1518_v45, %v1788_v51 }
 0x12a   : > { %v930_v50 = vmax.f32 %v898_v46, 0.0  ;;  %v1471_v53 = vpop.f32.mrb[24].mxu0  ;;  %v1519_v54 = vpop.f32.mrb[24].mxu1 }
 0x12b   : > { %v946_v52 = vmax.f32 %v914_v47, 0.0  ;;  %v1472_v55 = vpop.f32.mrb[25].mxu0  ;;  %v1520_v56 = vpop.f32.mrb[25].mxu1 }
 0x12c   : > { %v1352_v57 = vpack.c.bf16 %v930_v50, %v929_v48  ;;  %v1473_v59 = vadd.f32 %v1472_v55, %v1471_v53  ;;  %v1521_v60 = vadd.f32 %v1520_v56, %v1519_v54  ;;  %v1474_v61 = vpop.f32.mrb[26].mxu0  ;;  %v1522_v62 = vpop.f32.mrb[26].mxu1 }
 0x12d   : > { %v1392_v58 = vpack.c.bf16 %v946_v52, %v945_v49  ;;  %v1475_v63 = vpop.f32.mrb[27].mxu0  ;;  %v1523_v0 = vpop.f32.mrb[27].mxu1 }
 0x12e   : > { %1408 = vst [vmem:[%s1798_s8 + $0x28] sm:$0xff] %v1352_v57   ;;  %v899_v1 = vadd.f32 %v1473_v59, %v1788_v51  ;;  %v915_v2 = vadd.f32 %v1521_v60, %v1788_v51  ;;  %v1476_v3 = vadd.f32 %v1475_v63, %v1474_v61  ;;  %v1524_v4 = vadd.f32 %v1523_v0, %v1522_v62 }
 0x12f   : > { %1416 = vst [vmem:[%s1798_s8 + $0x68] sm:$0xff] %v1392_v58  }
 0x130   : > { %v900_v5 = vadd.f32 %v1476_v3, %v1788_v51  ;;  %v916_v6 = vadd.f32 %v1524_v4, %v1788_v51  ;;  %v931_v7 = vmax.f32 %v899_v1, 0.0  ;;  %v947_v8 = vmax.f32 %v915_v2, 0.0 }
 0x132   : > { %v932_v9 = vmax.f32 %v900_v5, 0.0  ;;  %v948_v10 = vmax.f32 %v916_v6, 0.0  ;;  %v1477_v11 = vpop.f32.mrb[28].mxu0  ;;  %v1525_v12 = vpop.f32.mrb[28].mxu1 }
 0x133   : > { %v1478_v13 = vpop.f32.mrb[29].mxu0  ;;  %v1526_v14 = vpop.f32.mrb[29].mxu1 }
 0x134   : > { %v1357_v15 = vpack.c.bf16 %v932_v9, %v931_v7  ;;  %v1397_v16 = vpack.c.bf16 %v948_v10, %v947_v8  ;;  %v1479_v17 = vadd.f32 %v1478_v13, %v1477_v11  ;;  %v1527_v18 = vadd.f32 %v1526_v14, %v1525_v12  ;;  %v1480_v19 = vpop.f32.mrb[30].mxu0  ;;  %v1528_v20 = vpop.f32.mrb[30].mxu1 }
 0x135   : > { %v1481_v21 = vpop.f32.mrb[31].mxu0  ;;  %v1529_v22 = vpop.f32.mrb[31].mxu1 }
 0x136   : > { %1409 = vst [vmem:[%s1798_s8 + $0x30] sm:$0xff] %v1357_v15   ;;  %1417 = vst [vmem:[%s1798_s8 + $0x70] sm:$0xff] %v1397_v16   ;;  %v901_v23 = vadd.f32 %v1479_v17, %v1788_v51  ;;  %v917_v24 = vadd.f32 %v1527_v18, %v1788_v51  ;;  %v1482_v25 = vadd.f32 %v1481_v21, %v1480_v19 }
 0x137   : > { %v1530_v26 = vadd.f32 %v1529_v22, %v1528_v20 }
 0x138   : > { %v902_v27 = vadd.f32 %v1482_v25, %v1788_v51  ;;  %v933_v29 = vmax.f32 %v901_v23, 0.0  ;;  %v949_v30 = vmax.f32 %v917_v24, 0.0 }
 0x139   : > { %v918_v28 = vadd.f32 %v1530_v26, %v1788_v51 }
 0x13a   : > { %v934_v31 = vmax.f32 %v902_v27, 0.0 }
 0x13b   : > { %v950_v32 = vmax.f32 %v918_v28, 0.0 }
 0x13c   : > { %v1362_v33 = vpack.c.bf16 %v934_v31, %v933_v29 }
 0x13d   : > { %v1402_v34 = vpack.c.bf16 %v950_v32, %v949_v30 }
 0x13e   : > { %1410 = vst [vmem:[%s1798_s8 + $0x38] sm:$0xff] %v1362_v33  }
 0x13f   : > { %1418 = vst [vmem:[%s1798_s8 + $0x78] sm:$0xff] %v1402_v34  }
 0x140 PF: > { %s13_s14 = sadd.s32 1, %s1657_s14   ;;  %s1857_s12 = smov %s1653_s13 }
 0x141   : > { %p10_p5 = scmp.ge.s32.totalorder %s13_s14, 4   ;;  %s1858_s13 = smov %s1860_s15 }
 0x143   :  { %12 = sbr.rel (!%p10_p5) target bundleno = 2 (0x2), region = 77 }

// kernel: _lambda_.15
= control target key start
LH: loop header
LB: loop body
LE: loop exit
PB: predicated region body
PF: predicated region fallthrough
CT: control target
= control target key end

     0   :  { %vm105_vm0 = vcmask 1043456   ;;  %s1048_s0 = inlined_call_operand.vmem [shape: bf16[3,256,128], index: 0, kind: input, shape index: {}]   ;;  %s1049_s1 = inlined_call_operand.vmem [shape: bf16[256,128], index: 1, kind: output, shape index: {}]  }
   0x1   :  { %v9_v0 = vld [vmem:[%s1048_s0] sm:$0xf]  ;;  %v10_v1 = vld [vmem:[%s1048_s0 + $0x4] sm:$0xf]  ;;  %v11_v14 = vld [vmem:[%s1048_s0 + $0x8] sm:$0xf] }
   0x2   :  { %v41_v2 = vld [vmem:[%s1048_s0 + $0x80] sm:$0xf]  ;;  %v42_v3 = vld [vmem:[%s1048_s0 + $0x84] sm:$0xf]  ;;  %v108_v6 = vsel %vm105_vm0, %v9_v0, 4286644096 }
   0x3   :  { %v73_v4 = vld [vmem:[%s1048_s0 + $0x100] sm:$0xf]  ;;  %v74_v5 = vld [vmem:[%s1048_s0 + $0x104] sm:$0xf]  ;;  %v111_v7 = vsel %vm105_vm0, %v41_v2, 4286644096 }
   0x4   :  { %v115_v8 = vsel %vm105_vm0, %v73_v4, 4286644096  ;;  %v113_v9 = vmax.bf16 %v111_v7, %v108_v6  ;;  %v119_v10 = vsel %vm105_vm0, %v10_v1, 4286644096  ;;  %v122_v11 = vsel %vm105_vm0, %v42_v3, 4286644096 }
   0x5   :  { %v126_v12 = vsel %vm105_vm0, %v74_v5, 4286644096  ;;  %v124_v13 = vmax.bf16 %v122_v11, %v119_v10  ;;  %v12_v15 = vld [vmem:[%s1048_s0 + $0xc] sm:$0xf]  ;;  %v43_v16 = vld [vmem:[%s1048_s0 + $0x88] sm:$0xf] }
   0x6   :  { %v117_v17 = vmax.bf16 %v115_v8, %v113_v9  ;;  %v44_v18 = vld [vmem:[%s1048_s0 + $0x8c] sm:$0xf]  ;;  %v75_v19 = vld [vmem:[%s1048_s0 + $0x108] sm:$0xf]  ;;  %v130_v22 = vsel %vm105_vm0, %v11_v14, 4286644096 }
   0x7   :  { %v76_v20 = vld [vmem:[%s1048_s0 + $0x10c] sm:$0xf]  ;;  %v128_v21 = vmax.bf16 %v126_v12, %v124_v13  ;;  %v133_v23 = vsel %vm105_vm0, %v43_v16, 4286644096  ;;  %v137_v24 = vsel %vm105_vm0, %v75_v19, 4286644096 }
   0x8   :  { %v135_v25 = vmax.bf16 %v133_v23, %v130_v22  ;;  %v141_v26 = vsel %vm105_vm0, %v12_v15, 4286644096  ;;  %v144_v27 = vsel %vm105_vm0, %v44_v18, 4286644096  ;;  %v148_v28 = vsel %vm105_vm0, %v76_v20, 4286644096 }
   0x9   :  { %v575_v29 = vcombine.low %v117_v17, %v128_v21  ;;  %v146_v30 = vmax.bf16 %v144_v27, %v141_v26  ;;  %v13_v31 = vld [vmem:[%s1048_s0 + $0x10] sm:$0xf]  ;;  %v14_v32 = vld [vmem:[%s1048_s0 + $0x14] sm:$0xf]  ;;  %v15_v48 = vld [vmem:[%s1048_s0 + $0x18] sm:$0xf] }
   0xa   :  { %v45_v33 = vld [vmem:[%s1048_s0 + $0x90] sm:$0xf]  ;;  %v139_v34 = vmax.bf16 %v137_v24, %v135_v25  ;;  %v46_v35 = vld [vmem:[%s1048_s0 + $0x94] sm:$0xf]  ;;  %v152_v39 = vsel %vm105_vm0, %v13_v31, 4286644096 }
   0xb   :  { %v77_v36 = vld [vmem:[%s1048_s0 + $0x110] sm:$0xf]  ;;  %v78_v37 = vld [vmem:[%s1048_s0 + $0x114] sm:$0xf]  ;;  %499 = vst [vmem:[%s1049_s1] sm:$0xff] %v575_v29   ;;  %v150_v38 = vmax.bf16 %v148_v28, %v146_v30  ;;  %v155_v40 = vsel %vm105_vm0, %v45_v33, 4286644096 }
   0xc   :  { %v159_v41 = vsel %vm105_vm0, %v77_v36, 4286644096  ;;  %v157_v42 = vmax.bf16 %v155_v40, %v152_v39  ;;  %v163_v43 = vsel %vm105_vm0, %v14_v32, 4286644096  ;;  %v166_v44 = vsel %vm105_vm0, %v46_v35, 4286644096 }
   0xd   :  { %v170_v45 = vsel %vm105_vm0, %v78_v37, 4286644096  ;;  %v576_v46 = vcombine.low %v139_v34, %v150_v38  ;;  %v168_v47 = vmax.bf16 %v166_v44, %v163_v43  ;;  %v16_v49 = vld [vmem:[%s1048_s0 + $0x1c] sm:$0xf]  ;;  %v47_v50 = vld [vmem:[%s1048_s0 + $0x98] sm:$0xf] }
   0xe   :  { %v161_v51 = vmax.bf16 %v159_v41, %v157_v42  ;;  %v48_v52 = vld [vmem:[%s1048_s0 + $0x9c] sm:$0xf]  ;;  %v79_v53 = vld [vmem:[%s1048_s0 + $0x118] sm:$0xf]  ;;  %v174_v56 = vsel %vm105_vm0, %v15_v48, 4286644096 }
   0xf   :  { %v80_v54 = vld [vmem:[%s1048_s0 + $0x11c] sm:$0xf]  ;;  %577 = vst [vmem:[%s1049_s1 + $0x8] sm:$0xff] %v576_v46   ;;  %v172_v55 = vmax.bf16 %v170_v45, %v168_v47  ;;  %v177_v57 = vsel %vm105_vm0, %v47_v50, 4286644096 }
  0x10   :  { %v181_v58 = vsel %vm105_vm0, %v79_v53, 4286644096  ;;  %v179_v59 = vmax.bf16 %v177_v57, %v174_v56  ;;  %v185_v60 = vsel %vm105_vm0, %v16_v49, 4286644096  ;;  %v188_v61 = vsel %vm105_vm0, %v48_v52, 4286644096 }
  0x11   :  { %v192_v62 = vsel %vm105_vm0, %v80_v54, 4286644096  ;;  %v578_v63 = vcombine.low %v161_v51, %v172_v55  ;;  %v190_v0 = vmax.bf16 %v188_v61, %v185_v60  ;;  %v17_v1 = vld [vmem:[%s1048_s0 + $0x20] sm:$0xf]  ;;  %v18_v2 = vld [vmem:[%s1048_s0 + $0x24] sm:$0xf] }
  0x12   :  { %v49_v3 = vld [vmem:[%s1048_s0 + $0xa0] sm:$0xf]  ;;  %v183_v4 = vmax.bf16 %v181_v58, %v179_v59  ;;  %v50_v5 = vld [vmem:[%s1048_s0 + $0xa4] sm:$0xf]  ;;  %v196_v9 = vsel %vm105_vm0, %v17_v1, 4286644096 }
  0x13   :  { %v81_v6 = vld [vmem:[%s1048_s0 + $0x120] sm:$0xf]  ;;  %v82_v7 = vld [vmem:[%s1048_s0 + $0x124] sm:$0xf]  ;;  %579 = vst [vmem:[%s1049_s1 + $0x10] sm:$0xff] %v578_v63   ;;  %v194_v8 = vmax.bf16 %v192_v62, %v190_v0 }
  0x14   :  { %v199_v10 = vsel %vm105_vm0, %v49_v3, 4286644096  ;;  %v203_v11 = vsel %vm105_vm0, %v81_v6, 4286644096  ;;  %v207_v13 = vsel %vm105_vm0, %v18_v2, 4286644096 }
  0x15   :  { %v201_v12 = vmax.bf16 %v199_v10, %v196_v9  ;;  %v210_v14 = vsel %vm105_vm0, %v50_v5, 4286644096  ;;  %v214_v15 = vsel %vm105_vm0, %v82_v7, 4286644096  ;;  %v580_v16 = vcombine.low %v183_v4, %v194_v8  ;;  %v19_v18 = vld [vmem:[%s1048_s0 + $0x28] sm:$0xf] }
  0x16   :  { %v212_v17 = vmax.bf16 %v210_v14, %v207_v13  ;;  %v20_v19 = vld [vmem:[%s1048_s0 + $0x2c] sm:$0xf]  ;;  %v51_v20 = vld [vmem:[%s1048_s0 + $0xa8] sm:$0xf]  ;;  %v218_v26 = vsel %vm105_vm0, %v19_v18, 4286644096 }
  0x17   :  { %v205_v21 = vmax.bf16 %v203_v11, %v201_v12  ;;  %v52_v22 = vld [vmem:[%s1048_s0 + $0xac] sm:$0xf]  ;;  %v83_v23 = vld [vmem:[%s1048_s0 + $0x128] sm:$0xf]  ;;  %581 = vst [vmem:[%s1049_s1 + $0x18] sm:$0xff] %v580_v16  }
  0x18   :  { %v84_v24 = vld [vmem:[%s1048_s0 + $0x12c] sm:$0xf]  ;;  %v216_v25 = vmax.bf16 %v214_v15, %v212_v17  ;;  %v221_v27 = vsel %vm105_vm0, %v51_v20, 4286644096  ;;  %v225_v28 = vsel %vm105_vm0, %v83_v23, 4286644096 }
  0x19   :  { %v223_v29 = vmax.bf16 %v221_v27, %v218_v26  ;;  %v229_v30 = vsel %vm105_vm0, %v20_v19, 4286644096  ;;  %v232_v31 = vsel %vm105_vm0, %v52_v22, 4286644096  ;;  %v236_v32 = vsel %vm105_vm0, %v84_v24, 4286644096 }
  0x1a   :  { %v582_v33 = vcombine.low %v205_v21, %v216_v25  ;;  %v234_v34 = vmax.bf16 %v232_v31, %v229_v30  ;;  %v21_v35 = vld [vmem:[%s1048_s0 + $0x30] sm:$0xf]  ;;  %v22_v36 = vld [vmem:[%s1048_s0 + $0x34] sm:$0xf]  ;;  %v23_v52 = vld [vmem:[%s1048_s0 + $0x38] sm:$0xf] }
  0x1b   :  { %v53_v37 = vld [vmem:[%s1048_s0 + $0xb0] sm:$0xf]  ;;  %v227_v38 = vmax.bf16 %v225_v28, %v223_v29  ;;  %v54_v39 = vld [vmem:[%s1048_s0 + $0xb4] sm:$0xf]  ;;  %v240_v43 = vsel %vm105_vm0, %v21_v35, 4286644096 }
  0x1c   :  { %v85_v40 = vld [vmem:[%s1048_s0 + $0x130] sm:$0xf]  ;;  %v86_v41 = vld [vmem:[%s1048_s0 + $0x134] sm:$0xf]  ;;  %583 = vst [vmem:[%s1049_s1 + $0x20] sm:$0xff] %v582_v33   ;;  %v238_v42 = vmax.bf16 %v236_v32, %v234_v34 }
  0x1d   :  { %v243_v44 = vsel %vm105_vm0, %v53_v37, 4286644096  ;;  %v247_v45 = vsel %vm105_vm0, %v85_v40, 4286644096  ;;  %v251_v47 = vsel %vm105_vm0, %v22_v36, 4286644096 }
  0x1e   :  { %v245_v46 = vmax.bf16 %v243_v44, %v240_v43  ;;  %v254_v48 = vsel %vm105_vm0, %v54_v39, 4286644096  ;;  %v258_v49 = vsel %vm105_vm0, %v86_v41, 4286644096  ;;  %v584_v50 = vcombine.low %v227_v38, %v238_v42  ;;  %v24_v53 = vld [vmem:[%s1048_s0 + $0x3c] sm:$0xf] }
  0x1f   :  { %v256_v51 = vmax.bf16 %v254_v48, %v251_v47  ;;  %v55_v54 = vld [vmem:[%s1048_s0 + $0xb8] sm:$0xf]  ;;  %v56_v56 = vld [vmem:[%s1048_s0 + $0xbc] sm:$0xf]  ;;  %v262_v60 = vsel %vm105_vm0, %v23_v52, 4286644096 }
  0x20   :  { %v249_v55 = vmax.bf16 %v247_v45, %v245_v46  ;;  %v87_v57 = vld [vmem:[%s1048_s0 + $0x138] sm:$0xf]  ;;  %v88_v58 = vld [vmem:[%s1048_s0 + $0x13c] sm:$0xf]  ;;  %585 = vst [vmem:[%s1049_s1 + $0x28] sm:$0xff] %v584_v50  }
  0x21   :  { %v260_v59 = vmax.bf16 %v258_v49, %v256_v51  ;;  %v265_v61 = vsel %vm105_vm0, %v55_v54, 4286644096  ;;  %v269_v62 = vsel %vm105_vm0, %v87_v57, 4286644096  ;;  %v273_v0 = vsel %vm105_vm0, %v24_v53, 4286644096 }
  0x22   :  { %v267_v63 = vmax.bf16 %v265_v61, %v262_v60  ;;  %v276_v1 = vsel %vm105_vm0, %v56_v56, 4286644096  ;;  %v280_v2 = vsel %vm105_vm0, %v88_v58, 4286644096  ;;  %v25_v5 = vld [vmem:[%s1048_s0 + $0x40] sm:$0xf] }
  0x23   :  { %v586_v3 = vcombine.low %v249_v55, %v260_v59  ;;  %v278_v4 = vmax.bf16 %v276_v1, %v273_v0  ;;  %v26_v6 = vld [vmem:[%s1048_s0 + $0x44] sm:$0xf]  ;;  %v57_v7 = vld [vmem:[%s1048_s0 + $0xc0] sm:$0xf]  ;;  %v284_v13 = vsel %vm105_vm0, %v25_v5, 4286644096 }
  0x24   :  { %v271_v8 = vmax.bf16 %v269_v62, %v267_v63  ;;  %v58_v9 = vld [vmem:[%s1048_s0 + $0xc4] sm:$0xf]  ;;  %v89_v10 = vld [vmem:[%s1048_s0 + $0x140] sm:$0xf]  ;;  %v287_v14 = vsel %vm105_vm0, %v57_v7, 4286644096 }
  0x25   :  { %v90_v11 = vld [vmem:[%s1048_s0 + $0x144] sm:$0xf]  ;;  %587 = vst [vmem:[%s1049_s1 + $0x30] sm:$0xff] %v586_v3   ;;  %v282_v12 = vmax.bf16 %v280_v2, %v278_v4  ;;  %v291_v15 = vsel %vm105_vm0, %v89_v10, 4286644096  ;;  %v289_v16 = vmax.bf16 %v287_v14, %v284_v13 }
  0x26   :  { %v295_v17 = vsel %vm105_vm0, %v26_v6, 4286644096  ;;  %v298_v18 = vsel %vm105_vm0, %v58_v9, 4286644096  ;;  %v302_v19 = vsel %vm105_vm0, %v90_v11, 4286644096 }
  0x27   :  { %v588_v20 = vcombine.low %v271_v8, %v282_v12  ;;  %v300_v21 = vmax.bf16 %v298_v18, %v295_v17  ;;  %v27_v22 = vld [vmem:[%s1048_s0 + $0x48] sm:$0xf]  ;;  %v28_v23 = vld [vmem:[%s1048_s0 + $0x4c] sm:$0xf]  ;;  %v293_v25 = vmax.bf16 %v291_v15, %v289_v16  ;;  %v29_v39 = vld [vmem:[%s1048_s0 + $0x50] sm:$0xf] }
  0x28   :  { %v59_v24 = vld [vmem:[%s1048_s0 + $0xc8] sm:$0xf]  ;;  %v60_v26 = vld [vmem:[%s1048_s0 + $0xcc] sm:$0xf]  ;;  %v306_v30 = vsel %vm105_vm0, %v27_v22, 4286644096 }
  0x29   :  { %v91_v27 = vld [vmem:[%s1048_s0 + $0x148] sm:$0xf]  ;;  %v92_v28 = vld [vmem:[%s1048_s0 + $0x14c] sm:$0xf]  ;;  %589 = vst [vmem:[%s1049_s1 + $0x38] sm:$0xff] %v588_v20   ;;  %v304_v29 = vmax.bf16 %v302_v19, %v300_v21 }
  0x2a   :  { %v309_v31 = vsel %vm105_vm0, %v59_v24, 4286644096  ;;  %v313_v32 = vsel %vm105_vm0, %v91_v27, 4286644096  ;;  %v317_v34 = vsel %vm105_vm0, %v28_v23, 4286644096 }
  0x2b   :  { %v311_v33 = vmax.bf16 %v309_v31, %v306_v30  ;;  %v320_v35 = vsel %vm105_vm0, %v60_v26, 4286644096  ;;  %v324_v36 = vsel %vm105_vm0, %v92_v28, 4286644096  ;;  %v590_v37 = vcombine.low %v293_v25, %v304_v29  ;;  %v30_v40 = vld [vmem:[%s1048_s0 + $0x54] sm:$0xf] }
  0x2c   :  { %v322_v38 = vmax.bf16 %v320_v35, %v317_v34  ;;  %v61_v41 = vld [vmem:[%s1048_s0 + $0xd0] sm:$0xf]  ;;  %v62_v43 = vld [vmem:[%s1048_s0 + $0xd4] sm:$0xf]  ;;  %v328_v47 = vsel %vm105_vm0, %v29_v39, 4286644096 }
  0x2d   :  { %v315_v42 = vmax.bf16 %v313_v32, %v311_v33  ;;  %v93_v44 = vld [vmem:[%s1048_s0 + $0x150] sm:$0xf]  ;;  %v94_v45 = vld [vmem:[%s1048_s0 + $0x154] sm:$0xf]  ;;  %591 = vst [vmem:[%s1049_s1 + $0x40] sm:$0xff] %v590_v37  }
  0x2e   :  { %v326_v46 = vmax.bf16 %v324_v36, %v322_v38  ;;  %v331_v48 = vsel %vm105_vm0, %v61_v41, 4286644096  ;;  %v335_v49 = vsel %vm105_vm0, %v93_v44, 4286644096  ;;  %v339_v51 = vsel %vm105_vm0, %v30_v40, 4286644096 }
  0x2f   :  { %v333_v50 = vmax.bf16 %v331_v48, %v328_v47  ;;  %v342_v52 = vsel %vm105_vm0, %v62_v43, 4286644096  ;;  %v346_v53 = vsel %vm105_vm0, %v94_v45, 4286644096  ;;  %v31_v56 = vld [vmem:[%s1048_s0 + $0x58] sm:$0xf] }
  0x30   :  { %v592_v54 = vcombine.low %v315_v42, %v326_v46  ;;  %v344_v55 = vmax.bf16 %v342_v52, %v339_v51  ;;  %v32_v57 = vld [vmem:[%s1048_s0 + $0x5c] sm:$0xf]  ;;  %v63_v58 = vld [vmem:[%s1048_s0 + $0xd8] sm:$0xf]  ;;  %v350_v0 = vsel %vm105_vm0, %v31_v56, 4286644096 }
  0x31   :  { %v337_v59 = vmax.bf16 %v335_v49, %v333_v50  ;;  %v64_v60 = vld [vmem:[%s1048_s0 + $0xdc] sm:$0xf]  ;;  %v95_v61 = vld [vmem:[%s1048_s0 + $0x158] sm:$0xf]  ;;  %v353_v1 = vsel %vm105_vm0, %v63_v58, 4286644096 }
  0x32   :  { %v96_v62 = vld [vmem:[%s1048_s0 + $0x15c] sm:$0xf]  ;;  %593 = vst [vmem:[%s1049_s1 + $0x48] sm:$0xff] %v592_v54   ;;  %v348_v63 = vmax.bf16 %v346_v53, %v344_v55  ;;  %v357_v2 = vsel %vm105_vm0, %v95_v61, 4286644096  ;;  %v355_v3 = vmax.bf16 %v353_v1, %v350_v0 }
  0x33   :  { %v361_v4 = vsel %vm105_vm0, %v32_v57, 4286644096  ;;  %v364_v5 = vsel %vm105_vm0, %v64_v60, 4286644096  ;;  %v368_v6 = vsel %vm105_vm0, %v96_v62, 4286644096 }
  0x34   :  { %v594_v7 = vcombine.low %v337_v59, %v348_v63  ;;  %v366_v8 = vmax.bf16 %v364_v5, %v361_v4  ;;  %v33_v9 = vld [vmem:[%s1048_s0 + $0x60] sm:$0xf]  ;;  %v34_v10 = vld [vmem:[%s1048_s0 + $0x64] sm:$0xf]  ;;  %v359_v12 = vmax.bf16 %v357_v2, %v355_v3  ;;  %v35_v26 = vld [vmem:[%s1048_s0 + $0x68] sm:$0xf] }
  0x35   :  { %v65_v11 = vld [vmem:[%s1048_s0 + $0xe0] sm:$0xf]  ;;  %v66_v13 = vld [vmem:[%s1048_s0 + $0xe4] sm:$0xf]  ;;  %v372_v17 = vsel %vm105_vm0, %v33_v9, 4286644096 }
  0x36   :  { %v97_v14 = vld [vmem:[%s1048_s0 + $0x160] sm:$0xf]  ;;  %v98_v15 = vld [vmem:[%s1048_s0 + $0x164] sm:$0xf]  ;;  %595 = vst [vmem:[%s1049_s1 + $0x50] sm:$0xff] %v594_v7   ;;  %v370_v16 = vmax.bf16 %v368_v6, %v366_v8 }
  0x37   :  { %v375_v18 = vsel %vm105_vm0, %v65_v11, 4286644096  ;;  %v379_v19 = vsel %vm105_vm0, %v97_v14, 4286644096  ;;  %v383_v21 = vsel %vm105_vm0, %v34_v10, 4286644096 }
  0x38   :  { %v377_v20 = vmax.bf16 %v375_v18, %v372_v17  ;;  %v386_v22 = vsel %vm105_vm0, %v66_v13, 4286644096  ;;  %v390_v23 = vsel %vm105_vm0, %v98_v15, 4286644096  ;;  %v596_v24 = vcombine.low %v359_v12, %v370_v16  ;;  %v36_v27 = vld [vmem:[%s1048_s0 + $0x6c] sm:$0xf] }
  0x39   :  { %v388_v25 = vmax.bf16 %v386_v22, %v383_v21  ;;  %v67_v28 = vld [vmem:[%s1048_s0 + $0xe8] sm:$0xf]  ;;  %v68_v30 = vld [vmem:[%s1048_s0 + $0xec] sm:$0xf]  ;;  %v394_v34 = vsel %vm105_vm0, %v35_v26, 4286644096 }
  0x3a   :  { %v381_v29 = vmax.bf16 %v379_v19, %v377_v20  ;;  %v99_v31 = vld [vmem:[%s1048_s0 + $0x168] sm:$0xf]  ;;  %v100_v32 = vld [vmem:[%s1048_s0 + $0x16c] sm:$0xf]  ;;  %597 = vst [vmem:[%s1049_s1 + $0x58] sm:$0xff] %v596_v24  }
  0x3b   :  { %v392_v33 = vmax.bf16 %v390_v23, %v388_v25  ;;  %v397_v35 = vsel %vm105_vm0, %v67_v28, 4286644096  ;;  %v401_v36 = vsel %vm105_vm0, %v99_v31, 4286644096  ;;  %v405_v38 = vsel %vm105_vm0, %v36_v27, 4286644096 }
  0x3c   :  { %v399_v37 = vmax.bf16 %v397_v35, %v394_v34  ;;  %v408_v39 = vsel %vm105_vm0, %v68_v30, 4286644096  ;;  %v412_v40 = vsel %vm105_vm0, %v100_v32, 4286644096  ;;  %v37_v43 = vld [vmem:[%s1048_s0 + $0x70] sm:$0xf] }
  0x3d   :  { %v598_v41 = vcombine.low %v381_v29, %v392_v33  ;;  %v410_v42 = vmax.bf16 %v408_v39, %v405_v38  ;;  %v38_v44 = vld [vmem:[%s1048_s0 + $0x74] sm:$0xf]  ;;  %v69_v45 = vld [vmem:[%s1048_s0 + $0xf0] sm:$0xf]  ;;  %v416_v51 = vsel %vm105_vm0, %v37_v43, 4286644096 }
  0x3e   :  { %v403_v46 = vmax.bf16 %v401_v36, %v399_v37  ;;  %v70_v47 = vld [vmem:[%s1048_s0 + $0xf4] sm:$0xf]  ;;  %v101_v48 = vld [vmem:[%s1048_s0 + $0x170] sm:$0xf]  ;;  %v419_v52 = vsel %vm105_vm0, %v69_v45, 4286644096 }
  0x3f   :  { %v102_v49 = vld [vmem:[%s1048_s0 + $0x174] sm:$0xf]  ;;  %599 = vst [vmem:[%s1049_s1 + $0x60] sm:$0xff] %v598_v41   ;;  %v414_v50 = vmax.bf16 %v412_v40, %v410_v42  ;;  %v423_v53 = vsel %vm105_vm0, %v101_v48, 4286644096  ;;  %v421_v54 = vmax.bf16 %v419_v52, %v416_v51 }
  0x40   :  { %v427_v55 = vsel %vm105_vm0, %v38_v44, 4286644096  ;;  %v430_v56 = vsel %vm105_vm0, %v70_v47, 4286644096  ;;  %v434_v57 = vsel %vm105_vm0, %v102_v49, 4286644096 }
  0x41   :  { %v600_v58 = vcombine.low %v403_v46, %v414_v50  ;;  %v432_v59 = vmax.bf16 %v430_v56, %v427_v55  ;;  %v39_v60 = vld [vmem:[%s1048_s0 + $0x78] sm:$0xf]  ;;  %v40_v61 = vld [vmem:[%s1048_s0 + $0x7c] sm:$0xf]  ;;  %v425_v63 = vmax.bf16 %v423_v53, %v421_v54 }
  0x42   :  { %v71_v62 = vld [vmem:[%s1048_s0 + $0xf8] sm:$0xf]  ;;  %v72_v0 = vld [vmem:[%s1048_s0 + $0xfc] sm:$0xf]  ;;  %v438_v4 = vsel %vm105_vm0, %v39_v60, 4286644096 }
  0x43   :  { %v103_v1 = vld [vmem:[%s1048_s0 + $0x178] sm:$0xf]  ;;  %v104_v2 = vld [vmem:[%s1048_s0 + $0x17c] sm:$0xf]  ;;  %601 = vst [vmem:[%s1049_s1 + $0x68] sm:$0xff] %v600_v58   ;;  %v436_v3 = vmax.bf16 %v434_v57, %v432_v59 }
  0x44   :  { %v441_v5 = vsel %vm105_vm0, %v71_v62, 4286644096  ;;  %v445_v6 = vsel %vm105_vm0, %v103_v1, 4286644096  ;;  %v449_v8 = vsel %vm105_vm0, %v40_v61, 4286644096 }
  0x45   :  { %v443_v7 = vmax.bf16 %v441_v5, %v438_v4  ;;  %v452_v9 = vsel %vm105_vm0, %v72_v0, 4286644096  ;;  %v456_v10 = vsel %vm105_vm0, %v104_v2, 4286644096  ;;  %v602_v11 = vcombine.low %v425_v63, %v436_v3 }
  0x46   :  { %v454_v12 = vmax.bf16 %v452_v9, %v449_v8 }
  0x47   :  { %v447_v13 = vmax.bf16 %v445_v6, %v443_v7  ;;  %603 = vst [vmem:[%s1049_s1 + $0x70] sm:$0xff] %v602_v11  }
  0x48   :  { %v458_v14 = vmax.bf16 %v456_v10, %v454_v12 }
  0x4a   :  { %v604_v15 = vcombine.low %v447_v13, %v458_v14 }
  0x4c   :  { %605 = vst [vmem:[%s1049_s1 + $0x78] sm:$0xff] %v604_v15  }

// kernel: _lambda_.16
= control target key start
LH: loop header
LB: loop body
LE: loop exit
PB: predicated region body
PF: predicated region fallthrough
CT: control target
= control target key end

     0   :  { %vm57_vm0 = vcmask 1043456   ;;  %s536_s0 = inlined_call_operand.vmem [shape: bf16[3,128,128], index: 0, kind: input, shape index: {}]   ;;  %s537_s1 = inlined_call_operand.vmem [shape: bf16[128,128], index: 1, kind: output, shape index: {}]  }
   0x1   :  { %v9_v0 = vld [vmem:[%s536_s0] sm:$0xf]  ;;  %v10_v1 = vld [vmem:[%s536_s0 + $0x4] sm:$0xf]  ;;  %v11_v14 = vld [vmem:[%s536_s0 + $0x8] sm:$0xf] }
   0x2   :  { %v25_v2 = vld [vmem:[%s536_s0 + $0x40] sm:$0xf]  ;;  %v26_v3 = vld [vmem:[%s536_s0 + $0x44] sm:$0xf]  ;;  %v60_v6 = vsel %vm57_vm0, %v9_v0, 4286644096 }
   0x3   :  { %v41_v4 = vld [vmem:[%s536_s0 + $0x80] sm:$0xf]  ;;  %v42_v5 = vld [vmem:[%s536_s0 + $0x84] sm:$0xf]  ;;  %v63_v7 = vsel %vm57_vm0, %v25_v2, 4286644096 }
   0x4   :  { %v67_v8 = vsel %vm57_vm0, %v41_v4, 4286644096  ;;  %v65_v9 = vmax.bf16 %v63_v7, %v60_v6  ;;  %v71_v10 = vsel %vm57_vm0, %v10_v1, 4286644096  ;;  %v74_v11 = vsel %vm57_vm0, %v26_v3, 4286644096 }
   0x5   :  { %v78_v12 = vsel %vm57_vm0, %v42_v5, 4286644096  ;;  %v76_v13 = vmax.bf16 %v74_v11, %v71_v10  ;;  %v12_v15 = vld [vmem:[%s536_s0 + $0xc] sm:$0xf]  ;;  %v27_v16 = vld [vmem:[%s536_s0 + $0x48] sm:$0xf] }
   0x6   :  { %v69_v17 = vmax.bf16 %v67_v8, %v65_v9  ;;  %v28_v18 = vld [vmem:[%s536_s0 + $0x4c] sm:$0xf]  ;;  %v43_v19 = vld [vmem:[%s536_s0 + $0x88] sm:$0xf]  ;;  %v82_v22 = vsel %vm57_vm0, %v11_v14, 4286644096 }
   0x7   :  { %v44_v20 = vld [vmem:[%s536_s0 + $0x8c] sm:$0xf]  ;;  %v80_v21 = vmax.bf16 %v78_v12, %v76_v13  ;;  %v85_v23 = vsel %vm57_vm0, %v27_v16, 4286644096  ;;  %v89_v24 = vsel %vm57_vm0, %v43_v19, 4286644096 }
   0x8   :  { %v87_v25 = vmax.bf16 %v85_v23, %v82_v22  ;;  %v93_v26 = vsel %vm57_vm0, %v12_v15, 4286644096  ;;  %v96_v27 = vsel %vm57_vm0, %v28_v18, 4286644096  ;;  %v100_v28 = vsel %vm57_vm0, %v44_v20, 4286644096 }
   0x9   :  { %v295_v29 = vcombine.low %v69_v17, %v80_v21  ;;  %v98_v30 = vmax.bf16 %v96_v27, %v93_v26  ;;  %v13_v31 = vld [vmem:[%s536_s0 + $0x10] sm:$0xf]  ;;  %v14_v32 = vld [vmem:[%s536_s0 + $0x14] sm:$0xf]  ;;  %v15_v48 = vld [vmem:[%s536_s0 + $0x18] sm:$0xf] }
   0xa   :  { %v29_v33 = vld [vmem:[%s536_s0 + $0x50] sm:$0xf]  ;;  %v91_v34 = vmax.bf16 %v89_v24, %v87_v25  ;;  %v30_v35 = vld [vmem:[%s536_s0 + $0x54] sm:$0xf]  ;;  %v104_v39 = vsel %vm57_vm0, %v13_v31, 4286644096 }
   0xb   :  { %v45_v36 = vld [vmem:[%s536_s0 + $0x90] sm:$0xf]  ;;  %v46_v37 = vld [vmem:[%s536_s0 + $0x94] sm:$0xf]  ;;  %259 = vst [vmem:[%s537_s1] sm:$0xff] %v295_v29   ;;  %v102_v38 = vmax.bf16 %v100_v28, %v98_v30  ;;  %v107_v40 = vsel %vm57_vm0, %v29_v33, 4286644096 }
   0xc   :  { %v111_v41 = vsel %vm57_vm0, %v45_v36, 4286644096  ;;  %v109_v42 = vmax.bf16 %v107_v40, %v104_v39  ;;  %v115_v43 = vsel %vm57_vm0, %v14_v32, 4286644096  ;;  %v118_v44 = vsel %vm57_vm0, %v30_v35, 4286644096 }
   0xd   :  { %v122_v45 = vsel %vm57_vm0, %v46_v37, 4286644096  ;;  %v296_v46 = vcombine.low %v91_v34, %v102_v38  ;;  %v120_v47 = vmax.bf16 %v118_v44, %v115_v43  ;;  %v16_v49 = vld [vmem:[%s536_s0 + $0x1c] sm:$0xf]  ;;  %v31_v50 = vld [vmem:[%s536_s0 + $0x58] sm:$0xf] }
   0xe   :  { %v113_v51 = vmax.bf16 %v111_v41, %v109_v42  ;;  %v32_v52 = vld [vmem:[%s536_s0 + $0x5c] sm:$0xf]  ;;  %v47_v53 = vld [vmem:[%s536_s0 + $0x98] sm:$0xf]  ;;  %v126_v56 = vsel %vm57_vm0, %v15_v48, 4286644096 }
   0xf   :  { %v48_v54 = vld [vmem:[%s536_s0 + $0x9c] sm:$0xf]  ;;  %297 = vst [vmem:[%s537_s1 + $0x8] sm:$0xff] %v296_v46   ;;  %v124_v55 = vmax.bf16 %v122_v45, %v120_v47  ;;  %v129_v57 = vsel %vm57_vm0, %v31_v50, 4286644096 }
  0x10   :  { %v133_v58 = vsel %vm57_vm0, %v47_v53, 4286644096  ;;  %v131_v59 = vmax.bf16 %v129_v57, %v126_v56  ;;  %v137_v60 = vsel %vm57_vm0, %v16_v49, 4286644096  ;;  %v140_v61 = vsel %vm57_vm0, %v32_v52, 4286644096 }
  0x11   :  { %v144_v62 = vsel %vm57_vm0, %v48_v54, 4286644096  ;;  %v298_v63 = vcombine.low %v113_v51, %v124_v55  ;;  %v142_v0 = vmax.bf16 %v140_v61, %v137_v60  ;;  %v17_v1 = vld [vmem:[%s536_s0 + $0x20] sm:$0xf]  ;;  %v18_v2 = vld [vmem:[%s536_s0 + $0x24] sm:$0xf] }
  0x12   :  { %v33_v3 = vld [vmem:[%s536_s0 + $0x60] sm:$0xf]  ;;  %v135_v4 = vmax.bf16 %v133_v58, %v131_v59  ;;  %v34_v5 = vld [vmem:[%s536_s0 + $0x64] sm:$0xf]  ;;  %v148_v9 = vsel %vm57_vm0, %v17_v1, 4286644096 }
  0x13   :  { %v49_v6 = vld [vmem:[%s536_s0 + $0xa0] sm:$0xf]  ;;  %v50_v7 = vld [vmem:[%s536_s0 + $0xa4] sm:$0xf]  ;;  %299 = vst [vmem:[%s537_s1 + $0x10] sm:$0xff] %v298_v63   ;;  %v146_v8 = vmax.bf16 %v144_v62, %v142_v0 }
  0x14   :  { %v151_v10 = vsel %vm57_vm0, %v33_v3, 4286644096  ;;  %v155_v11 = vsel %vm57_vm0, %v49_v6, 4286644096  ;;  %v159_v13 = vsel %vm57_vm0, %v18_v2, 4286644096 }
  0x15   :  { %v153_v12 = vmax.bf16 %v151_v10, %v148_v9  ;;  %v162_v14 = vsel %vm57_vm0, %v34_v5, 4286644096  ;;  %v166_v15 = vsel %vm57_vm0, %v50_v7, 4286644096  ;;  %v300_v16 = vcombine.low %v135_v4, %v146_v8  ;;  %v19_v18 = vld [vmem:[%s536_s0 + $0x28] sm:$0xf] }
  0x16   :  { %v164_v17 = vmax.bf16 %v162_v14, %v159_v13  ;;  %v20_v19 = vld [vmem:[%s536_s0 + $0x2c] sm:$0xf]  ;;  %v35_v20 = vld [vmem:[%s536_s0 + $0x68] sm:$0xf]  ;;  %v170_v26 = vsel %vm57_vm0, %v19_v18, 4286644096 }
  0x17   :  { %v157_v21 = vmax.bf16 %v155_v11, %v153_v12  ;;  %v36_v22 = vld [vmem:[%s536_s0 + $0x6c] sm:$0xf]  ;;  %v51_v23 = vld [vmem:[%s536_s0 + $0xa8] sm:$0xf]  ;;  %301 = vst [vmem:[%s537_s1 + $0x18] sm:$0xff] %v300_v16  }
  0x18   :  { %v52_v24 = vld [vmem:[%s536_s0 + $0xac] sm:$0xf]  ;;  %v168_v25 = vmax.bf16 %v166_v15, %v164_v17  ;;  %v173_v27 = vsel %vm57_vm0, %v35_v20, 4286644096  ;;  %v177_v28 = vsel %vm57_vm0, %v51_v23, 4286644096 }
  0x19   :  { %v175_v29 = vmax.bf16 %v173_v27, %v170_v26  ;;  %v181_v30 = vsel %vm57_vm0, %v20_v19, 4286644096  ;;  %v184_v31 = vsel %vm57_vm0, %v36_v22, 4286644096  ;;  %v188_v32 = vsel %vm57_vm0, %v52_v24, 4286644096 }
  0x1a   :  { %v302_v33 = vcombine.low %v157_v21, %v168_v25  ;;  %v186_v34 = vmax.bf16 %v184_v31, %v181_v30  ;;  %v21_v35 = vld [vmem:[%s536_s0 + $0x30] sm:$0xf]  ;;  %v22_v36 = vld [vmem:[%s536_s0 + $0x34] sm:$0xf]  ;;  %v23_v52 = vld [vmem:[%s536_s0 + $0x38] sm:$0xf] }
  0x1b   :  { %v37_v37 = vld [vmem:[%s536_s0 + $0x70] sm:$0xf]  ;;  %v179_v38 = vmax.bf16 %v177_v28, %v175_v29  ;;  %v38_v39 = vld [vmem:[%s536_s0 + $0x74] sm:$0xf]  ;;  %v192_v43 = vsel %vm57_vm0, %v21_v35, 4286644096 }
  0x1c   :  { %v53_v40 = vld [vmem:[%s536_s0 + $0xb0] sm:$0xf]  ;;  %v54_v41 = vld [vmem:[%s536_s0 + $0xb4] sm:$0xf]  ;;  %303 = vst [vmem:[%s537_s1 + $0x20] sm:$0xff] %v302_v33   ;;  %v190_v42 = vmax.bf16 %v188_v32, %v186_v34 }
  0x1d   :  { %v195_v44 = vsel %vm57_vm0, %v37_v37, 4286644096  ;;  %v199_v45 = vsel %vm57_vm0, %v53_v40, 4286644096  ;;  %v203_v47 = vsel %vm57_vm0, %v22_v36, 4286644096 }
  0x1e   :  { %v197_v46 = vmax.bf16 %v195_v44, %v192_v43  ;;  %v206_v48 = vsel %vm57_vm0, %v38_v39, 4286644096  ;;  %v210_v49 = vsel %vm57_vm0, %v54_v41, 4286644096  ;;  %v304_v50 = vcombine.low %v179_v38, %v190_v42  ;;  %v24_v53 = vld [vmem:[%s536_s0 + $0x3c] sm:$0xf] }
  0x1f   :  { %v208_v51 = vmax.bf16 %v206_v48, %v203_v47  ;;  %v39_v54 = vld [vmem:[%s536_s0 + $0x78] sm:$0xf]  ;;  %v40_v56 = vld [vmem:[%s536_s0 + $0x7c] sm:$0xf]  ;;  %v214_v60 = vsel %vm57_vm0, %v23_v52, 4286644096 }
  0x20   :  { %v201_v55 = vmax.bf16 %v199_v45, %v197_v46  ;;  %v55_v57 = vld [vmem:[%s536_s0 + $0xb8] sm:$0xf]  ;;  %v56_v58 = vld [vmem:[%s536_s0 + $0xbc] sm:$0xf]  ;;  %305 = vst [vmem:[%s537_s1 + $0x28] sm:$0xff] %v304_v50  }
  0x21   :  { %v212_v59 = vmax.bf16 %v210_v49, %v208_v51  ;;  %v217_v61 = vsel %vm57_vm0, %v39_v54, 4286644096  ;;  %v221_v62 = vsel %vm57_vm0, %v55_v57, 4286644096  ;;  %v225_v0 = vsel %vm57_vm0, %v24_v53, 4286644096 }
  0x22   :  { %v219_v63 = vmax.bf16 %v217_v61, %v214_v60  ;;  %v228_v1 = vsel %vm57_vm0, %v40_v56, 4286644096  ;;  %v232_v2 = vsel %vm57_vm0, %v56_v58, 4286644096 }
  0x23   :  { %v306_v3 = vcombine.low %v201_v55, %v212_v59  ;;  %v230_v4 = vmax.bf16 %v228_v1, %v225_v0 }
  0x24   :  { %v223_v5 = vmax.bf16 %v221_v62, %v219_v63 }
  0x25   :  { %307 = vst [vmem:[%s537_s1 + $0x30] sm:$0xff] %v306_v3   ;;  %v234_v6 = vmax.bf16 %v232_v2, %v230_v4 }
  0x27   :  { %v308_v7 = vcombine.low %v223_v5, %v234_v6 }
  0x29   :  { %309 = vst [vmem:[%s537_s1 + $0x38] sm:$0xff] %v308_v7  }

// kernel: _lambda_.17
= control target key start
LH: loop header
LB: loop body
LE: loop exit
PB: predicated region body
PF: predicated region fallthrough
CT: control target
= control target key end

     0   :  { %s774_s12 = smov 0   ;;  %s776_s13 = smov 0   ;;  %s847_s0 = inlined_call_operand.vmem [shape: bf16[128,128], index: 0, kind: input, shape index: {}]   ;;  %s848_s1 = inlined_call_operand.vmem [shape: bf16[128,128], index: 1, kind: input, shape index: {}]   ;;  %s849_s2 = inlined_call_operand.vmem [shape: f32[1,128], index: 2, kind: input, shape index: {}]   ;;  %s850_s3 = inlined_call_operand.vmem [shape: bf16[128,128], index: 3, kind: output, shape index: {}]  }
   0x1   :  { %s778_s14 = smov 0  }
   0x2 LB: > { %s25_s15 = sadd.s32 1, %s748_s13  ;;  %p583_p0 = scmp.ge.s32.totalorder %s752_s14, 1  ;;  %s752_s14 = sphi %s778_s14, %s13_s14   ;;  %s748_s13 = sphi %s776_s13, %s852_s13   ;;  %s744_s12 = sphi %s774_s12, %s851_s12  }
   0x3   : > { %p27_p1 = scmp.ge.s32.totalorder %s25_s15, 2  ;;  %p166_p2 = scmp.lt.s32.totalorder %s752_s14, 3 }
   0x5   : > { %s854_s15 = smov (%p27_p1, %s25_s15), 0  ;;  %p167_p3 = pnand %p583_p0, %p166_p2 }
   0x6   : > { %v718_v0 = vld [vmem:[%s848_s1] sm:$0xff] (!%p167_p3)   ;;  %s584_s18 = sshll.u32 (!%p167_p3), %s744_s12, 3  ;;  %v719_v1 = vld [vmem:[%s848_s1 + $0x8] sm:$0xff] (!%p167_p3)   ;;  %v720_v2 = vld [vmem:[%s848_s1 + $0x10] sm:$0xff] (!%p167_p3)  }
   0x7   : > { %170 = sbr.rel (%p167_p3) target bundleno = 261 (0x105), region = 32  ;;  %p199_p4 = scmp.lt.s32.totalorder (!%p167_p3), %s584_s18, 15  ;;  %654 = vmatprep.subr.bf16.mxu0 (!%p167_p3), %v718_v0  ;;  %678 = vmatprep.subr.bf16.mxu1 (!%p167_p3), %v718_v0  ;;  %v721_v3 = vld [vmem:[%s848_s1 + $0x18] sm:$0xff] (!%p167_p3)   ;;  %v722_v6 = vld [vmem:[%s848_s1 + $0x20] sm:$0xff] (!%p167_p3)   ;;  %v723_v7 = vld [vmem:[%s848_s1 + $0x28] sm:$0xff] (!%p167_p3)  }
   0x8   : > { %655 = vmatpush3.bf16.msra.mxu0 (!%p167_p3), %v718_v0  ;;  %686 = vmatpush3.bf16.msra.mxu1 (!%p167_p3), %v718_v0  ;;  %v724_v8 = vld [vmem:[%s848_s1 + $0x30] sm:$0xff] (!%p167_p3)   ;;  %v725_v9 = vld [vmem:[%s848_s1 + $0x38] sm:$0xff] (!%p167_p3)   ;;  %v600_v12 = vld [vmem:[%s849_s2] ss:$0 sm:$0xff] (!%p167_p3) }
   0x9   : > { %656 = vmatprep.subr.bf16.mxu0 (!%p167_p3), %v719_v1  ;;  %679 = vmatprep.subr.bf16.mxu1 (!%p167_p3), %v719_v1 }
   0xc   : > { %657 = vmatpush3.bf16.msra.mxu0 (!%p167_p3), %v719_v1  ;;  %687 = vmatpush3.bf16.msra.mxu1 (!%p167_p3), %v719_v1 }
   0xd   : > { %658 = vmatprep.subr.bf16.mxu0 (!%p167_p3), %v720_v2  ;;  %680 = vmatprep.subr.bf16.mxu1 (!%p167_p3), %v720_v2 }
   0xe   : > { %s856_s18 = smov (!%p199_p4, %s584_s18), 15 }
   0xf   : > { %s585_s23 = sshll.u32 %s856_s18, 2 }
  0x10   : > { %s809_s26 = scalar_lea.vmem %s847_s0, %s585_s23  ;;  %659 = vmatpush3.bf16.msra.mxu0 %v720_v2  ;;  %688 = vmatpush3.bf16.msra.mxu1 %v720_v2  ;;  %s217_s17 = scalar_lea.vmem %s850_s3, %s585_s23 }
  0x11   : > { %v726_v4 = vld [vmem:[%s809_s26] sm:$0xff]   ;;  %v727_v5 = vld [vmem:[%s809_s26 + $0x10] sm:$0xff]   ;;  %660 = vmatprep.subr.bf16.mxu0 %v721_v3  ;;  %681 = vmatprep.subr.bf16.mxu1 %v721_v3  ;;  %v728_v10 = vld [vmem:[%s809_s26 + $0x8] sm:$0xff]  }
  0x12   : > { %670 = vmatprep.mubr.bf16.mxu0 %v726_v4  ;;  %674 = vmatprep.mubr.bf16.mxu1 %v727_v5  ;;  %v729_v11 = vld [vmem:[%s809_s26 + $0x18] sm:$0xff]  }
  0x14   : > { %661 = vmatpush3.bf16.msra.mxu0 %v721_v3  ;;  %689 = vmatpush3.bf16.msra.mxu1 %v721_v3 }
  0x15   : > { %662 = vmatprep.subr.bf16.mxu0 %v722_v6  ;;  %682 = vmatprep.subr.bf16.mxu1 %v722_v6 }
  0x18   : > { %663 = vmatpush3.bf16.msra.mxu0 %v722_v6  ;;  %690 = vmatpush3.bf16.msra.mxu1 %v722_v6 }
  0x19   : > { %664 = vmatprep.subr.bf16.mxu0 %v723_v7  ;;  %683 = vmatprep.subr.bf16.mxu1 %v723_v7 }
  0x1c   : > { %665 = vmatpush3.bf16.msra.mxu0 %v723_v7  ;;  %691 = vmatpush3.bf16.msra.mxu1 %v723_v7 }
  0x1d   : > { %666 = vmatprep.subr.bf16.mxu0 %v724_v8  ;;  %684 = vmatprep.subr.bf16.mxu1 %v724_v8 }
  0x20   : > { %667 = vmatpush3.bf16.msra.mxu0 %v724_v8  ;;  %692 = vmatpush3.bf16.msra.mxu1 %v724_v8 }
  0x21   : > { %668 = vmatprep.subr.bf16.mxu0 %v725_v9  ;;  %685 = vmatprep.subr.bf16.mxu1 %v725_v9 }
  0x24   : > { %669 = vmatpush3.bf16.msra.mxu0 %v725_v9  ;;  %693 = vmatpush3.bf16.msra.mxu1 %v725_v9 }
  0x27   : > { %671 = vmatmul.mubr.bf16.vlgmr.msra.gmra.mrb[0].mxu0 %v728_v10  ;;  %675 = vmatmul.mubr.bf16.vlgmr.msra.gmra.mrb[0].mxu1 %v729_v11 }
  0xfa   : > { %v672_v13 = vpop.f32.mrb[0].mxu0  ;;  %v676_v14 = vpop.f32.mrb[0].mxu1 }
  0xfb   : > { %v441_v15 = vadd.f32 %v672_v13, %v600_v12  ;;  %v445_v16 = vadd.f32 %v676_v14, %v600_v12  ;;  %v350_v17 = vpop.f32.mrb[1].mxu0  ;;  %v366_v18 = vpop.f32.mrb[1].mxu1 }
  0xfc   : > { %v439_v19 = vadd.f32 %v600_v12, %v350_v17  ;;  %v443_v20 = vadd.f32 %v600_v12, %v366_v18  ;;  %v673_v21 = vpop.f32.mrb[2].mxu0  ;;  %v677_v22 = vpop.f32.mrb[2].mxu1 }
  0xfd   : > { %v442_v23 = vadd.f32 %v673_v21, %v600_v12  ;;  %v446_v24 = vadd.f32 %v677_v22, %v600_v12  ;;  %v353_v25 = vpop.f32.mrb[3].mxu0  ;;  %v369_v26 = vpop.f32.mrb[3].mxu1  ;;  %v449_v29 = vmax.f32 %v441_v15, 0.0  ;;  %v453_v30 = vmax.f32 %v445_v16, 0.0 }
  0xfe   : > { %v440_v27 = vadd.f32 %v600_v12, %v353_v25  ;;  %v444_v28 = vadd.f32 %v600_v12, %v369_v26  ;;  %v447_v33 = vmax.f32 %v439_v19, 0.0  ;;  %v451_v34 = vmax.f32 %v443_v20, 0.0 }
  0xff   : > { %v450_v31 = vmax.f32 %v442_v23, 0.0  ;;  %v454_v32 = vmax.f32 %v446_v24, 0.0 }
 0x100   : > { %v448_v35 = vmax.f32 %v440_v27, 0.0  ;;  %v452_v36 = vmax.f32 %v444_v28, 0.0 }
 0x101   : > { %v627_v37 = vpack.c.bf16 %v450_v31, %v449_v29  ;;  %v637_v38 = vpack.c.bf16 %v454_v32, %v453_v30 }
 0x102   : > { %v622_v39 = vpack.c.bf16 %v448_v35, %v447_v33  ;;  %v632_v40 = vpack.c.bf16 %v452_v36, %v451_v34 }
 0x103   : > { %639 = vst [vmem:[%s217_s17 + $0x8] sm:$0xff] %v627_v37   ;;  %641 = vst [vmem:[%s217_s17 + $0x18] sm:$0xff] %v637_v38  }
 0x104   : > { %623 = vst [vmem:[%s217_s17] sm:$0xff] %v622_v39   ;;  %640 = vst [vmem:[%s217_s17 + $0x10] sm:$0xff] %v632_v40  }
 0x105 PF: > { %s13_s14 = sadd.s32 1, %s752_s14   ;;  %s851_s12 = smov %s748_s13 }
 0x106   : > { %p10_p5 = scmp.ge.s32.totalorder %s13_s14, 4   ;;  %s852_s13 = smov %s854_s15 }
 0x108   :  { %12 = sbr.rel (!%p10_p5) target bundleno = 2 (0x2), region = 77 }

// kernel: _lambda_.18
= control target key start
LH: loop header
LB: loop body
LE: loop exit
PB: predicated region body
PF: predicated region fallthrough
CT: control target
= control target key end

     0   :  { %s885_s15 = smov 0   ;;  %s887_s16 = smov 0   ;;  %s959_s0 = inlined_call_operand.vmem [shape: bf16[128,128], index: 0, kind: input, shape index: {}]   ;;  %s960_s1 = inlined_call_operand.vmem [shape: bf16[128,128], index: 1, kind: input, shape index: {}]   ;;  %s961_s2 = inlined_call_operand.vmem [shape: bf16[128,128], index: 2, kind: input, shape index: {}]   ;;  %s962_s3 = inlined_call_operand.vmem [shape: f32[1,128], index: 3, kind: input, shape index: {}]   ;;  %s963_s4 = inlined_call_operand.vmem [shape: bf16[128,128], index: 4, kind: output, shape index: {}]  }
   0x1   :  { %s889_s17 = smov 0  }
   0x2 LB: > { %s26_s18 = sadd.s32 1, %s854_s16  ;;  %p668_p0 = scmp.ge.s32.totalorder %s858_s17, 1  ;;  %s858_s17 = sphi %s889_s17, %s14_s17   ;;  %s854_s16 = sphi %s887_s16, %s965_s16   ;;  %s850_s15 = sphi %s885_s15, %s964_s15  }
   0x3   : > { %p28_p1 = scmp.ge.s32.totalorder %s26_s18, 2  ;;  %p202_p2 = scmp.lt.s32.totalorder %s858_s17, 3 }
   0x5   : > { %s967_s18 = smov (%p28_p1, %s26_s18), 0  ;;  %p203_p3 = pnand %p668_p0, %p202_p2 }
   0x6   : > { %v824_v0 = vld [vmem:[%s960_s1] sm:$0xff] (!%p203_p3)   ;;  %s669_s21 = sshll.u32 (!%p203_p3), %s850_s15, 3  ;;  %v825_v1 = vld [vmem:[%s960_s1 + $0x8] sm:$0xff] (!%p203_p3)   ;;  %v826_v2 = vld [vmem:[%s960_s1 + $0x10] sm:$0xff] (!%p203_p3)  }
   0x7   : > { %206 = sbr.rel (%p203_p3) target bundleno = 263 (0x107), region = 36  ;;  %p242_p4 = scmp.lt.s32.totalorder (!%p203_p3), %s669_s21, 15  ;;  %760 = vmatprep.subr.bf16.mxu0 (!%p203_p3), %v824_v0  ;;  %784 = vmatprep.subr.bf16.mxu1 (!%p203_p3), %v824_v0  ;;  %v827_v3 = vld [vmem:[%s960_s1 + $0x18] sm:$0xff] (!%p203_p3)   ;;  %v828_v6 = vld [vmem:[%s960_s1 + $0x20] sm:$0xff] (!%p203_p3)   ;;  %v829_v7 = vld [vmem:[%s960_s1 + $0x28] sm:$0xff] (!%p203_p3)  }
   0x8   : > { %761 = vmatpush3.bf16.msra.mxu0 (!%p203_p3), %v824_v0  ;;  %792 = vmatpush3.bf16.msra.mxu1 (!%p203_p3), %v824_v0  ;;  %v830_v8 = vld [vmem:[%s960_s1 + $0x30] sm:$0xff] (!%p203_p3)   ;;  %v831_v9 = vld [vmem:[%s960_s1 + $0x38] sm:$0xff] (!%p203_p3)   ;;  %v687_v16 = vld [vmem:[%s962_s3] ss:$0 sm:$0xff] (!%p203_p3) }
   0x9   : > { %762 = vmatprep.subr.bf16.mxu0 (!%p203_p3), %v825_v1  ;;  %785 = vmatprep.subr.bf16.mxu1 (!%p203_p3), %v825_v1 }
   0xc   : > { %763 = vmatpush3.bf16.msra.mxu0 (!%p203_p3), %v825_v1  ;;  %793 = vmatpush3.bf16.msra.mxu1 (!%p203_p3), %v825_v1 }
   0xd   : > { %764 = vmatprep.subr.bf16.mxu0 (!%p203_p3), %v826_v2  ;;  %786 = vmatprep.subr.bf16.mxu1 (!%p203_p3), %v826_v2 }
   0xe   : > { %s969_s21 = smov (!%p242_p4, %s669_s21), 15 }
   0xf   : > { %s912_s26 = sshll.u32 %s969_s21, 2 }
  0x10   : > { %s918_s29 = scalar_lea.vmem %s959_s0, %s912_s26  ;;  %765 = vmatpush3.bf16.msra.mxu0 %v826_v2  ;;  %794 = vmatpush3.bf16.msra.mxu1 %v826_v2  ;;  %s260_s19 = scalar_lea.vmem %s961_s2, %s912_s26 }
  0x11   : > { %v832_v4 = vld [vmem:[%s918_s29] sm:$0xff]   ;;  %v833_v5 = vld [vmem:[%s918_s29 + $0x10] sm:$0xff]   ;;  %766 = vmatprep.subr.bf16.mxu0 %v827_v3  ;;  %787 = vmatprep.subr.bf16.mxu1 %v827_v3  ;;  %v834_v10 = vld [vmem:[%s918_s29 + $0x8] sm:$0xff]   ;;  %s266_s24 = scalar_lea.vmem %s963_s4, %s912_s26 }
  0x12   : > { %776 = vmatprep.mubr.bf16.mxu0 %v832_v4  ;;  %780 = vmatprep.mubr.bf16.mxu1 %v833_v5  ;;  %v835_v11 = vld [vmem:[%s918_s29 + $0x18] sm:$0xff]   ;;  %v742_v12 = vld [vmem:[%s260_s19 + $0x8] sm:$0xff]   ;;  %v707_v14 = vld [vmem:[%s260_s19] sm:$0xff]  }
  0x13   : > { %v744_v13 = vld [vmem:[%s260_s19 + $0x18] sm:$0xff]   ;;  %v743_v15 = vld [vmem:[%s260_s19 + $0x10] sm:$0xff]   ;;  %v712_v17 = vunpack.c.l.bf16 %v742_v12  ;;  %v708_v21 = vunpack.c.l.bf16 %v707_v14  ;;  %v713_v27 = vunpack.c.h.bf16 %v742_v12  ;;  %v709_v33 = vunpack.c.h.bf16 %v707_v14 }
  0x14   : > { %767 = vmatpush3.bf16.msra.mxu0 %v827_v3  ;;  %795 = vmatpush3.bf16.msra.mxu1 %v827_v3  ;;  %v720_v18 = vunpack.c.l.bf16 %v744_v13  ;;  %v716_v22 = vunpack.c.l.bf16 %v743_v15  ;;  %v721_v28 = vunpack.c.h.bf16 %v744_v13  ;;  %v717_v34 = vunpack.c.h.bf16 %v743_v15 }
  0x15   : > { %768 = vmatprep.subr.bf16.mxu0 %v828_v6  ;;  %788 = vmatprep.subr.bf16.mxu1 %v828_v6 }
  0x18   : > { %769 = vmatpush3.bf16.msra.mxu0 %v828_v6  ;;  %796 = vmatpush3.bf16.msra.mxu1 %v828_v6 }
  0x19   : > { %770 = vmatprep.subr.bf16.mxu0 %v829_v7  ;;  %789 = vmatprep.subr.bf16.mxu1 %v829_v7 }
  0x1c   : > { %771 = vmatpush3.bf16.msra.mxu0 %v829_v7  ;;  %797 = vmatpush3.bf16.msra.mxu1 %v829_v7 }
  0x1d   : > { %772 = vmatprep.subr.bf16.mxu0 %v830_v8  ;;  %790 = vmatprep.subr.bf16.mxu1 %v830_v8 }
  0x20   : > { %773 = vmatpush3.bf16.msra.mxu0 %v830_v8  ;;  %798 = vmatpush3.bf16.msra.mxu1 %v830_v8 }
  0x21   : > { %774 = vmatprep.subr.bf16.mxu0 %v831_v9  ;;  %791 = vmatprep.subr.bf16.mxu1 %v831_v9 }
  0x24   : > { %775 = vmatpush3.bf16.msra.mxu0 %v831_v9  ;;  %799 = vmatpush3.bf16.msra.mxu1 %v831_v9 }
  0x27   : > { %777 = vmatmul.mubr.bf16.vlgmr.msra.gmra.mrb[0].mxu0 %v834_v10  ;;  %781 = vmatmul.mubr.bf16.vlgmr.msra.gmra.mrb[0].mxu1 %v835_v11 }
  0xfa   : > { %v778_v19 = vpop.f32.mrb[0].mxu0  ;;  %v782_v20 = vpop.f32.mrb[0].mxu1 }
  0xfb   : > { %v490_v23 = vadd.f32 %v778_v19, %v687_v16  ;;  %v494_v24 = vadd.f32 %v782_v20, %v687_v16  ;;  %v399_v25 = vpop.f32.mrb[1].mxu0  ;;  %v415_v26 = vpop.f32.mrb[1].mxu1 }
  0xfc   : > { %v488_v29 = vadd.f32 %v687_v16, %v399_v25  ;;  %v492_v30 = vadd.f32 %v687_v16, %v415_v26  ;;  %v779_v31 = vpop.f32.mrb[2].mxu0  ;;  %v783_v32 = vpop.f32.mrb[2].mxu1 }
  0xfd   : > { %v514_v35 = vadd.f32 %v712_v17, %v490_v23  ;;  %v518_v36 = vadd.f32 %v720_v18, %v494_v24  ;;  %v491_v37 = vadd.f32 %v779_v31, %v687_v16  ;;  %v495_v38 = vadd.f32 %v783_v32, %v687_v16  ;;  %v402_v39 = vpop.f32.mrb[3].mxu0  ;;  %v418_v40 = vpop.f32.mrb[3].mxu1 }
  0xfe   : > { %v512_v41 = vadd.f32 %v708_v21, %v488_v29  ;;  %v516_v42 = vadd.f32 %v716_v22, %v492_v30  ;;  %v489_v43 = vadd.f32 %v687_v16, %v402_v39  ;;  %v493_v44 = vadd.f32 %v687_v16, %v418_v40 }
  0xff   : > { %v515_v45 = vadd.f32 %v713_v27, %v491_v37  ;;  %v519_v46 = vadd.f32 %v721_v28, %v495_v38  ;;  %v522_v49 = vmax.f32 %v514_v35, 0.0  ;;  %v526_v50 = vmax.f32 %v518_v36, 0.0 }
 0x100   : > { %v513_v47 = vadd.f32 %v709_v33, %v489_v43  ;;  %v517_v48 = vadd.f32 %v717_v34, %v493_v44  ;;  %v520_v53 = vmax.f32 %v512_v41, 0.0  ;;  %v524_v54 = vmax.f32 %v516_v42, 0.0 }
 0x101   : > { %v523_v51 = vmax.f32 %v515_v45, 0.0  ;;  %v527_v52 = vmax.f32 %v519_v46, 0.0 }
 0x102   : > { %v521_v55 = vmax.f32 %v513_v47, 0.0  ;;  %v525_v56 = vmax.f32 %v517_v48, 0.0 }
 0x103   : > { %v730_v57 = vpack.c.bf16 %v523_v51, %v522_v49  ;;  %v740_v58 = vpack.c.bf16 %v527_v52, %v526_v50 }
 0x104   : > { %v725_v59 = vpack.c.bf16 %v521_v55, %v520_v53  ;;  %v735_v60 = vpack.c.bf16 %v525_v56, %v524_v54 }
 0x105   : > { %745 = vst [vmem:[%s266_s24 + $0x8] sm:$0xff] %v730_v57   ;;  %747 = vst [vmem:[%s266_s24 + $0x18] sm:$0xff] %v740_v58  }
 0x106   : > { %726 = vst [vmem:[%s266_s24] sm:$0xff] %v725_v59   ;;  %746 = vst [vmem:[%s266_s24 + $0x10] sm:$0xff] %v735_v60  }
 0x107 PF: > { %s14_s17 = sadd.s32 1, %s858_s17   ;;  %s964_s15 = smov %s854_s16 }
 0x108   : > { %p11_p5 = scmp.ge.s32.totalorder %s14_s17, 4   ;;  %s965_s16 = smov %s967_s18 }
 0x10a   :  { %13 = sbr.rel (!%p11_p5) target bundleno = 2 (0x2), region = 84 }

// kernel: _lambda_.19
= control target key start
LH: loop header
LB: loop body
LE: loop exit
PB: predicated region body
PF: predicated region fallthrough
CT: control target
= control target key end

     0   :  { %s599_s12 = smov 0   ;;  %s601_s13 = smov 0   ;;  %s666_s0 = inlined_call_operand.vmem [shape: bf16[32,128], index: 0, kind: input, shape index: {}]   ;;  %s667_s1 = inlined_call_operand.vmem [shape: bf16[128,128], index: 1, kind: input, shape index: {}]   ;;  %s668_s2 = inlined_call_operand.vmem [shape: f32[1,128], index: 2, kind: input, shape index: {}]   ;;  %s669_s3 = inlined_call_operand.vmem [shape: bf16[32,128], index: 3, kind: output, shape index: {}]  }
   0x1   :  { %s603_s14 = smov 0  }
   0x2 LB: > { %s25_s15 = sadd.s32 1, %s571_s13  ;;  %p463_p0 = scmp.ge.s32.totalorder %s575_s14, 1  ;;  %s575_s14 = sphi %s603_s14, %s13_s14   ;;  %s571_s13 = sphi %s601_s13, %s671_s13   ;;  %s567_s12 = sphi %s599_s12, %s670_s12  }
   0x3   : > { %p27_p1 = scmp.ge.s32.totalorder %s25_s15, 2  ;;  %p166_p2 = scmp.lt.s32.totalorder %s575_s14, 3 }
   0x5   : > { %s673_s15 = smov (%p27_p1, %s25_s15), 0  ;;  %p167_p3 = pnand %p463_p0, %p166_p2 }
   0x6   : > { %v544_v0 = vld [vmem:[%s667_s1] sm:$0xff] (!%p167_p3)   ;;  %v577_v1 = vmov (!%p167_p3), 0.0   ;;  %v545_v2 = vld [vmem:[%s667_s1 + $0x8] sm:$0xff] (!%p167_p3)   ;;  %vm578_vm0 = vmmov (!%p167_p3), 0   ;;  %s464_s20 = sshll.u32 (!%p167_p3), %s567_s12, 1  ;;  %v546_v3 = vld [vmem:[%s667_s1 + $0x10] sm:$0xff] (!%p167_p3)  }
   0x7   : > { %170 = sbr.rel (%p167_p3) target bundleno = 260 (0x104), region = 32  ;;  %498 = vmatprep.subr.bf16.mxu0 (!%p167_p3), %v577_v1  ;;  %514 = vmatprep.mubr.msk.bf16.mxu0 (!%p167_p3), %vm578_vm0, %v577_v1  ;;  %p199_p4 = scmp.lt.s32.totalorder (!%p167_p3), %s464_s20, 3  ;;  %v547_v4 = vld [vmem:[%s667_s1 + $0x18] sm:$0xff] (!%p167_p3)   ;;  %v548_v5 = vld [vmem:[%s667_s1 + $0x20] sm:$0xff] (!%p167_p3)   ;;  %v549_v6 = vld [vmem:[%s667_s1 + $0x28] sm:$0xff] (!%p167_p3)  }
   0x8   : > { %499 = vmatpush3.bf16.msra.mxu0 (!%p167_p3), %v544_v0  ;;  %v550_v7 = vld [vmem:[%s667_s1 + $0x30] sm:$0xff] (!%p167_p3)   ;;  %v551_v8 = vld [vmem:[%s667_s1 + $0x38] sm:$0xff] (!%p167_p3)   ;;  %v477_v10 = vld [vmem:[%s668_s2] ss:$0 sm:$0xff] (!%p167_p3) }
   0x9   : > { %500 = vmatprep.subr.bf16.mxu0 (!%p167_p3), %v577_v1 }
   0xc   : > { %501 = vmatpush3.bf16.msra.mxu0 (!%p167_p3), %v545_v2 }
   0xd   : > { %502 = vmatprep.subr.bf16.mxu0 (!%p167_p3), %v577_v1 }
   0xe   : > { %s675_s20 = smov (!%p199_p4, %s464_s20), 3 }
   0xf   : > { %s465_s23 = sshll.u32 %s675_s20, 2 }
  0x10   : > { %s205_s26 = scalar_lea.vmem %s666_s0, %s465_s23  ;;  %503 = vmatpush3.bf16.msra.mxu0 %v546_v3  ;;  %s217_s17 = scalar_lea.vmem %s669_s3, %s465_s23 }
  0x11   : > { %504 = vmatprep.subr.bf16.mxu0 %v577_v1  ;;  %v552_v9 = vld [vmem:[%s205_s26] sm:$0xff]  }
  0x14   : > { %505 = vmatpush3.bf16.msra.mxu0 %v547_v4 }
  0x15   : > { %506 = vmatprep.subr.bf16.mxu0 %v577_v1 }
  0x18   : > { %507 = vmatpush3.bf16.msra.mxu0 %v548_v5 }
  0x19   : > { %508 = vmatprep.subr.bf16.mxu0 %v577_v1 }
  0x1c   : > { %509 = vmatpush3.bf16.msra.mxu0 %v549_v6 }
  0x1d   : > { %510 = vmatprep.subr.bf16.mxu0 %v577_v1 }
  0x20   : > { %511 = vmatpush3.bf16.msra.mxu0 %v550_v7 }
  0x21   : > { %512 = vmatprep.subr.bf16.mxu0 %v577_v1 }
  0x24   : > { %513 = vmatpush3.bf16.msra.mxu0 %v551_v8 }
  0x27   : > { %515 = vmatmul.mubr.bf16.vlgmr.msra.gmra.mrb[0].mxu0 %v552_v9 }
  0xfa   : > { %v326_v11 = vpop.f32.mrb[0].mxu0 }
  0xfb   : > { %v361_v12 = vadd.f32 %v477_v10, %v326_v11  ;;  %v516_v13 = vpop.f32.mrb[1].mxu0 }
  0xfc   : > { %v329_v14 = vpop.f32.mrb[2].mxu0 }
  0xfd   : > { %v362_v15 = vadd.f32 %v477_v10, %v329_v14  ;;  %v517_v16 = vpop.f32.mrb[3].mxu0  ;;  %v363_v17 = vmax.f32 %v361_v12, 0.0 }
  0xff   : > { %v364_v18 = vmax.f32 %v362_v15, 0.0 }
 0x101   : > { %v487_v19 = vpack.c.bf16 %v364_v18, %v363_v17 }
 0x103   : > { %488 = vst [vmem:[%s217_s17] sm:$0xff] %v487_v19  }
 0x104 PF: > { %s13_s14 = sadd.s32 1, %s575_s14   ;;  %s670_s12 = smov %s571_s13 }
 0x105   : > { %p10_p5 = scmp.ge.s32.totalorder %s13_s14, 4   ;;  %s671_s13 = smov %s673_s15 }
 0x107   :  { %12 = sbr.rel (!%p10_p5) target bundleno = 2 (0x2), region = 77 }

// kernel: _lambda_.20
= control target key start
LH: loop header
LB: loop body
LE: loop exit
PB: predicated region body
PF: predicated region fallthrough
CT: control target
= control target key end

     0   :  { %s597_s12 = smov 0   ;;  %s599_s13 = smov 0   ;;  %s660_s0 = inlined_call_operand.vmem [shape: bf16[32,128], index: 0, kind: input, shape index: {}]   ;;  %s661_s1 = inlined_call_operand.vmem [shape: bf16[128,128], index: 1, kind: input, shape index: {}]   ;;  %s662_s2 = inlined_call_operand.vmem [shape: f32[1,128], index: 2, kind: input, shape index: {}]   ;;  %s663_s3 = inlined_call_operand.vmem [shape: bf16[32,128], index: 3, kind: output, shape index: {}]  }
   0x1   :  { %s601_s14 = smov 0  }
   0x2 LB: > { %s25_s15 = sadd.s32 1, %s569_s13  ;;  %p461_p0 = scmp.ge.s32.totalorder %s573_s14, 1  ;;  %s573_s14 = sphi %s601_s14, %s13_s14   ;;  %s569_s13 = sphi %s599_s13, %s665_s13   ;;  %s565_s12 = sphi %s597_s12, %s664_s12  }
   0x3   : > { %p27_p1 = scmp.ge.s32.totalorder %s25_s15, 2  ;;  %p166_p2 = scmp.lt.s32.totalorder %s573_s14, 3 }
   0x5   : > { %s667_s15 = smov (%p27_p1, %s25_s15), 0  ;;  %p167_p3 = pnand %p461_p0, %p166_p2 }
   0x6   : > { %v542_v0 = vld [vmem:[%s661_s1] sm:$0xff] (!%p167_p3)   ;;  %v575_v1 = vmov (!%p167_p3), 0.0   ;;  %v543_v2 = vld [vmem:[%s661_s1 + $0x8] sm:$0xff] (!%p167_p3)   ;;  %vm576_vm0 = vmmov (!%p167_p3), 0   ;;  %s462_s20 = sshll.u32 (!%p167_p3), %s565_s12, 1  ;;  %v544_v3 = vld [vmem:[%s661_s1 + $0x10] sm:$0xff] (!%p167_p3)  }
   0x7   : > { %170 = sbr.rel (%p167_p3) target bundleno = 258 (0x102), region = 32  ;;  %496 = vmatprep.subr.bf16.mxu0 (!%p167_p3), %v575_v1  ;;  %512 = vmatprep.mubr.msk.bf16.mxu0 (!%p167_p3), %vm576_vm0, %v575_v1  ;;  %p199_p4 = scmp.lt.s32.totalorder (!%p167_p3), %s462_s20, 3  ;;  %v545_v4 = vld [vmem:[%s661_s1 + $0x18] sm:$0xff] (!%p167_p3)   ;;  %v546_v5 = vld [vmem:[%s661_s1 + $0x20] sm:$0xff] (!%p167_p3)   ;;  %v547_v6 = vld [vmem:[%s661_s1 + $0x28] sm:$0xff] (!%p167_p3)  }
   0x8   : > { %497 = vmatpush3.bf16.msra.mxu0 (!%p167_p3), %v542_v0  ;;  %v548_v7 = vld [vmem:[%s661_s1 + $0x30] sm:$0xff] (!%p167_p3)   ;;  %v549_v8 = vld [vmem:[%s661_s1 + $0x38] sm:$0xff] (!%p167_p3)   ;;  %v475_v11 = vld [vmem:[%s662_s2] ss:$0 sm:$0xff] (!%p167_p3) }
   0x9   : > { %498 = vmatprep.subr.bf16.mxu0 (!%p167_p3), %v575_v1 }
   0xc   : > { %499 = vmatpush3.bf16.msra.mxu0 (!%p167_p3), %v543_v2 }
   0xd   : > { %500 = vmatprep.subr.bf16.mxu0 (!%p167_p3), %v575_v1 }
   0xe   : > { %s669_s20 = smov (!%p199_p4, %s462_s20), 3 }
   0xf   : > { %s463_s23 = sshll.u32 %s669_s20, 2 }
  0x10   : > { %s205_s26 = scalar_lea.vmem %s660_s0, %s463_s23  ;;  %501 = vmatpush3.bf16.msra.mxu0 %v544_v3  ;;  %s217_s17 = scalar_lea.vmem %s663_s3, %s463_s23 }
  0x11   : > { %502 = vmatprep.subr.bf16.mxu0 %v575_v1  ;;  %v550_v9 = vld [vmem:[%s205_s26] sm:$0xff]  }
  0x14   : > { %503 = vmatpush3.bf16.msra.mxu0 %v545_v4 }
  0x15   : > { %504 = vmatprep.subr.bf16.mxu0 %v575_v1 }
  0x18   : > { %505 = vmatpush3.bf16.msra.mxu0 %v546_v5 }
  0x19   : > { %506 = vmatprep.subr.bf16.mxu0 %v575_v1 }
  0x1c   : > { %507 = vmatpush3.bf16.msra.mxu0 %v547_v6 }
  0x1d   : > { %508 = vmatprep.subr.bf16.mxu0 %v575_v1 }
  0x20   : > { %509 = vmatpush3.bf16.msra.mxu0 %v548_v7 }
  0x21   : > { %510 = vmatprep.subr.bf16.mxu0 %v575_v1 }
  0x24   : > { %511 = vmatpush3.bf16.msra.mxu0 %v549_v8 }
  0x27   : > { %513 = vmatmul.mubr.bf16.vlgmr.msra.gmra.mrb[0].mxu0 %v550_v9 }
  0xfa   : > { %v326_v10 = vpop.f32.mrb[0].mxu0 }
  0xfb   : > { %v514_v12 = vpop.f32.mrb[1].mxu0  ;;  %v361_v14 = vadd.f32 %v475_v11, %v326_v10 }
  0xfc   : > { %v329_v13 = vpop.f32.mrb[2].mxu0 }
  0xfd   : > { %v362_v15 = vadd.f32 %v475_v11, %v329_v13  ;;  %v515_v16 = vpop.f32.mrb[3].mxu0 }
  0xff   : > { %v485_v17 = vpack.c.bf16 %v362_v15, %v361_v14 }
 0x101   : > { %486 = vst [vmem:[%s217_s17] sm:$0xff] %v485_v17  }
 0x102 PF: > { %s13_s14 = sadd.s32 1, %s573_s14   ;;  %s664_s12 = smov %s569_s13 }
 0x103   : > { %p10_p5 = scmp.ge.s32.totalorder %s13_s14, 4   ;;  %s665_s13 = smov %s667_s15 }
 0x105   :  { %12 = sbr.rel (!%p10_p5) target bundleno = 2 (0x2), region = 77 }

// kernel: _lambda_.21
= control target key start
LH: loop header
LB: loop body
LE: loop exit
PB: predicated region body
PF: predicated region fallthrough
CT: control target
= control target key end

     0   :  { %s766_s15 = smov 0   ;;  %s768_s16 = smov 0   ;;  %s857_s0 = inlined_call_operand.vmem [shape: bf16[32,256], index: 0, kind: input, shape index: {}]   ;;  %s858_s1 = inlined_call_operand.vmem [shape: bf16[256,128], index: 1, kind: input, shape index: {}]   ;;  %s859_s2 = inlined_call_operand.vmem [shape: bf16[32,128], index: 2, kind: input, shape index: {}]   ;;  %s860_s3 = inlined_call_operand.vmem [shape: f32[1,128], index: 3, kind: input, shape index: {}]   ;;  %s861_s4 = inlined_call_operand.vmem [shape: bf16[32,128], index: 4, kind: output, shape index: {}]  }
   0x1   :  { %s770_s17 = smov 0  }
   0x2 LB: > { %s26_s18 = sadd.s32 1, %s735_s16  ;;  %p609_p0 = scmp.ge.s32.totalorder %s739_s17, 1  ;;  %s739_s17 = sphi %s770_s17, %s14_s17   ;;  %s735_s16 = sphi %s768_s16, %s863_s16   ;;  %s731_s15 = sphi %s766_s15, %s862_s15  }
   0x3   : > { %p28_p1 = scmp.ge.s32.totalorder %s26_s18, 2  ;;  %p205_p2 = scmp.lt.s32.totalorder %s739_s17, 3 }
   0x5   : > { %s865_s18 = smov (%p28_p1, %s26_s18), 0  ;;  %p206_p3 = pnand %p609_p0, %p205_p2 }
   0x6   : > { %v698_v0 = vld [vmem:[%s858_s1 + $0x40] sm:$0xff] (!%p206_p3)   ;;  %s610_s21 = sshll.u32 (!%p206_p3), %s731_s15, 1  ;;  %v700_v2 = vld [vmem:[%s858_s1 + $0x48] sm:$0xff] (!%p206_p3)   ;;  %v702_v4 = vld [vmem:[%s858_s1 + $0x50] sm:$0xff] (!%p206_p3)  }
   0x7   : > { %209 = sbr.rel (%p206_p3) target bundleno = 265 (0x109), region = 36  ;;  %v699_v1 = vld [vmem:[%s858_s1] sm:$0xff] (!%p206_p3)   ;;  %652 = vmatprep.subr.bf16.mxu0 (!%p206_p3), %v698_v0  ;;  %v701_v3 = vld [vmem:[%s858_s1 + $0x8] sm:$0xff] (!%p206_p3)   ;;  %p248_p4 = scmp.lt.s32.totalorder (!%p206_p3), %s610_s21, 3  ;;  %v703_v5 = vld [vmem:[%s858_s1 + $0x10] sm:$0xff] (!%p206_p3)  }
   0x8   : > { %653 = vmatpush3.bf16.msra.mxu0 (!%p206_p3), %v699_v1  ;;  %v704_v6 = vld [vmem:[%s858_s1 + $0x58] sm:$0xff] (!%p206_p3)   ;;  %v706_v8 = vld [vmem:[%s858_s1 + $0x60] sm:$0xff] (!%p206_p3)   ;;  %v708_v10 = vld [vmem:[%s858_s1 + $0x68] sm:$0xff] (!%p206_p3)  }
   0x9   : > { %654 = vmatprep.subr.bf16.mxu0 (!%p206_p3), %v700_v2  ;;  %v705_v7 = vld [vmem:[%s858_s1 + $0x18] sm:$0xff] (!%p206_p3)   ;;  %v707_v9 = vld [vmem:[%s858_s1 + $0x20] sm:$0xff] (!%p206_p3)   ;;  %v709_v12 = vld [vmem:[%s858_s1 + $0x28] sm:$0xff] (!%p206_p3)  }
   0xa   : > { %v710_v13 = vld [vmem:[%s858_s1 + $0x70] sm:$0xff] (!%p206_p3)   ;;  %v712_v15 = vld [vmem:[%s858_s1 + $0x78] sm:$0xff] (!%p206_p3)   ;;  %v635_v21 = vld [vmem:[%s860_s3] ss:$0 sm:$0xff] (!%p206_p3) }
   0xb   : > { %v711_v14 = vld [vmem:[%s858_s1 + $0x30] sm:$0xff] (!%p206_p3)   ;;  %v713_v16 = vld [vmem:[%s858_s1 + $0x38] sm:$0xff] (!%p206_p3)  }
   0xc   : > { %655 = vmatpush3.bf16.msra.mxu0 (!%p206_p3), %v701_v3 }
   0xd   : > { %656 = vmatprep.subr.bf16.mxu0 (!%p206_p3), %v702_v4 }
   0xe   : > { %s867_s21 = smov (!%p248_p4, %s610_s21), 3 }
   0xf   : > { %s640_s10 = sshll.u32 %s867_s21, 3  ;;  %s614_s8 = sshll.u32 %s867_s21, 2 }
  0x10   : > { %657 = vmatpush3.bf16.msra.mxu0 %v703_v5  ;;  %s255_s15 = scalar_lea.vmem %s857_s0, %s640_s10  ;;  %s268_s11 = scalar_lea.vmem %s859_s2, %s614_s8 }
  0x11   : > { %658 = vmatprep.subr.bf16.mxu0 %v704_v6  ;;  %v716_v11 = vld [vmem:[%s255_s15 + $0x4] ss:$8 sps:$4 sm:$0xff]   ;;  %v714_v17 = vld [vmem:[%s255_s15] ss:$8 sps:$4 sm:$0xff]   ;;  %s274_s15 = scalar_lea.vmem %s861_s4, %s614_s8 }
  0x12   : > { %449 = vmatprep.mubr.bf16.mxu0 %v716_v11  ;;  %v644_v18 = vld [vmem:[%s268_s11] sm:$0xff]  }
  0x13   : > { %v645_v23 = vunpack.c.l.bf16 %v644_v18  ;;  %v646_v28 = vunpack.c.h.bf16 %v644_v18 }
  0x14   : > { %659 = vmatpush3.bf16.msra.mxu0 %v705_v7 }
  0x15   : > { %660 = vmatprep.subr.bf16.mxu0 %v706_v8 }
  0x18   : > { %661 = vmatpush3.bf16.msra.mxu0 %v707_v9 }
  0x19   : > { %662 = vmatprep.subr.bf16.mxu0 %v708_v10 }
  0x1c   : > { %663 = vmatpush3.bf16.msra.mxu0 %v709_v12 }
  0x1d   : > { %664 = vmatprep.subr.bf16.mxu0 %v710_v13 }
  0x20   : > { %665 = vmatpush3.bf16.msra.mxu0 %v711_v14 }
  0x21   : > { %666 = vmatprep.subr.bf16.mxu0 %v712_v15 }
  0x24   : > { %667 = vmatpush3.bf16.msra.mxu0 %v713_v16 }
  0x27   : > { %450 = vmatmul.mubr.bf16.vlgmr.msra.gmra.mrb[0].mxu0 %v714_v17 }
  0xfa   : > { %v668_v19 = vpop.f32.mrb[0].mxu0 }
  0xfb   : > { %v669_v20 = vpop.f32.mrb[1].mxu0 }
  0xfc   : > { %v670_v22 = vadd.f32 %v669_v20, %v668_v19  ;;  %v671_v24 = vpop.f32.mrb[2].mxu0 }
  0xfd   : > { %v672_v25 = vpop.f32.mrb[3].mxu0 }
  0xfe   : > { %v486_v26 = vadd.f32 %v670_v22, %v635_v21  ;;  %v673_v27 = vadd.f32 %v672_v25, %v671_v24 }
 0x100   : > { %v492_v29 = vadd.f32 %v645_v23, %v486_v26  ;;  %v487_v30 = vadd.f32 %v673_v27, %v635_v21 }
 0x102   : > { %v493_v31 = vadd.f32 %v646_v28, %v487_v30  ;;  %v494_v32 = vmax.f32 %v492_v29, 0.0 }
 0x104   : > { %v495_v33 = vmax.f32 %v493_v31, 0.0 }
 0x106   : > { %v650_v34 = vpack.c.bf16 %v495_v33, %v494_v32 }
 0x108   : > { %651 = vst [vmem:[%s274_s15] sm:$0xff] %v650_v34  }
 0x109 PF: > { %s14_s17 = sadd.s32 1, %s739_s17   ;;  %s862_s15 = smov %s735_s16 }
 0x10a   : > { %p11_p5 = scmp.ge.s32.totalorder %s14_s17, 4   ;;  %s863_s16 = smov %s865_s18 }
 0x10c   :  { %13 = sbr.rel (!%p11_p5) target bundleno = 2 (0x2), region = 84 }

// kernel: _lambda_.22
= control target key start
LH: loop header
LB: loop body
LE: loop exit
PB: predicated region body
PF: predicated region fallthrough
CT: control target
= control target key end

     0   :  { %s391_s1 = inlined_call_operand.vmem [shape: bf16[256,128], index: 1, kind: input, shape index: {}]   ;;  %s392_s0 = inlined_call_operand.vmem [shape: bf16[16,256], index: 0, kind: input, shape index: {}]   ;;  %s393_s2 = inlined_call_operand.vmem [shape: f32[1,128], index: 2, kind: input, shape index: {}]   ;;  %s394_s3 = inlined_call_operand.vmem [shape: bf16[16,128], index: 3, kind: output, shape index: {}]  }
   0x1   :  { %v292_v0 = vld [vmem:[%s391_s1 + $0x40] sm:$0xff]   ;;  %v294_v2 = vld [vmem:[%s391_s1 + $0x48] sm:$0xff]   ;;  %v296_v4 = vld [vmem:[%s391_s1 + $0x50] sm:$0xff]  }
   0x2   :  { %v293_v1 = vld [vmem:[%s391_s1] sm:$0xff]   ;;  %270 = vmatprep.subr.bf16.mxu0 %v292_v0  ;;  %v295_v3 = vld [vmem:[%s391_s1 + $0x8] sm:$0xff]   ;;  %v297_v5 = vld [vmem:[%s391_s1 + $0x10] sm:$0xff]  }
   0x3   :  { %271 = vmatpush3.bf16.msra.mxu0 %v293_v1  ;;  %v298_v6 = vld [vmem:[%s391_s1 + $0x58] sm:$0xff]   ;;  %v300_v8 = vld [vmem:[%s391_s1 + $0x60] sm:$0xff]   ;;  %v302_v10 = vld [vmem:[%s391_s1 + $0x68] sm:$0xff]  }
   0x4   :  { %272 = vmatprep.subr.bf16.mxu0 %v294_v2  ;;  %v299_v7 = vld [vmem:[%s391_s1 + $0x18] sm:$0xff]   ;;  %v301_v9 = vld [vmem:[%s391_s1 + $0x20] sm:$0xff]   ;;  %v303_v12 = vld [vmem:[%s391_s1 + $0x28] sm:$0xff]  }
   0x5   :  { %v310_v11 = vld [vmem:[%s392_s0 + $0x4] ss:$8 sps:$4 sm:$0xff]   ;;  %v304_v13 = vld [vmem:[%s391_s1 + $0x70] sm:$0xff]   ;;  %v306_v15 = vld [vmem:[%s391_s1 + $0x78] sm:$0xff]  }
   0x6   :  { %187 = vmatprep.mubr.bf16.mxu0 %v310_v11  ;;  %v305_v14 = vld [vmem:[%s391_s1 + $0x30] sm:$0xff]   ;;  %v307_v16 = vld [vmem:[%s391_s1 + $0x38] sm:$0xff]   ;;  %v308_v17 = vld [vmem:[%s392_s0] ss:$8 sps:$4 sm:$0xff]  }
   0x7   :  { %273 = vmatpush3.bf16.msra.mxu0 %v295_v3  ;;  %v260_v20 = vld [vmem:[%s393_s2] ss:$0 sm:$0xff] }
   0x8   :  { %274 = vmatprep.subr.bf16.mxu0 %v296_v4 }
   0xb   :  { %275 = vmatpush3.bf16.msra.mxu0 %v297_v5 }
   0xc   :  { %276 = vmatprep.subr.bf16.mxu0 %v298_v6 }
   0xf   :  { %277 = vmatpush3.bf16.msra.mxu0 %v299_v7 }
  0x10   :  { %278 = vmatprep.subr.bf16.mxu0 %v300_v8 }
  0x13   :  { %279 = vmatpush3.bf16.msra.mxu0 %v301_v9 }
  0x14   :  { %280 = vmatprep.subr.bf16.mxu0 %v302_v10 }
  0x17   :  { %281 = vmatpush3.bf16.msra.mxu0 %v303_v12 }
  0x18   :  { %282 = vmatprep.subr.bf16.mxu0 %v304_v13 }
  0x1b   :  { %283 = vmatpush3.bf16.msra.mxu0 %v305_v14 }
  0x1c   :  { %284 = vmatprep.subr.bf16.mxu0 %v306_v15 }
  0x1f   :  { %285 = vmatpush3.bf16.msra.mxu0 %v307_v16 }
  0x22   :  { %188 = vmatmul.mubr.bf16.vlgmr.msra.gmra.mrb[0].mxu0 %v308_v17 }
  0xf5   :  { %v286_v18 = vpop.f32.mrb[0].mxu0 }
  0xf6   :  { %v287_v19 = vpop.f32.mrb[1].mxu0 }
  0xf7   :  { %v288_v21 = vadd.f32 %v287_v19, %v286_v18  ;;  %v289_v22 = vpop.f32.mrb[2].mxu0 }
  0xf8   :  { %v290_v23 = vpop.f32.mrb[3].mxu0 }
  0xf9   :  { %v224_v24 = vadd.f32 %v288_v21, %v260_v20  ;;  %v291_v25 = vadd.f32 %v290_v23, %v289_v22 }
  0xfb   :  { %v225_v26 = vadd.f32 %v291_v25, %v260_v20  ;;  %v226_v27 = vmax.f32 %v224_v24, 0.0 }
  0xfd   :  { %v227_v28 = vmax.f32 %v225_v26, 0.0 }
  0xff   :  { %v268_v29 = vpack.c.bf16 %v227_v28, %v226_v27 }
 0x101   :  { %269 = vst [vmem:[%s394_s3] sm:$0xff] %v268_v29  }

// kernel: _lambda_.23
= control target key start
LH: loop header
LB: loop body
LE: loop exit
PB: predicated region body
PF: predicated region fallthrough
CT: control target
= control target key end

     0   :  { %v231_v0 = vmov 0.0   ;;  %vm232_vm0 = vmmov 0   ;;  %s286_s1 = inlined_call_operand.vmem [shape: bf16[128,128], index: 1, kind: input, shape index: {}]   ;;  %s287_s0 = inlined_call_operand.vmem [shape: bf16[16,128], index: 0, kind: input, shape index: {}]   ;;  %s288_s2 = inlined_call_operand.vmem [shape: f32[1,128], index: 2, kind: input, shape index: {}]   ;;  %s289_s3 = inlined_call_operand.vmem [shape: bf16[16,128], index: 3, kind: output, shape index: {}]  }
   0x1   :  { %200 = vmatprep.subr.bf16.mxu0 %v231_v0  ;;  %v222_v1 = vld [vmem:[%s286_s1] sm:$0xff]   ;;  %216 = vmatprep.mubr.msk.bf16.mxu0 %vm232_vm0, %v231_v0  ;;  %v223_v2 = vld [vmem:[%s286_s1 + $0x8] sm:$0xff]   ;;  %v224_v3 = vld [vmem:[%s286_s1 + $0x10] sm:$0xff]  }
   0x2   :  { %201 = vmatpush3.bf16.msra.mxu0 %v222_v1  ;;  %v225_v4 = vld [vmem:[%s286_s1 + $0x18] sm:$0xff]   ;;  %v226_v5 = vld [vmem:[%s286_s1 + $0x20] sm:$0xff]   ;;  %v227_v6 = vld [vmem:[%s286_s1 + $0x28] sm:$0xff]  }
   0x3   :  { %202 = vmatprep.subr.bf16.mxu0 %v231_v0  ;;  %v228_v7 = vld [vmem:[%s286_s1 + $0x30] sm:$0xff]   ;;  %v229_v8 = vld [vmem:[%s286_s1 + $0x38] sm:$0xff]   ;;  %v230_v9 = vld [vmem:[%s287_s0] sm:$0xff]  }
   0x4   :  { %v181_v11 = vld [vmem:[%s288_s2] ss:$0 sm:$0xff] }
   0x6   :  { %203 = vmatpush3.bf16.msra.mxu0 %v223_v2 }
   0x7   :  { %204 = vmatprep.subr.bf16.mxu0 %v231_v0 }
   0xa   :  { %205 = vmatpush3.bf16.msra.mxu0 %v224_v3 }
   0xb   :  { %206 = vmatprep.subr.bf16.mxu0 %v231_v0 }
   0xe   :  { %207 = vmatpush3.bf16.msra.mxu0 %v225_v4 }
   0xf   :  { %208 = vmatprep.subr.bf16.mxu0 %v231_v0 }
  0x12   :  { %209 = vmatpush3.bf16.msra.mxu0 %v226_v5 }
  0x13   :  { %210 = vmatprep.subr.bf16.mxu0 %v231_v0 }
  0x16   :  { %211 = vmatpush3.bf16.msra.mxu0 %v227_v6 }
  0x17   :  { %212 = vmatprep.subr.bf16.mxu0 %v231_v0 }
  0x1a   :  { %213 = vmatpush3.bf16.msra.mxu0 %v228_v7 }
  0x1b   :  { %214 = vmatprep.subr.bf16.mxu0 %v231_v0 }
  0x1e   :  { %215 = vmatpush3.bf16.msra.mxu0 %v229_v8 }
  0x21   :  { %217 = vmatmul.mubr.bf16.vlgmr.msra.gmra.mrb[0].mxu0 %v230_v9 }
  0xf4   :  { %v121_v10 = vpop.f32.mrb[0].mxu0 }
  0xf5   :  { %v218_v12 = vpop.f32.mrb[1].mxu0  ;;  %v156_v14 = vadd.f32 %v181_v11, %v121_v10 }
  0xf6   :  { %v124_v13 = vpop.f32.mrb[2].mxu0 }
  0xf7   :  { %v157_v15 = vadd.f32 %v181_v11, %v124_v13  ;;  %v219_v16 = vpop.f32.mrb[3].mxu0 }
  0xf9   :  { %v189_v17 = vpack.c.bf16 %v157_v15, %v156_v14 }
  0xfb   :  { %190 = vst [vmem:[%s289_s3] sm:$0xff] %v189_v17  }

// kernel: _lambda_.24
= control target key start
LH: loop header
LB: loop body
LE: loop exit
PB: predicated region body
PF: predicated region fallthrough
CT: control target
= control target key end

     0   :  { %v486_v1 = vmov 0.0   ;;  %vm487_vm0 = vmmov 0   ;;  %s603_s1 = inlined_call_operand.vmem [shape: bf16[384,128], index: 1, kind: input, shape index: {}]   ;;  %s604_s0 = inlined_call_operand.vmem [shape: bf16[16,384], index: 0, kind: input, shape index: {}]   ;;  %s605_s2 = inlined_call_operand.vmem [shape: bf16[16,128], index: 2, kind: input, shape index: {}]   ;;  %s606_s3 = inlined_call_operand.vmem [shape: f32[1,128], index: 3, kind: input, shape index: {}]   ;;  %s607_s4 = inlined_call_operand.vmem [shape: bf16[16,128], index: 4, kind: output, shape index: {}]  }
   0x1   :  { %v458_v0 = vld [vmem:[%s603_s1 + $0x40] sm:$0xff]   ;;  %436 = vmatprep.subr.bf16.mxu1 %v486_v1  ;;  %452 = vmatprep.mubr.msk.bf16.mxu1 %vm487_vm0, %v486_v1  ;;  %v461_v4 = vld [vmem:[%s603_s1 + $0x48] sm:$0xff]   ;;  %v464_v7 = vld [vmem:[%s603_s1 + $0x50] sm:$0xff]  }
   0x2   :  { %v459_v2 = vld [vmem:[%s603_s1] sm:$0xff]   ;;  %405 = vmatprep.subr.bf16.mxu0 %v458_v0  ;;  %v462_v5 = vld [vmem:[%s603_s1 + $0x8] sm:$0xff]   ;;  %v465_v8 = vld [vmem:[%s603_s1 + $0x10] sm:$0xff]  }
   0x3   :  { %v460_v3 = vld [vmem:[%s603_s1 + $0x80] sm:$0xff]   ;;  %406 = vmatpush3.bf16.msra.mxu0 %v459_v2  ;;  %v463_v6 = vld [vmem:[%s603_s1 + $0x88] sm:$0xff]   ;;  %v466_v9 = vld [vmem:[%s603_s1 + $0x90] sm:$0xff]  }
   0x4   :  { %437 = vmatpush3.bf16.msra.mxu1 %v460_v3  ;;  %407 = vmatprep.subr.bf16.mxu0 %v461_v4  ;;  %v467_v10 = vld [vmem:[%s603_s1 + $0x58] sm:$0xff]   ;;  %v470_v13 = vld [vmem:[%s603_s1 + $0x60] sm:$0xff]   ;;  %v473_v16 = vld [vmem:[%s603_s1 + $0x68] sm:$0xff]  }
   0x5   :  { %438 = vmatprep.subr.bf16.mxu1 %v486_v1  ;;  %v468_v11 = vld [vmem:[%s603_s1 + $0x18] sm:$0xff]   ;;  %v471_v14 = vld [vmem:[%s603_s1 + $0x20] sm:$0xff]   ;;  %v474_v17 = vld [vmem:[%s603_s1 + $0x28] sm:$0xff]  }
   0x6   :  { %v469_v12 = vld [vmem:[%s603_s1 + $0x98] sm:$0xff]   ;;  %v472_v15 = vld [vmem:[%s603_s1 + $0xa0] sm:$0xff]   ;;  %v475_v18 = vld [vmem:[%s603_s1 + $0xa8] sm:$0xff]  }
   0x7   :  { %408 = vmatpush3.bf16.msra.mxu0 %v462_v5  ;;  %v476_v19 = vld [vmem:[%s603_s1 + $0x70] sm:$0xff]   ;;  %v479_v22 = vld [vmem:[%s603_s1 + $0x78] sm:$0xff]   ;;  %v482_v26 = vld [vmem:[%s604_s0] ss:$12 sps:$4 sm:$0xff]  }
   0x8   :  { %439 = vmatpush3.bf16.msra.mxu1 %v463_v6  ;;  %409 = vmatprep.subr.bf16.mxu0 %v464_v7  ;;  %v477_v20 = vld [vmem:[%s603_s1 + $0x30] sm:$0xff]   ;;  %v480_v24 = vld [vmem:[%s603_s1 + $0x38] sm:$0xff]   ;;  %v397_v31 = vld [vmem:[%s605_s2] sm:$0xff]  }
   0x9   :  { %440 = vmatprep.subr.bf16.mxu1 %v486_v1  ;;  %v478_v21 = vld [vmem:[%s603_s1 + $0xb0] sm:$0xff]   ;;  %v481_v25 = vld [vmem:[%s603_s1 + $0xb8] sm:$0xff]   ;;  %v391_v35 = vld [vmem:[%s606_s3] ss:$0 sm:$0xff]  ;;  %v398_v39 = vunpack.c.l.bf16 %v397_v31  ;;  %v399_v44 = vunpack.c.h.bf16 %v397_v31 }
   0xa   :  { %v484_v23 = vld [vmem:[%s604_s0 + $0x4] ss:$12 sps:$4 sm:$0xff]   ;;  %v485_v27 = vld [vmem:[%s604_s0 + $0x8] ss:$12 sps:$4 sm:$0xff]  }
   0xb   :  { %410 = vmatpush3.bf16.msra.mxu0 %v465_v8  ;;  %262 = vmatprep.mubr.bf16.mxu0 %v484_v23 }
   0xc   :  { %441 = vmatpush3.bf16.msra.mxu1 %v466_v9  ;;  %411 = vmatprep.subr.bf16.mxu0 %v467_v10 }
   0xd   :  { %442 = vmatprep.subr.bf16.mxu1 %v486_v1 }
   0xf   :  { %412 = vmatpush3.bf16.msra.mxu0 %v468_v11 }
  0x10   :  { %443 = vmatpush3.bf16.msra.mxu1 %v469_v12  ;;  %413 = vmatprep.subr.bf16.mxu0 %v470_v13 }
  0x11   :  { %444 = vmatprep.subr.bf16.mxu1 %v486_v1 }
  0x13   :  { %414 = vmatpush3.bf16.msra.mxu0 %v471_v14 }
  0x14   :  { %445 = vmatpush3.bf16.msra.mxu1 %v472_v15  ;;  %415 = vmatprep.subr.bf16.mxu0 %v473_v16 }
  0x15   :  { %446 = vmatprep.subr.bf16.mxu1 %v486_v1 }
  0x17   :  { %416 = vmatpush3.bf16.msra.mxu0 %v474_v17 }
  0x18   :  { %447 = vmatpush3.bf16.msra.mxu1 %v475_v18  ;;  %417 = vmatprep.subr.bf16.mxu0 %v476_v19 }
  0x19   :  { %448 = vmatprep.subr.bf16.mxu1 %v486_v1 }
  0x1b   :  { %418 = vmatpush3.bf16.msra.mxu0 %v477_v20 }
  0x1c   :  { %449 = vmatpush3.bf16.msra.mxu1 %v478_v21  ;;  %419 = vmatprep.subr.bf16.mxu0 %v479_v22 }
  0x1d   :  { %450 = vmatprep.subr.bf16.mxu1 %v486_v1 }
  0x1f   :  { %420 = vmatpush3.bf16.msra.mxu0 %v480_v24 }
  0x20   :  { %451 = vmatpush3.bf16.msra.mxu1 %v481_v25 }
  0x22   :  { %263 = vmatmul.mubr.bf16.vlgmr.msra.gmra.mrb[0].mxu0 %v482_v26 }
  0x23   :  { %453 = vmatmul.mubr.bf16.vlgmr.msra.gmra.mrb[0].mxu1 %v485_v27 }
  0xf5   :  { %v421_v28 = vpop.f32.mrb[0].mxu0 }
  0xf6   :  { %v305_v29 = vpop.f32.mrb[0].mxu1  ;;  %v422_v30 = vpop.f32.mrb[1].mxu0 }
  0xf7   :  { %v423_v32 = vadd.f32 %v422_v30, %v421_v28  ;;  %v454_v33 = vpop.f32.mrb[1].mxu1  ;;  %v424_v34 = vpop.f32.mrb[2].mxu0 }
  0xf8   :  { %v308_v36 = vpop.f32.mrb[2].mxu1  ;;  %v425_v37 = vpop.f32.mrb[3].mxu0 }
  0xf9   :  { %v306_v38 = vadd.f32 %v423_v32, %v305_v29  ;;  %v426_v40 = vadd.f32 %v425_v37, %v424_v34  ;;  %v455_v41 = vpop.f32.mrb[3].mxu1 }
  0xfb   :  { %v340_v42 = vadd.f32 %v391_v35, %v306_v38  ;;  %v309_v43 = vadd.f32 %v426_v40, %v308_v36 }
  0xfd   :  { %v346_v45 = vadd.f32 %v398_v39, %v340_v42  ;;  %v341_v46 = vadd.f32 %v391_v35, %v309_v43 }
  0xff   :  { %v347_v47 = vadd.f32 %v399_v44, %v341_v46  ;;  %v348_v48 = vmax.f32 %v346_v45, 0.0 }
 0x101   :  { %v349_v49 = vmax.f32 %v347_v47, 0.0 }
 0x103   :  { %v403_v50 = vpack.c.bf16 %v349_v49, %v348_v48 }
 0x105   :  { %404 = vst [vmem:[%s607_s4] sm:$0xff] %v403_v50  }

// kernel: _lambda_.25
= control target key start
LH: loop header
LB: loop body
LE: loop exit
PB: predicated region body
PF: predicated region fallthrough
CT: control target
= control target key end

     0   :  { %v473_v1 = vmov 0.0   ;;  %vm474_vm0 = vmmov 0   ;;  %s582_s1 = inlined_call_operand.vmem [shape: bf16[384,128], index: 1, kind: input, shape index: {}]   ;;  %s583_s0 = inlined_call_operand.vmem [shape: bf16[16,384], index: 0, kind: input, shape index: {}]   ;;  %s584_s2 = inlined_call_operand.vmem [shape: f32[1,128], index: 2, kind: input, shape index: {}]   ;;  %s585_s3 = inlined_call_operand.vmem [shape: bf16[16,128], index: 3, kind: output, shape index: {}]  }
   0x1   :  { %v445_v0 = vld [vmem:[%s582_s1 + $0x40] sm:$0xff]   ;;  %423 = vmatprep.subr.bf16.mxu1 %v473_v1  ;;  %439 = vmatprep.mubr.msk.bf16.mxu1 %vm474_vm0, %v473_v1  ;;  %v448_v4 = vld [vmem:[%s582_s1 + $0x48] sm:$0xff]   ;;  %v451_v7 = vld [vmem:[%s582_s1 + $0x50] sm:$0xff]  }
   0x2   :  { %v446_v2 = vld [vmem:[%s582_s1] sm:$0xff]   ;;  %392 = vmatprep.subr.bf16.mxu0 %v445_v0  ;;  %v449_v5 = vld [vmem:[%s582_s1 + $0x8] sm:$0xff]   ;;  %v452_v8 = vld [vmem:[%s582_s1 + $0x10] sm:$0xff]  }
   0x3   :  { %v447_v3 = vld [vmem:[%s582_s1 + $0x80] sm:$0xff]   ;;  %393 = vmatpush3.bf16.msra.mxu0 %v446_v2  ;;  %v450_v6 = vld [vmem:[%s582_s1 + $0x88] sm:$0xff]   ;;  %v453_v9 = vld [vmem:[%s582_s1 + $0x90] sm:$0xff]  }
   0x4   :  { %424 = vmatpush3.bf16.msra.mxu1 %v447_v3  ;;  %394 = vmatprep.subr.bf16.mxu0 %v448_v4  ;;  %v454_v10 = vld [vmem:[%s582_s1 + $0x58] sm:$0xff]   ;;  %v457_v13 = vld [vmem:[%s582_s1 + $0x60] sm:$0xff]   ;;  %v460_v16 = vld [vmem:[%s582_s1 + $0x68] sm:$0xff]  }
   0x5   :  { %425 = vmatprep.subr.bf16.mxu1 %v473_v1  ;;  %v455_v11 = vld [vmem:[%s582_s1 + $0x18] sm:$0xff]   ;;  %v458_v14 = vld [vmem:[%s582_s1 + $0x20] sm:$0xff]   ;;  %v461_v17 = vld [vmem:[%s582_s1 + $0x28] sm:$0xff]  }
   0x6   :  { %v456_v12 = vld [vmem:[%s582_s1 + $0x98] sm:$0xff]   ;;  %v459_v15 = vld [vmem:[%s582_s1 + $0xa0] sm:$0xff]   ;;  %v462_v18 = vld [vmem:[%s582_s1 + $0xa8] sm:$0xff]  }
   0x7   :  { %395 = vmatpush3.bf16.msra.mxu0 %v449_v5  ;;  %v463_v19 = vld [vmem:[%s582_s1 + $0x70] sm:$0xff]   ;;  %v466_v22 = vld [vmem:[%s582_s1 + $0x78] sm:$0xff]   ;;  %v469_v26 = vld [vmem:[%s583_s0] ss:$12 sps:$4 sm:$0xff]  }
   0x8   :  { %426 = vmatpush3.bf16.msra.mxu1 %v450_v6  ;;  %396 = vmatprep.subr.bf16.mxu0 %v451_v7  ;;  %v464_v20 = vld [vmem:[%s582_s1 + $0x30] sm:$0xff]   ;;  %v467_v24 = vld [vmem:[%s582_s1 + $0x38] sm:$0xff]   ;;  %v382_v34 = vld [vmem:[%s584_s2] ss:$0 sm:$0xff] }
   0x9   :  { %427 = vmatprep.subr.bf16.mxu1 %v473_v1  ;;  %v465_v21 = vld [vmem:[%s582_s1 + $0xb0] sm:$0xff]   ;;  %v468_v25 = vld [vmem:[%s582_s1 + $0xb8] sm:$0xff]  }
   0xa   :  { %v471_v23 = vld [vmem:[%s583_s0 + $0x4] ss:$12 sps:$4 sm:$0xff]   ;;  %v472_v27 = vld [vmem:[%s583_s0 + $0x8] ss:$12 sps:$4 sm:$0xff]  }
   0xb   :  { %397 = vmatpush3.bf16.msra.mxu0 %v452_v8  ;;  %259 = vmatprep.mubr.bf16.mxu0 %v471_v23 }
   0xc   :  { %428 = vmatpush3.bf16.msra.mxu1 %v453_v9  ;;  %398 = vmatprep.subr.bf16.mxu0 %v454_v10 }
   0xd   :  { %429 = vmatprep.subr.bf16.mxu1 %v473_v1 }
   0xf   :  { %399 = vmatpush3.bf16.msra.mxu0 %v455_v11 }
  0x10   :  { %430 = vmatpush3.bf16.msra.mxu1 %v456_v12  ;;  %400 = vmatprep.subr.bf16.mxu0 %v457_v13 }
  0x11   :  { %431 = vmatprep.subr.bf16.mxu1 %v473_v1 }
  0x13   :  { %401 = vmatpush3.bf16.msra.mxu0 %v458_v14 }
  0x14   :  { %432 = vmatpush3.bf16.msra.mxu1 %v459_v15  ;;  %402 = vmatprep.subr.bf16.mxu0 %v460_v16 }
  0x15   :  { %433 = vmatprep.subr.bf16.mxu1 %v473_v1 }
  0x17   :  { %403 = vmatpush3.bf16.msra.mxu0 %v461_v17 }
  0x18   :  { %434 = vmatpush3.bf16.msra.mxu1 %v462_v18  ;;  %404 = vmatprep.subr.bf16.mxu0 %v463_v19 }
  0x19   :  { %435 = vmatprep.subr.bf16.mxu1 %v473_v1 }
  0x1b   :  { %405 = vmatpush3.bf16.msra.mxu0 %v464_v20 }
  0x1c   :  { %436 = vmatpush3.bf16.msra.mxu1 %v465_v21  ;;  %406 = vmatprep.subr.bf16.mxu0 %v466_v22 }
  0x1d   :  { %437 = vmatprep.subr.bf16.mxu1 %v473_v1 }
  0x1f   :  { %407 = vmatpush3.bf16.msra.mxu0 %v467_v24 }
  0x20   :  { %438 = vmatpush3.bf16.msra.mxu1 %v468_v25 }
  0x22   :  { %260 = vmatmul.mubr.bf16.vlgmr.msra.gmra.mrb[0].mxu0 %v469_v26 }
  0x23   :  { %440 = vmatmul.mubr.bf16.vlgmr.msra.gmra.mrb[0].mxu1 %v472_v27 }
  0xf5   :  { %v408_v28 = vpop.f32.mrb[0].mxu0 }
  0xf6   :  { %v302_v29 = vpop.f32.mrb[0].mxu1  ;;  %v409_v30 = vpop.f32.mrb[1].mxu0 }
  0xf7   :  { %v410_v31 = vadd.f32 %v409_v30, %v408_v28  ;;  %v441_v32 = vpop.f32.mrb[1].mxu1  ;;  %v411_v33 = vpop.f32.mrb[2].mxu0 }
  0xf8   :  { %v305_v35 = vpop.f32.mrb[2].mxu1  ;;  %v412_v36 = vpop.f32.mrb[3].mxu0 }
  0xf9   :  { %v303_v37 = vadd.f32 %v410_v31, %v302_v29  ;;  %v413_v38 = vadd.f32 %v412_v36, %v411_v33  ;;  %v442_v39 = vpop.f32.mrb[3].mxu1 }
  0xfb   :  { %v337_v40 = vadd.f32 %v382_v34, %v303_v37  ;;  %v306_v41 = vadd.f32 %v413_v38, %v305_v35 }
  0xfd   :  { %v338_v42 = vadd.f32 %v382_v34, %v306_v41  ;;  %v339_v43 = vmax.f32 %v337_v40, 0.0 }
  0xff   :  { %v340_v44 = vmax.f32 %v338_v42, 0.0 }
 0x101   :  { %v390_v45 = vpack.c.bf16 %v340_v44, %v339_v43 }
 0x103   :  { %391 = vst [vmem:[%s585_s3] sm:$0xff] %v390_v45  }

// kernel: _lambda_.27
= control target key start
LH: loop header
LB: loop body
LE: loop exit
PB: predicated region body
PF: predicated region fallthrough
CT: control target
= control target key end

     0   :  { %v726_v34 = vmov 0.0   ;;  %vm727_vm0 = vmmov 0   ;;  %s897_s1 = inlined_call_operand.vmem [shape: bf16[640,128], index: 1, kind: input, shape index: {}]   ;;  %s898_s0 = inlined_call_operand.vmem [shape: bf16[16,640], index: 0, kind: input, shape index: {}]   ;;  %s899_s2 = inlined_call_operand.vmem [shape: bf16[16,128], index: 2, kind: input, shape index: {}]   ;;  %s900_s3 = inlined_call_operand.vmem [shape: f32[1,128], index: 3, kind: input, shape index: {}]   ;;  %s901_s4 = inlined_call_operand.vmem [shape: bf16[16,128], index: 4, kind: output, shape index: {}]  }
   0x1   :  { %v679_v0 = vld [vmem:[%s897_s1 + $0x40] sm:$0xff]   ;;  %v683_v4 = vld [vmem:[%s897_s1 + $0x48] sm:$0xff]   ;;  %v687_v8 = vld [vmem:[%s897_s1 + $0x50] sm:$0xff]  }
   0x2   :  { %v680_v1 = vld [vmem:[%s897_s1 + $0xc0] sm:$0xff]   ;;  %604 = vmatprep.subr.bf16.mxu0 %v679_v0  ;;  %v684_v5 = vld [vmem:[%s897_s1 + $0xc8] sm:$0xff]   ;;  %v688_v9 = vld [vmem:[%s897_s1 + $0xd0] sm:$0xff]  }
   0x3   :  { %v681_v2 = vld [vmem:[%s897_s1] sm:$0xff]   ;;  %626 = vmatprep.subr.bf16.mxu1 %v680_v1  ;;  %v685_v6 = vld [vmem:[%s897_s1 + $0x8] sm:$0xff]   ;;  %v689_v10 = vld [vmem:[%s897_s1 + $0x10] sm:$0xff]  }
   0x4   :  { %v682_v3 = vld [vmem:[%s897_s1 + $0x80] sm:$0xff]   ;;  %605 = vmatpush3.bf16.msra.mxu0 %v681_v2  ;;  %v686_v7 = vld [vmem:[%s897_s1 + $0x88] sm:$0xff]   ;;  %v690_v11 = vld [vmem:[%s897_s1 + $0x90] sm:$0xff]  }
   0x5   :  { %627 = vmatpush3.bf16.msra.mxu1 %v682_v3  ;;  %606 = vmatprep.subr.bf16.mxu0 %v683_v4  ;;  %v691_v12 = vld [vmem:[%s897_s1 + $0x58] sm:$0xff]   ;;  %v695_v16 = vld [vmem:[%s897_s1 + $0x60] sm:$0xff]   ;;  %v699_v20 = vld [vmem:[%s897_s1 + $0x68] sm:$0xff]  }
   0x6   :  { %628 = vmatprep.subr.bf16.mxu1 %v684_v5  ;;  %v692_v13 = vld [vmem:[%s897_s1 + $0xd8] sm:$0xff]   ;;  %v696_v17 = vld [vmem:[%s897_s1 + $0xe0] sm:$0xff]   ;;  %v700_v21 = vld [vmem:[%s897_s1 + $0xe8] sm:$0xff]  }
   0x7   :  { %v693_v14 = vld [vmem:[%s897_s1 + $0x18] sm:$0xff]   ;;  %v697_v18 = vld [vmem:[%s897_s1 + $0x20] sm:$0xff]   ;;  %v701_v22 = vld [vmem:[%s897_s1 + $0x28] sm:$0xff]  }
   0x8   :  { %607 = vmatpush3.bf16.msra.mxu0 %v685_v6  ;;  %v694_v15 = vld [vmem:[%s897_s1 + $0x98] sm:$0xff]   ;;  %v698_v19 = vld [vmem:[%s897_s1 + $0xa0] sm:$0xff]   ;;  %v702_v23 = vld [vmem:[%s897_s1 + $0xa8] sm:$0xff]  }
   0x9   :  { %629 = vmatpush3.bf16.msra.mxu1 %v686_v7  ;;  %608 = vmatprep.subr.bf16.mxu0 %v687_v8  ;;  %v703_v24 = vld [vmem:[%s897_s1 + $0x70] sm:$0xff]   ;;  %v707_v28 = vld [vmem:[%s897_s1 + $0x78] sm:$0xff]   ;;  %v716_v36 = vld [vmem:[%s898_s0 + $0xc] ss:$20 sps:$4 sm:$0xff]  }
   0xa   :  { %630 = vmatprep.subr.bf16.mxu1 %v688_v9  ;;  %v704_v25 = vld [vmem:[%s897_s1 + $0xf0] sm:$0xff]   ;;  %v708_v29 = vld [vmem:[%s897_s1 + $0xf8] sm:$0xff]   ;;  %v717_v37 = vld [vmem:[%s897_s1 + $0x100] sm:$0xff]   ;;  %443 = vmatprep.mubr.bf16.mxu1 %v716_v36 }
   0xb   :  { %v705_v26 = vld [vmem:[%s897_s1 + $0x30] sm:$0xff]   ;;  %v709_v30 = vld [vmem:[%s897_s1 + $0x38] sm:$0xff]   ;;  %v718_v38 = vld [vmem:[%s897_s1 + $0x108] sm:$0xff]  }
   0xc   :  { %609 = vmatpush3.bf16.msra.mxu0 %v689_v10  ;;  %v706_v27 = vld [vmem:[%s897_s1 + $0xb0] sm:$0xff]   ;;  %v710_v31 = vld [vmem:[%s897_s1 + $0xb8] sm:$0xff]   ;;  %v721_v41 = vld [vmem:[%s897_s1 + $0x120] sm:$0xff]  }
   0xd   :  { %631 = vmatpush3.bf16.msra.mxu1 %v690_v11  ;;  %610 = vmatprep.subr.bf16.mxu0 %v691_v12  ;;  %v711_v32 = vld [vmem:[%s898_s0] ss:$20 sps:$4 sm:$0xff]   ;;  %v713_v33 = vld [vmem:[%s898_s0 + $0x4] ss:$20 sps:$4 sm:$0xff]   ;;  %v714_v35 = vld [vmem:[%s898_s0 + $0x8] ss:$20 sps:$4 sm:$0xff]  }
   0xe   :  { %632 = vmatprep.subr.bf16.mxu1 %v692_v13  ;;  %402 = vmatprep.mubr.bf16.mxu0 %v713_v33  ;;  %v719_v39 = vld [vmem:[%s897_s1 + $0x110] sm:$0xff]   ;;  %v720_v40 = vld [vmem:[%s897_s1 + $0x118] sm:$0xff]   ;;  %v722_v42 = vld [vmem:[%s897_s1 + $0x128] sm:$0xff]  }
   0xf   :  { %v723_v43 = vld [vmem:[%s897_s1 + $0x130] sm:$0xff]   ;;  %v724_v44 = vld [vmem:[%s897_s1 + $0x138] sm:$0xff]   ;;  %v596_v60 = vld [vmem:[%s899_s2] sm:$0xff]  }
  0x10   :  { %611 = vmatpush3.bf16.msra.mxu0 %v693_v14  ;;  %v725_v45 = vld [vmem:[%s898_s0 + $0x10] ss:$20 sps:$4 sm:$0xff]   ;;  %v590_v62 = vld [vmem:[%s900_s3] ss:$0 sm:$0xff]  ;;  %v597_v0 = vunpack.c.l.bf16 %v596_v60  ;;  %v598_v5 = vunpack.c.h.bf16 %v596_v60 }
  0x11   :  { %633 = vmatpush3.bf16.msra.mxu1 %v694_v15  ;;  %612 = vmatprep.subr.bf16.mxu0 %v695_v16 }
  0x12   :  { %634 = vmatprep.subr.bf16.mxu1 %v696_v17 }
  0x14   :  { %613 = vmatpush3.bf16.msra.mxu0 %v697_v18 }
  0x15   :  { %635 = vmatpush3.bf16.msra.mxu1 %v698_v19  ;;  %614 = vmatprep.subr.bf16.mxu0 %v699_v20 }
  0x16   :  { %636 = vmatprep.subr.bf16.mxu1 %v700_v21 }
  0x18   :  { %615 = vmatpush3.bf16.msra.mxu0 %v701_v22 }
  0x19   :  { %637 = vmatpush3.bf16.msra.mxu1 %v702_v23  ;;  %616 = vmatprep.subr.bf16.mxu0 %v703_v24 }
  0x1a   :  { %638 = vmatprep.subr.bf16.mxu1 %v704_v25 }
  0x1c   :  { %617 = vmatpush3.bf16.msra.mxu0 %v705_v26 }
  0x1d   :  { %639 = vmatpush3.bf16.msra.mxu1 %v706_v27  ;;  %618 = vmatprep.subr.bf16.mxu0 %v707_v28 }
  0x1e   :  { %640 = vmatprep.subr.bf16.mxu1 %v708_v29 }
  0x20   :  { %619 = vmatpush3.bf16.msra.mxu0 %v709_v30 }
  0x21   :  { %641 = vmatpush3.bf16.msra.mxu1 %v710_v31  ;;  %657 = vmatprep.subr.bf16.mxu0 %v726_v34 }
  0x23   :  { %403 = vmatmul.mubr.bf16.vlgmr.msra.gmra.mrb[0].mxu0 %v711_v32 }
  0x24   :  { %444 = vmatmul.mubr.bf16.vlgmr.msra.gmra.mrb[0].mxu1 %v714_v35  ;;  %658 = vmatpush3.bf16.msra.mxu0 %v717_v37 }
  0x25   :  { %659 = vmatprep.subr.bf16.mxu0 %v726_v34  ;;  %673 = vmatprep.mubr.msk.bf16.mxu0 %vm727_vm0, %v726_v34 }
  0x28   :  { %660 = vmatpush3.bf16.msra.mxu0 %v718_v38 }
  0x29   :  { %661 = vmatprep.subr.bf16.mxu0 %v726_v34 }
  0x2c   :  { %662 = vmatpush3.bf16.msra.mxu0 %v719_v39 }
  0x2d   :  { %663 = vmatprep.subr.bf16.mxu0 %v726_v34 }
  0x30   :  { %664 = vmatpush3.bf16.msra.mxu0 %v720_v40 }
  0x31   :  { %665 = vmatprep.subr.bf16.mxu0 %v726_v34 }
  0x34   :  { %666 = vmatpush3.bf16.msra.mxu0 %v721_v41 }
  0x35   :  { %667 = vmatprep.subr.bf16.mxu0 %v726_v34 }
  0x38   :  { %668 = vmatpush3.bf16.msra.mxu0 %v722_v42 }
  0x39   :  { %669 = vmatprep.subr.bf16.mxu0 %v726_v34 }
  0x3c   :  { %670 = vmatpush3.bf16.msra.mxu0 %v723_v43 }
  0x3d   :  { %671 = vmatprep.subr.bf16.mxu0 %v726_v34 }
  0x40   :  { %672 = vmatpush3.bf16.msra.mxu0 %v724_v44 }
  0x43   :  { %674 = vmatmul.mubr.bf16.vlgmr.msra.gmra.mrb[4].mxu0 %v725_v45 }
  0xf6   :  { %v620_v46 = vpop.f32.mrb[0].mxu0 }
  0xf7   :  { %v642_v47 = vpop.f32.mrb[0].mxu1  ;;  %v621_v48 = vpop.f32.mrb[1].mxu0 }
  0xf8   :  { %v622_v49 = vadd.f32 %v621_v48, %v620_v46  ;;  %v643_v50 = vpop.f32.mrb[1].mxu1  ;;  %v623_v51 = vpop.f32.mrb[2].mxu0 }
  0xf9   :  { %v644_v52 = vadd.f32 %v643_v50, %v642_v47  ;;  %v645_v53 = vpop.f32.mrb[2].mxu1  ;;  %v624_v54 = vpop.f32.mrb[3].mxu0 }
  0xfa   :  { %v625_v55 = vadd.f32 %v624_v54, %v623_v51  ;;  %v646_v56 = vpop.f32.mrb[3].mxu1 }
  0xfb   :  { %v647_v57 = vadd.f32 %v646_v56, %v645_v53  ;;  %v446_v58 = vadd.f32 %v644_v52, %v622_v49 }
  0xfd   :  { %v449_v59 = vadd.f32 %v647_v57, %v625_v55 }
 0x116   :  { %v486_v61 = vpop.f32.mrb[4].mxu0 }
 0x117   :  { %v487_v63 = vadd.f32 %v486_v61, %v446_v58  ;;  %v675_v1 = vpop.f32.mrb[5].mxu0 }
 0x118   :  { %v489_v2 = vpop.f32.mrb[6].mxu0 }
 0x119   :  { %v521_v3 = vadd.f32 %v590_v62, %v487_v63  ;;  %v490_v4 = vadd.f32 %v489_v2, %v449_v59  ;;  %v676_v6 = vpop.f32.mrb[7].mxu0 }
 0x11b   :  { %v527_v7 = vadd.f32 %v597_v0, %v521_v3  ;;  %v522_v8 = vadd.f32 %v590_v62, %v490_v4 }
 0x11d   :  { %v528_v9 = vadd.f32 %v598_v5, %v522_v8  ;;  %v529_v10 = vmax.f32 %v527_v7, 0.0 }
 0x11f   :  { %v530_v11 = vmax.f32 %v528_v9, 0.0 }
 0x121   :  { %v602_v12 = vpack.c.bf16 %v530_v11, %v529_v10 }
 0x123   :  { %603 = vst [vmem:[%s901_s4] sm:$0xff] %v602_v12  }

</bundles_post_ra>
